<compile_context>
chip_gen: v7x
topology: tpu7x:2x2x1
jax: 0.10.0
libtpu: 0.0.40
codegen_flags: <defaults>
</compile_context>

<pallas_src>
import functools

import numpy as np
import jax
import jax.numpy as jnp
from jax.experimental import pallas as pl
from jax.experimental.pallas import tpu as pltpu

HID = 128
IN = 4   # state dim (q, qdot) with n = 2

# Explicit MXU precision: full-f32 contraction (correctness of the Hessian /
# 2x2 solve is the priority; do not silently fall back to bf16 passes).
MXU_PRECISION = jax.lax.Precision.HIGHEST


def _softmax(z):
    # Exact divide on purpose (see header comment).
    z = z - jnp.max(z, axis=-1, keepdims=True)
    e = jnp.exp(z)
    return e / jnp.sum(e, axis=-1, keepdims=True)


def lnn_kernel(x_ref, w1t_ref, b1_ref, w2_ref, w2t_ref, b2_ref, w3_ref,
               rhs6_ref, out_ref):
    # x: (TB,4) rows = [q0, q1, qdot0, qdot1].  Weight layouts (precomputed):
    #   w1t = W1.T (4,128), w2 = W2 (128,128), w2t = W2.T, b1/b2 (1,128),
    #   w3 = fc3.weight as (1,128), rhs6 = [W1 | W3.T | ones] (128,6).
    # fc3.bias cancels in every derivative and is not needed.
    tb = x_ref.shape[0]
    f32 = jnp.float32

    x = x_ref[...]
    w1t = w1t_ref[...]
    b1 = b1_ref[...]
    w2 = w2_ref[...]
    w2t = w2t_ref[...]
    b2 = b2_ref[...]
    w3 = w3_ref[...]
    rhs6 = rhs6_ref[...]

    # ---------------- primal forward (the lagrangian) ----------------
    # z1: K=4 contraction -> 4 VPU broadcast mul-adds (keep the MXU free).
    z1 = (b1
          + x[:, 0:1] * w1t[0:1, :]
          + x[:, 1:2] * w1t[1:2, :]
          + x[:, 2:3] * w1t[2:3, :]
          + x[:, 3:4] * w1t[3:4, :])                                   # (TB,128)
    a1 = _softmax(z1)
    z2 = jnp.dot(a1, w2t, preferred_element_type=f32,
                 precision=MXU_PRECISION) + b2                         # MXU #1
    a2 = _softmax(z2)

    # Fixed-vector reductions on the MXU:  T = a1 @ W1,  l0 = sum(a2*w3).
    tl = jnp.dot(jnp.concatenate([a1, a2], axis=0), rhs6,
                 preferred_element_type=f32,
                 precision=MXU_PRECISION)                              # MXU #2 (2TB,6)
    T = tl[0:tb, 0:4]            # T[:, j] = sum(a1 * w1t[j], -1)
    l0 = tl[tb:2 * tb, 4:5]      # sum(a2 * w3, -1)   (bias b3 cancels)

    # ---------------- reverse pass pieces that only need the primal -----
    w3ml0 = w3 - l0                                                    # (TB,128)
    s2 = a2 * w3ml0                                                    # dL/dz2

    # ------- forward-over-reverse: all 4 tangent directions stacked -------
    # 2-D (4TB,128) form only where an MXU dot needs it; (IN,TB,128) view +
    # [None]-broadcasts everywhere else (no replicated copies materialized).
    da1 = jnp.concatenate(
        [a1 * (w1t[j:j + 1, :] - T[:, j:j + 1]) for j in range(IN)],
        axis=0)                                                        # (4TB,128)
    dz2 = jnp.dot(da1, w2t, preferred_element_type=f32,
                  precision=MXU_PRECISION)                             # MXU #3

    da1_3 = da1.reshape(IN, tb, HID)       # free reshape (TB % 8 == 0)
    dz2_3 = dz2.reshape(IN, tb, HID)
    a1_b = a1[None]                        # (1,TB,128) broadcast views
    a2_b = a2[None]

    da2_3 = a2_b * (dz2_3 - jnp.sum(a2_b * dz2_3, axis=-1, keepdims=True))
    dl0_3 = jnp.dot(da2_3.reshape(IN * tb, HID), rhs6,
                    preferred_element_type=f32,
                    precision=MXU_PRECISION)[:, 4:5].reshape(IN, tb, 1)  # MXU #4
    ds2_3 = da2_3 * w3ml0[None] - a2_b * dl0_3

    # u and the 4 du's in ONE (5TB,128)x(128,128) matmul (same RHS = W2).
    udu = jnp.dot(jnp.concatenate([s2, ds2_3.reshape(IN * tb, HID)], axis=0),
                  w2, preferred_element_type=f32,
                  precision=MXU_PRECISION)                             # MXU #5
    u = udu[0:tb]                                                      # W2^T s2
    du_3 = udu[tb:5 * tb].reshape(IN, tb, HID)

    c = jnp.sum(a1 * u, axis=-1, keepdims=True)
    umc = u - c
    s1 = a1 * umc                                                      # dL/dz1

    # ds1' = da1*umc + a1*du  (the -a1*dc term is recovered from the ones
    # column of rhs6: rowsum(da1) == 0, so proj(ds1')[ones] == dc exactly).
    ds1p_3 = da1_3 * umc[None] + a1_b * du_3

    # Gradient + Hessian projections onto x in ONE (5TB,128)x(128,6) dot.
    g = jnp.dot(jnp.concatenate([s1, ds1p_3.reshape(IN * tb, HID)], axis=0),
                rhs6, preferred_element_type=f32,
                precision=MXU_PRECISION)                               # MXU #6 (5TB,6)

    g0 = g[0:tb, 0:1]                    # dL/dx0 (torch B[:n,0] broadcast quirk)
    T2 = T[:, 2:3]
    T3 = T[:, 3:4]
    dc0 = g[1 * tb:2 * tb, 5:6]
    dc1 = g[2 * tb:3 * tb, 5:6]
    dc2 = g[3 * tb:4 * tb, 5:6]
    dc3 = g[4 * tb:5 * tb, 5:6]
    # True Hessian entries: H[m, j] = g'[block j, m] - dc_j * T[:, m]
    h20 = g[1 * tb:2 * tb, 2:3] - dc0 * T2; h30 = g[1 * tb:2 * tb, 3:4] - dc0 * T3
    h21 = g[2 * tb:3 * tb, 2:3] - dc1 * T2; h31 = g[2 * tb:3 * tb, 3:4] - dc1 * T3
    h22 = g[3 * tb:4 * tb, 2:3] - dc2 * T2; h32 = g[3 * tb:4 * tb, 3:4] - dc2 * T3
    h23 = g[4 * tb:5 * tb, 2:3] - dc3 * T2; h33 = g[4 * tb:5 * tb, 3:4] - dc3 * T3

    # tqt = x[:, 2:] ;  rhs = g0 - H[2:,:2] @ tqt  (g0 broadcast, as in torch)
    tqt0 = x[:, 2:3]
    tqt1 = x[:, 3:4]
    rhs0 = g0 - (h20 * tqt0 + h21 * tqt1)
    rhs1 = g0 - (h30 * tqt0 + h31 * tqt1)

    # tqtt = inv(H[2:,2:]) @ rhs   (closed-form 2x2 inverse; EXACT divide --
    # the solve amplifies error, do not use an approx reciprocal here).
    det = h22 * h33 - h23 * h32
    inv_det = 1.0 / det

    # Direct slice stores (no lane-4 concat build-up in registers).
    out_ref[:, 0:1] = tqt0
    out_ref[:, 1:2] = tqt1
    out_ref[:, 2:3] = (h33 * rhs0 - h23 * rhs1) * inv_det
    out_ref[:, 3:4] = (-h32 * rhs0 + h22 * rhs1) * inv_det


def prepare_params(params):
    """Precompute kernel-ready weight layouts once (hoisted out of the hot path)."""
    W1, b1, W2, b2, W3, b3 = params          # torch nn.Linear layouts
    del b3                                   # fc3.bias cancels in all derivatives
    W1 = jnp.asarray(W1, jnp.float32)
    W2 = jnp.asarray(W2, jnp.float32)
    W3 = jnp.asarray(W3, jnp.float32)
    w3row = W3.reshape(1, HID)
    ones = jnp.ones((HID, 1), jnp.float32)
    rhs6 = jnp.concatenate([W1, w3row.T, ones], axis=1)  # (128,6) = [W1|W3^T|1]
    return (W1.T,                                        # w1t  (4,128)
            jnp.asarray(b1, jnp.float32).reshape(1, HID),
            W2,                                          # w2   (128,128)
            W2.T,                                        # w2t  (128,128)
            jnp.asarray(b2, jnp.float32).reshape(1, HID),
            w3row,                                       # (1,128)
            rhs6)                                        # (128,6)


def _choose_tile(batch, tb_req):
    """Pick a batch tile: multiple of 8, <=512 (VMEM cap incl. v7x), and
    guaranteeing >= 2 grid steps whenever batch > 8 (v7x has 2 TensorCores)."""
    tb = max(8, min(int(tb_req), 512))
    tb -= tb % 8
    half = 8 * ((batch + 15) // 16)   # ceil(batch/2) rounded up to a multiple of 8
    tb = min(tb, max(8, half))
    return tb


def lnn_forward(x, kparams, *, tb=256):
    """Pallas wrapper.  x: (B, 4) f32, kparams from prepare_params. Returns (B,4)."""
    w1t, b1r, w2, w2t, b2r, w3row, rhs6 = kparams
    B = x.shape[0]

    tb = _choose_tile(B, tb)
    grid_steps = -(-B // tb)
    b_pad = grid_steps * tb
    x_in = x
    if b_pad != B:
        # Edge-pad: replicated last row is a valid, finite sample; padded
        # outputs are sliced off below.  Never collapse to a 1-step grid.
        x_in = jnp.pad(x, ((0, b_pad - B), (0, 0)), mode="edge")

    weight_bytes = 4 * int(w1t.size + b1r.size + w2.size + w2t.size
                           + b2r.size + w3row.size + rhs6.size)
    cost = pl.CostEstimate(
        flops=int(22 * HID * HID * b_pad),           # 10x (.,128)x(128,128) passes dominate
        transcendentals=int(2 * HID * b_pad),        # two softmax exps per row
        bytes_accessed=int(8 * b_pad * IN) + weight_bytes)

    out = pl.pallas_call(
        lnn_kernel,
        out_shape=jax.ShapeDtypeStruct((b_pad, IN), jnp.float32),
        grid=(grid_steps,),
        in_specs=[
            pl.BlockSpec((tb, IN), lambda i: (i, 0)),          # x
            pl.BlockSpec(w1t.shape, lambda i: (0, 0)),         # W1^T
            pl.BlockSpec(b1r.shape, lambda i: (0, 0)),         # b1
            pl.BlockSpec(w2.shape, lambda i: (0, 0)),          # W2
            pl.BlockSpec(w2t.shape, lambda i: (0, 0)),         # W2^T
            pl.BlockSpec(b2r.shape, lambda i: (0, 0)),         # b2
            pl.BlockSpec(w3row.shape, lambda i: (0, 0)),       # w3 row
            pl.BlockSpec(rhs6.shape, lambda i: (0, 0)),        # [W1 | W3^T | 1]
        ],
        out_specs=pl.BlockSpec((tb, IN), lambda i: (i, 0)),
        compiler_params=pltpu.CompilerParams(
            dimension_semantics=("parallel",),
            vmem_limit_bytes=32 * 1024 * 1024),
        cost_estimate=cost,
    )(x_in, w1t, b1r, w2, w2t, b2r, w3row, rhs6)

    return out[:B] if b_pad != B else out


# ---------------------- pure-JAX reference (autodiff) ----------------------
def _lagrangian(params, xi):
    W1, b1, W2, b2, W3, b3 = params
    h = jax.nn.softmax(W1 @ xi + b1)
    h = jax.nn.softmax(W2 @ h + b2)
    return W3 @ h + b3                        # shape (1,)


def ref_forward(x, params):
    n = x.shape[1] // 2

    def per_sample(xi):
        f = lambda z: _lagrangian(params, z)
        A = jax.hessian(lambda z: f(z)[0])(xi)     # (4,4)
        Bj = jax.jacobian(f)(xi)                   # (1,4)
        tqti = xi[n:]
        rhs = Bj[:n, 0] - A[n:, :n] @ tqti         # (1,) broadcast vs (2,)
        tqtt = jnp.linalg.inv(A[n:, n:]) @ rhs
        return jnp.concatenate([tqti, tqtt])

    return jax.vmap(per_sample)(x)


if __name__ == "__main__":
    key = jax.random.PRNGKey(0)
    ks = jax.random.split(key, 7)

    def linear_init(kw, kb, out_f, in_f):
        bound = 1.0 / np.sqrt(in_f)
        W = jax.random.uniform(kw, (out_f, in_f), jnp.float32, -bound, bound)
        b = jax.random.uniform(kb, (out_f,), jnp.float32, -bound, bound)
        return W, b

    W1, b1 = linear_init(ks[0], ks[1], HID, IN)
    W2, b2 = linear_init(ks[2], ks[3], HID, HID)
    W3, b3 = linear_init(ks[4], ks[5], 1, HID)
    params = (W1, b1, W2, b2, W3, b3)
    kparams = prepare_params(params)           # weight transposes hoisted, done once

    BATCH = 32
    x = jax.random.normal(ks[6], (BATCH, IN), jnp.float32)

    fwd = jax.jit(functools.partial(lnn_forward, tb=256))

    # Run 1: B=32 -> tile 16, grid=(2,) (exercises the multi-step parallel grid).
    out = jax.block_until_ready(fwd(x, kparams))
    ref = jax.block_until_ready(ref_forward(x, params))
    # TODO(synk): tolerance stays loose because the eager autodiff reference
    # itself runs at default (bf16-pass) matmul precision on TPU.
    np.testing.assert_allclose(
        np.asarray(out), np.asarray(ref),
        rtol=1e-1, atol=1e-4 * float(np.max(np.abs(np.asarray(ref)))))

    # Run 2: ragged B=19 -> tile 16, grid=(2,), edge-padded to 32 then sliced
    # back (exercises the padding path; rows are a subset of the ones above).
    out2 = jax.block_until_ready(fwd(x[:19], kparams))
    np.testing.assert_allclose(
        np.asarray(out2), np.asarray(ref)[:19],
        rtol=1e-1, atol=1e-4 * float(np.max(np.abs(np.asarray(ref)))))

    print("KERNEL_OK")
</pallas_src>

<mosaic_0001>
module attributes {stable_mosaic.version = 11 : i64} {
  func.func @lnn_kernel(%arg0: i32, %arg1: memref<16x4xf32, #tpu.memory_space<vmem>>, %arg2: memref<4x128xf32, #tpu.memory_space<vmem>>, %arg3: memref<1x128xf32, #tpu.memory_space<vmem>>, %arg4: memref<128x128xf32, #tpu.memory_space<vmem>>, %arg5: memref<128x128xf32, #tpu.memory_space<vmem>>, %arg6: memref<1x128xf32, #tpu.memory_space<vmem>>, %arg7: memref<1x128xf32, #tpu.memory_space<vmem>>, %arg8: memref<128x6xf32, #tpu.memory_space<vmem>>, %arg9: memref<16x4xf32, #tpu.memory_space<vmem>>) attributes {dimension_semantics = [#tpu.dimension_semantics<parallel>], iteration_bounds = array<i64: 2>, scalar_prefetch = 0 : i64, scratch_operands = 0 : i64, tpu.core_type = #tpu.core_type<tc>, window_params = [{transform_indices = @transform_0, window_bounds = array<i64: 16, 4>}, {pipeline_mode = #tpu.pipeline_mode<synchronous>, transform_indices = @transform_1, window_bounds = array<i64: 4, 128>}, {pipeline_mode = #tpu.pipeline_mode<synchronous>, transform_indices = @transform_2, window_bounds = array<i64: 1, 128>}, {pipeline_mode = #tpu.pipeline_mode<synchronous>, transform_indices = @transform_3, window_bounds = array<i64: 128, 128>}, {pipeline_mode = #tpu.pipeline_mode<synchronous>, transform_indices = @transform_4, window_bounds = array<i64: 128, 128>}, {pipeline_mode = #tpu.pipeline_mode<synchronous>, transform_indices = @transform_5, window_bounds = array<i64: 1, 128>}, {pipeline_mode = #tpu.pipeline_mode<synchronous>, transform_indices = @transform_6, window_bounds = array<i64: 1, 128>}, {pipeline_mode = #tpu.pipeline_mode<synchronous>, transform_indices = @transform_7, window_bounds = array<i64: 128, 6>}, {transform_indices = @transform_8, window_bounds = array<i64: 16, 4>}]} {
    %c0 = arith.constant 0 : index
    %c0_0 = arith.constant 0 : index
    %0 = vector.load %arg1[%c0, %c0_0] : memref<16x4xf32, #tpu.memory_space<vmem>>, vector<16x4xf32>
    %c0_1 = arith.constant 0 : index
    %c0_2 = arith.constant 0 : index
    %1 = vector.load %arg2[%c0_1, %c0_2] : memref<4x128xf32, #tpu.memory_space<vmem>>, vector<4x128xf32>
    %c0_3 = arith.constant 0 : index
    %c0_4 = arith.constant 0 : index
    %2 = vector.load %arg3[%c0_3, %c0_4] : memref<1x128xf32, #tpu.memory_space<vmem>>, vector<1x128xf32>
    %c0_5 = arith.constant 0 : index
    %c0_6 = arith.constant 0 : index
    %3 = vector.load %arg4[%c0_5, %c0_6] : memref<128x128xf32, #tpu.memory_space<vmem>>, vector<128x128xf32>
    %c0_7 = arith.constant 0 : index
    %c0_8 = arith.constant 0 : index
    %4 = vector.load %arg5[%c0_7, %c0_8] : memref<128x128xf32, #tpu.memory_space<vmem>>, vector<128x128xf32>
    %c0_9 = arith.constant 0 : index
    %c0_10 = arith.constant 0 : index
    %5 = vector.load %arg6[%c0_9, %c0_10] : memref<1x128xf32, #tpu.memory_space<vmem>>, vector<1x128xf32>
    %c0_11 = arith.constant 0 : index
    %c0_12 = arith.constant 0 : index
    %6 = vector.load %arg7[%c0_11, %c0_12] : memref<1x128xf32, #tpu.memory_space<vmem>>, vector<1x128xf32>
    %c0_13 = arith.constant 0 : index
    %c0_14 = arith.constant 0 : index
    %7 = vector.load %arg8[%c0_13, %c0_14] : memref<128x6xf32, #tpu.memory_space<vmem>>, vector<128x6xf32>
    %8 = vector.extract_strided_slice %0 {offsets = [0, 0], sizes = [16, 1], strides = [1, 1]} : vector<16x4xf32> to vector<16x1xf32>
    %9 = vector.extract_strided_slice %1 {offsets = [0, 0], sizes = [1, 128], strides = [1, 1]} : vector<4x128xf32> to vector<1x128xf32>
    %10 = vector.broadcast %8 : vector<16x1xf32> to vector<16x128xf32>
    %11 = vector.broadcast %9 : vector<1x128xf32> to vector<16x128xf32>
    %12 = arith.mulf %10, %11 : vector<16x128xf32>
    %13 = vector.broadcast %2 : vector<1x128xf32> to vector<16x128xf32>
    %14 = arith.addf %13, %12 : vector<16x128xf32>
    %15 = vector.extract_strided_slice %0 {offsets = [0, 1], sizes = [16, 1], strides = [1, 1]} : vector<16x4xf32> to vector<16x1xf32>
    %16 = vector.extract_strided_slice %1 {offsets = [1, 0], sizes = [1, 128], strides = [1, 1]} : vector<4x128xf32> to vector<1x128xf32>
    %17 = vector.broadcast %15 : vector<16x1xf32> to vector<16x128xf32>
    %18 = vector.broadcast %16 : vector<1x128xf32> to vector<16x128xf32>
    %19 = arith.mulf %17, %18 : vector<16x128xf32>
    %20 = arith.addf %14, %19 : vector<16x128xf32>
    %21 = vector.extract_strided_slice %0 {offsets = [0, 2], sizes = [16, 1], strides = [1, 1]} : vector<16x4xf32> to vector<16x1xf32>
    %22 = vector.extract_strided_slice %1 {offsets = [2, 0], sizes = [1, 128], strides = [1, 1]} : vector<4x128xf32> to vector<1x128xf32>
    %23 = vector.broadcast %21 : vector<16x1xf32> to vector<16x128xf32>
    %24 = vector.broadcast %22 : vector<1x128xf32> to vector<16x128xf32>
    %25 = arith.mulf %23, %24 : vector<16x128xf32>
    %26 = arith.addf %20, %25 : vector<16x128xf32>
    %27 = vector.extract_strided_slice %0 {offsets = [0, 3], sizes = [16, 1], strides = [1, 1]} : vector<16x4xf32> to vector<16x1xf32>
    %28 = vector.extract_strided_slice %1 {offsets = [3, 0], sizes = [1, 128], strides = [1, 1]} : vector<4x128xf32> to vector<1x128xf32>
    %29 = vector.broadcast %27 : vector<16x1xf32> to vector<16x128xf32>
    %30 = vector.broadcast %28 : vector<1x128xf32> to vector<16x128xf32>
    %31 = arith.mulf %29, %30 : vector<16x128xf32>
    %32 = arith.addf %26, %31 : vector<16x128xf32>
    %cst = arith.constant dense<0xFF800000> : vector<16xf32>
    %33 = vector.multi_reduction <maximumf>, %32, %cst [1] : vector<16x128xf32> to vector<16xf32>
    %34 = vector.shape_cast %33 : vector<16xf32> to vector<16x1xf32>
    %35 = vector.broadcast %34 : vector<16x1xf32> to vector<16x128xf32>
    %36 = arith.subf %32, %35 : vector<16x128xf32>
    %37 = math.exp %36 : vector<16x128xf32>
    %cst_15 = arith.constant dense<0.000000e+00> : vector<16xf32>
    %38 = vector.multi_reduction <add>, %37, %cst_15 [1] : vector<16x128xf32> to vector<16xf32>
    %39 = vector.shape_cast %38 : vector<16xf32> to vector<16x1xf32>
    %40 = vector.broadcast %39 : vector<16x1xf32> to vector<16x128xf32>
    %41 = arith.divf %37, %40 : vector<16x128xf32>
    %cst_16 = arith.constant dense<0.000000e+00> : vector<16x128xf32>
    %42 = tpu.matmul %41, %4, %cst_16 {dimension_numbers = #tpu.dot_dimension_numbers<[1], [0], [0], [1], [0, 0, 1, 1], [], []>, precision = #tpu.contract_precision<fp32>} : vector<16x128xf32>, vector<128x128xf32>, vector<16x128xf32> -> vector<16x128xf32>
    %43 = vector.broadcast %5 : vector<1x128xf32> to vector<16x128xf32>
    %44 = arith.addf %42, %43 : vector<16x128xf32>
    %cst_17 = arith.constant dense<0xFF800000> : vector<16xf32>
    %45 = vector.multi_reduction <maximumf>, %44, %cst_17 [1] : vector<16x128xf32> to vector<16xf32>
    %46 = vector.shape_cast %45 : vector<16xf32> to vector<16x1xf32>
    %47 = vector.broadcast %46 : vector<16x1xf32> to vector<16x128xf32>
    %48 = arith.subf %44, %47 : vector<16x128xf32>
    %49 = math.exp %48 : vector<16x128xf32>
    %cst_18 = arith.constant dense<0.000000e+00> : vector<16xf32>
    %50 = vector.multi_reduction <add>, %49, %cst_18 [1] : vector<16x128xf32> to vector<16xf32>
    %51 = vector.shape_cast %50 : vector<16xf32> to vector<16x1xf32>
    %52 = vector.broadcast %51 : vector<16x1xf32> to vector<16x128xf32>
    %53 = arith.divf %49, %52 : vector<16x128xf32>
    %54 = tpu.concatenate %41, %53 in 0 : vector<16x128xf32>, vector<16x128xf32> -> vector<32x128xf32>
    %cst_19 = arith.constant dense<0.000000e+00> : vector<32x6xf32>
    %55 = tpu.matmul %54, %7, %cst_19 {dimension_numbers = #tpu.dot_dimension_numbers<[1], [0], [0], [1], [0, 0, 1, 1], [], []>, precision = #tpu.contract_precision<fp32>} : vector<32x128xf32>, vector<128x6xf32>, vector<32x6xf32> -> vector<32x6xf32>
    %56 = vector.extract_strided_slice %55 {offsets = [0, 0], sizes = [16, 4], strides = [1, 1]} : vector<32x6xf32> to vector<16x4xf32>
    %57 = vector.extract_strided_slice %55 {offsets = [16, 4], sizes = [16, 1], strides = [1, 1]} : vector<32x6xf32> to vector<16x1xf32>
    %58 = vector.broadcast %6 : vector<1x128xf32> to vector<16x128xf32>
    %59 = vector.broadcast %57 : vector<16x1xf32> to vector<16x128xf32>
    %60 = arith.subf %58, %59 : vector<16x128xf32>
    %61 = arith.mulf %53, %60 : vector<16x128xf32>
    %62 = vector.extract_strided_slice %1 {offsets = [0, 0], sizes = [1, 128], strides = [1, 1]} : vector<4x128xf32> to vector<1x128xf32>
    %63 = vector.extract_strided_slice %56 {offsets = [0, 0], sizes = [16, 1], strides = [1, 1]} : vector<16x4xf32> to vector<16x1xf32>
    %64 = vector.broadcast %62 : vector<1x128xf32> to vector<16x128xf32>
    %65 = vector.broadcast %63 : vector<16x1xf32> to vector<16x128xf32>
    %66 = arith.subf %64, %65 : vector<16x128xf32>
    %67 = arith.mulf %41, %66 : vector<16x128xf32>
    %68 = vector.extract_strided_slice %1 {offsets = [1, 0], sizes = [1, 128], strides = [1, 1]} : vector<4x128xf32> to vector<1x128xf32>
    %69 = vector.extract_strided_slice %56 {offsets = [0, 1], sizes = [16, 1], strides = [1, 1]} : vector<16x4xf32> to vector<16x1xf32>
    %70 = vector.broadcast %68 : vector<1x128xf32> to vector<16x128xf32>
    %71 = vector.broadcast %69 : vector<16x1xf32> to vector<16x128xf32>
    %72 = arith.subf %70, %71 : vector<16x128xf32>
    %73 = arith.mulf %41, %72 : vector<16x128xf32>
    %74 = vector.extract_strided_slice %1 {offsets = [2, 0], sizes = [1, 128], strides = [1, 1]} : vector<4x128xf32> to vector<1x128xf32>
    %75 = vector.extract_strided_slice %56 {offsets = [0, 2], sizes = [16, 1], strides = [1, 1]} : vector<16x4xf32> to vector<16x1xf32>
    %76 = vector.broadcast %74 : vector<1x128xf32> to vector<16x128xf32>
    %77 = vector.broadcast %75 : vector<16x1xf32> to vector<16x128xf32>
    %78 = arith.subf %76, %77 : vector<16x128xf32>
    %79 = arith.mulf %41, %78 : vector<16x128xf32>
    %80 = vector.extract_strided_slice %1 {offsets = [3, 0], sizes = [1, 128], strides = [1, 1]} : vector<4x128xf32> to vector<1x128xf32>
    %81 = vector.extract_strided_slice %56 {offsets = [0, 3], sizes = [16, 1], strides = [1, 1]} : vector<16x4xf32> to vector<16x1xf32>
    %82 = vector.broadcast %80 : vector<1x128xf32> to vector<16x128xf32>
    %83 = vector.broadcast %81 : vector<16x1xf32> to vector<16x128xf32>
    %84 = arith.subf %82, %83 : vector<16x128xf32>
    %85 = arith.mulf %41, %84 : vector<16x128xf32>
    %86 = tpu.concatenate %67, %73, %79, %85 in 0 : vector<16x128xf32>, vector<16x128xf32>, vector<16x128xf32>, vector<16x128xf32> -> vector<64x128xf32>
    %cst_20 = arith.constant dense<0.000000e+00> : vector<64x128xf32>
    %87 = tpu.matmul %86, %4, %cst_20 {dimension_numbers = #tpu.dot_dimension_numbers<[1], [0], [0], [1], [0, 0, 1, 1], [], []>, precision = #tpu.contract_precision<fp32>} : vector<64x128xf32>, vector<128x128xf32>, vector<64x128xf32> -> vector<64x128xf32>
    %88 = vector.shape_cast %86 : vector<64x128xf32> to vector<4x16x128xf32>
    %89 = vector.shape_cast %87 : vector<64x128xf32> to vector<4x16x128xf32>
    %90 = vector.shape_cast %41 : vector<16x128xf32> to vector<1x16x128xf32>
    %91 = vector.shape_cast %53 : vector<16x128xf32> to vector<1x16x128xf32>
    %92 = vector.broadcast %91 : vector<1x16x128xf32> to vector<4x16x128xf32>
    %93 = arith.mulf %92, %89 : vector<4x16x128xf32>
    %cst_21 = arith.constant dense<0.000000e+00> : vector<4x16xf32>
    %94 = vector.multi_reduction <add>, %93, %cst_21 [2] : vector<4x16x128xf32> to vector<4x16xf32>
    %95 = vector.shape_cast %94 : vector<4x16xf32> to vector<4x16x1xf32>
    %96 = vector.broadcast %95 : vector<4x16x1xf32> to vector<4x16x128xf32>
    %97 = arith.subf %89, %96 : vector<4x16x128xf32>
    %98 = vector.broadcast %91 : vector<1x16x128xf32> to vector<4x16x128xf32>
    %99 = arith.mulf %98, %97 : vector<4x16x128xf32>
    %100 = vector.shape_cast %99 : vector<4x16x128xf32> to vector<64x128xf32>
    %cst_22 = arith.constant dense<0.000000e+00> : vector<64x6xf32>
    %101 = tpu.matmul %100, %7, %cst_22 {dimension_numbers = #tpu.dot_dimension_numbers<[1], [0], [0], [1], [0, 0, 1, 1], [], []>, precision = #tpu.contract_precision<fp32>} : vector<64x128xf32>, vector<128x6xf32>, vector<64x6xf32> -> vector<64x6xf32>
    %102 = vector.extract_strided_slice %101 {offsets = [0, 4], sizes = [64, 1], strides = [1, 1]} : vector<64x6xf32> to vector<64x1xf32>
    %103 = vector.shape_cast %102 : vector<64x1xf32> to vector<4x16x1xf32>
    %104 = vector.shape_cast %60 : vector<16x128xf32> to vector<1x16x128xf32>
    %105 = vector.broadcast %104 : vector<1x16x128xf32> to vector<4x16x128xf32>
    %106 = arith.mulf %99, %105 : vector<4x16x128xf32>
    %107 = vector.broadcast %91 : vector<1x16x128xf32> to vector<4x16x128xf32>
    %108 = vector.broadcast %103 : vector<4x16x1xf32> to vector<4x16x128xf32>
    %109 = arith.mulf %107, %108 : vector<4x16x128xf32>
    %110 = arith.subf %106, %109 : vector<4x16x128xf32>
    %111 = vector.shape_cast %110 : vector<4x16x128xf32> to vector<64x128xf32>
    %112 = tpu.concatenate %61, %111 in 0 : vector<16x128xf32>, vector<64x128xf32> -> vector<80x128xf32>
    %cst_23 = arith.constant dense<0.000000e+00> : vector<80x128xf32>
    %113 = tpu.matmul %112, %3, %cst_23 {dimension_numbers = #tpu.dot_dimension_numbers<[1], [0], [0], [1], [0, 0, 1, 1], [], []>, precision = #tpu.contract_precision<fp32>} : vector<80x128xf32>, vector<128x128xf32>, vector<80x128xf32> -> vector<80x128xf32>
    %114 = vector.extract_strided_slice %113 {offsets = [0, 0], sizes = [16, 128], strides = [1, 1]} : vector<80x128xf32> to vector<16x128xf32>
    %115 = vector.extract_strided_slice %113 {offsets = [16, 0], sizes = [64, 128], strides = [1, 1]} : vector<80x128xf32> to vector<64x128xf32>
    %116 = vector.shape_cast %115 : vector<64x128xf32> to vector<4x16x128xf32>
    %117 = arith.mulf %41, %114 : vector<16x128xf32>
    %cst_24 = arith.constant dense<0.000000e+00> : vector<16xf32>
    %118 = vector.multi_reduction <add>, %117, %cst_24 [1] : vector<16x128xf32> to vector<16xf32>
    %119 = vector.shape_cast %118 : vector<16xf32> to vector<16x1xf32>
    %120 = vector.broadcast %119 : vector<16x1xf32> to vector<16x128xf32>
    %121 = arith.subf %114, %120 : vector<16x128xf32>
    %122 = arith.mulf %41, %121 : vector<16x128xf32>
    %123 = vector.shape_cast %121 : vector<16x128xf32> to vector<1x16x128xf32>
    %124 = vector.broadcast %123 : vector<1x16x128xf32> to vector<4x16x128xf32>
    %125 = arith.mulf %88, %124 : vector<4x16x128xf32>
    %126 = vector.broadcast %90 : vector<1x16x128xf32> to vector<4x16x128xf32>
    %127 = arith.mulf %126, %116 : vector<4x16x128xf32>
    %128 = arith.addf %125, %127 : vector<4x16x128xf32>
    %129 = vector.shape_cast %128 : vector<4x16x128xf32> to vector<64x128xf32>
    %130 = tpu.concatenate %122, %129 in 0 : vector<16x128xf32>, vector<64x128xf32> -> vector<80x128xf32>
    %cst_25 = arith.constant dense<0.000000e+00> : vector<80x6xf32>
    %131 = tpu.matmul %130, %7, %cst_25 {dimension_numbers = #tpu.dot_dimension_numbers<[1], [0], [0], [1], [0, 0, 1, 1], [], []>, precision = #tpu.contract_precision<fp32>} : vector<80x128xf32>, vector<128x6xf32>, vector<80x6xf32> -> vector<80x6xf32>
    %132 = vector.extract_strided_slice %131 {offsets = [0, 0], sizes = [16, 1], strides = [1, 1]} : vector<80x6xf32> to vector<16x1xf32>
    %133 = vector.extract_strided_slice %56 {offsets = [0, 2], sizes = [16, 1], strides = [1, 1]} : vector<16x4xf32> to vector<16x1xf32>
    %134 = vector.extract_strided_slice %56 {offsets = [0, 3], sizes = [16, 1], strides = [1, 1]} : vector<16x4xf32> to vector<16x1xf32>
    %135 = vector.extract_strided_slice %131 {offsets = [16, 5], sizes = [16, 1], strides = [1, 1]} : vector<80x6xf32> to vector<16x1xf32>
    %136 = vector.extract_strided_slice %131 {offsets = [32, 5], sizes = [16, 1], strides = [1, 1]} : vector<80x6xf32> to vector<16x1xf32>
    %137 = vector.extract_strided_slice %131 {offsets = [48, 5], sizes = [16, 1], strides = [1, 1]} : vector<80x6xf32> to vector<16x1xf32>
    %138 = vector.extract_strided_slice %131 {offsets = [64, 5], sizes = [16, 1], strides = [1, 1]} : vector<80x6xf32> to vector<16x1xf32>
    %139 = vector.extract_strided_slice %131 {offsets = [16, 2], sizes = [16, 1], strides = [1, 1]} : vector<80x6xf32> to vector<16x1xf32>
    %140 = arith.mulf %135, %133 : vector<16x1xf32>
    %141 = arith.subf %139, %140 : vector<16x1xf32>
    %142 = vector.extract_strided_slice %131 {offsets = [16, 3], sizes = [16, 1], strides = [1, 1]} : vector<80x6xf32> to vector<16x1xf32>
    %143 = arith.mulf %135, %134 : vector<16x1xf32>
    %144 = arith.subf %142, %143 : vector<16x1xf32>
    %145 = vector.extract_strided_slice %131 {offsets = [32, 2], sizes = [16, 1], strides = [1, 1]} : vector<80x6xf32> to vector<16x1xf32>
    %146 = arith.mulf %136, %133 : vector<16x1xf32>
    %147 = arith.subf %145, %146 : vector<16x1xf32>
    %148 = vector.extract_strided_slice %131 {offsets = [32, 3], sizes = [16, 1], strides = [1, 1]} : vector<80x6xf32> to vector<16x1xf32>
    %149 = arith.mulf %136, %134 : vector<16x1xf32>
    %150 = arith.subf %148, %149 : vector<16x1xf32>
    %151 = vector.extract_strided_slice %131 {offsets = [48, 2], sizes = [16, 1], strides = [1, 1]} : vector<80x6xf32> to vector<16x1xf32>
    %152 = arith.mulf %137, %133 : vector<16x1xf32>
    %153 = arith.subf %151, %152 : vector<16x1xf32>
    %154 = vector.extract_strided_slice %131 {offsets = [48, 3], sizes = [16, 1], strides = [1, 1]} : vector<80x6xf32> to vector<16x1xf32>
    %155 = arith.mulf %137, %134 : vector<16x1xf32>
    %156 = arith.subf %154, %155 : vector<16x1xf32>
    %157 = vector.extract_strided_slice %131 {offsets = [64, 2], sizes = [16, 1], strides = [1, 1]} : vector<80x6xf32> to vector<16x1xf32>
    %158 = arith.mulf %138, %133 : vector<16x1xf32>
    %159 = arith.subf %157, %158 : vector<16x1xf32>
    %160 = vector.extract_strided_slice %131 {offsets = [64, 3], sizes = [16, 1], strides = [1, 1]} : vector<80x6xf32> to vector<16x1xf32>
    %161 = arith.mulf %138, %134 : vector<16x1xf32>
    %162 = arith.subf %160, %161 : vector<16x1xf32>
    %163 = vector.extract_strided_slice %0 {offsets = [0, 2], sizes = [16, 1], strides = [1, 1]} : vector<16x4xf32> to vector<16x1xf32>
    %164 = vector.extract_strided_slice %0 {offsets = [0, 3], sizes = [16, 1], strides = [1, 1]} : vector<16x4xf32> to vector<16x1xf32>
    %165 = arith.mulf %141, %163 : vector<16x1xf32>
    %166 = arith.mulf %147, %164 : vector<16x1xf32>
    %167 = arith.addf %165, %166 : vector<16x1xf32>
    %168 = arith.subf %132, %167 : vector<16x1xf32>
    %169 = arith.mulf %144, %163 : vector<16x1xf32>
    %170 = arith.mulf %150, %164 : vector<16x1xf32>
    %171 = arith.addf %169, %170 : vector<16x1xf32>
    %172 = arith.subf %132, %171 : vector<16x1xf32>
    %173 = arith.mulf %153, %162 : vector<16x1xf32>
    %174 = arith.mulf %159, %156 : vector<16x1xf32>
    %175 = arith.subf %173, %174 : vector<16x1xf32>
    %cst_26 = arith.constant 1.000000e+00 : f32
    %176 = vector.broadcast %cst_26 : f32 to vector<16x1xf32>
    %177 = arith.divf %176, %175 : vector<16x1xf32>
    %c0_27 = arith.constant 0 : index
    %c0_28 = arith.constant 0 : index
    %178 = vector.load %arg9[%c0_27, %c0_28] : memref<16x4xf32, #tpu.memory_space<vmem>>, vector<16x1xf32>
    tpu.vector_store %arg9[%c0_27, %c0_28], %163 {strides = array<i32>} : memref<16x4xf32, #tpu.memory_space<vmem>>, vector<16x1xf32>,
    %c0_29 = arith.constant 0 : index
    %c1 = arith.constant 1 : index
    %179 = vector.load %arg9[%c0_29, %c1] : memref<16x4xf32, #tpu.memory_space<vmem>>, vector<16x1xf32>
    tpu.vector_store %arg9[%c0_29, %c1], %164 {strides = array<i32>} : memref<16x4xf32, #tpu.memory_space<vmem>>, vector<16x1xf32>,
    %180 = arith.mulf %162, %168 : vector<16x1xf32>
    %181 = arith.mulf %159, %172 : vector<16x1xf32>
    %182 = arith.subf %180, %181 : vector<16x1xf32>
    %183 = arith.mulf %182, %177 : vector<16x1xf32>
    %c0_30 = arith.constant 0 : index
    %c2 = arith.constant 2 : index
    %184 = vector.load %arg9[%c0_30, %c2] : memref<16x4xf32, #tpu.memory_space<vmem>>, vector<16x1xf32>
    tpu.vector_store %arg9[%c0_30, %c2], %183 {strides = array<i32>} : memref<16x4xf32, #tpu.memory_space<vmem>>, vector<16x1xf32>,
    %cst_31 = arith.constant 0.000000e+00 : f32
    %185 = vector.broadcast %cst_31 : f32 to vector<16x1xf32>
    %186 = arith.subf %185, %156 : vector<16x1xf32>
    %187 = arith.mulf %186, %168 : vector<16x1xf32>
    %188 = arith.mulf %153, %172 : vector<16x1xf32>
    %189 = arith.addf %187, %188 : vector<16x1xf32>
    %190 = arith.mulf %189, %177 : vector<16x1xf32>
    %c0_32 = arith.constant 0 : index
    %c3 = arith.constant 3 : index
    %191 = vector.load %arg9[%c0_32, %c3] : memref<16x4xf32, #tpu.memory_space<vmem>>, vector<16x1xf32>
    tpu.vector_store %arg9[%c0_32, %c3], %190 {strides = array<i32>} : memref<16x4xf32, #tpu.memory_space<vmem>>, vector<16x1xf32>,
    return
  }
  func.func @transform_0(%arg0: i32) -> (i32, i32) {
    %c0_i32 = arith.constant 0 : i32
    %c0_i32_0 = arith.constant 0 : i32
    return %arg0, %c0_i32 : i32, i32
  }
  func.func @transform_1(%arg0: i32) -> (i32, i32) {
    %c0_i32 = arith.constant 0 : i32
    %c0_i32_0 = arith.constant 0 : i32
    %c0_i32_1 = arith.constant 0 : i32
    return %c0_i32, %c0_i32_0 : i32, i32
  }
  func.func @transform_2(%arg0: i32) -> (i32, i32) {
    %c0_i32 = arith.constant 0 : i32
    %c0_i32_0 = arith.constant 0 : i32
    %c0_i32_1 = arith.constant 0 : i32
    return %c0_i32, %c0_i32_0 : i32, i32
  }
  func.func @transform_3(%arg0: i32) -> (i32, i32) {
    %c0_i32 = arith.constant 0 : i32
    %c0_i32_0 = arith.constant 0 : i32
    %c0_i32_1 = arith.constant 0 : i32
    return %c0_i32, %c0_i32_0 : i32, i32
  }
  func.func @transform_4(%arg0: i32) -> (i32, i32) {
    %c0_i32 = arith.constant 0 : i32
    %c0_i32_0 = arith.constant 0 : i32
    %c0_i32_1 = arith.constant 0 : i32
    return %c0_i32, %c0_i32_0 : i32, i32
  }
  func.func @transform_5(%arg0: i32) -> (i32, i32) {
    %c0_i32 = arith.constant 0 : i32
    %c0_i32_0 = arith.constant 0 : i32
    %c0_i32_1 = arith.constant 0 : i32
    return %c0_i32, %c0_i32_0 : i32, i32
  }
  func.func @transform_6(%arg0: i32) -> (i32, i32) {
    %c0_i32 = arith.constant 0 : i32
    %c0_i32_0 = arith.constant 0 : i32
    %c0_i32_1 = arith.constant 0 : i32
    return %c0_i32, %c0_i32_0 : i32, i32
  }
  func.func @transform_7(%arg0: i32) -> (i32, i32) {
    %c0_i32 = arith.constant 0 : i32
    %c0_i32_0 = arith.constant 0 : i32
    %c0_i32_1 = arith.constant 0 : i32
    return %c0_i32, %c0_i32_0 : i32, i32
  }
  func.func @transform_8(%arg0: i32) -> (i32, i32) {
    %c0_i32 = arith.constant 0 : i32
    %c0_i32_0 = arith.constant 0 : i32
    return %arg0, %c0_i32 : i32, i32
  }
}

</mosaic_0001>

<bundles_post_ra>
// kernel: lnn_forward.1
= control target key start
LH: loop header
LB: loop body
LE: loop exit
PB: predicated region body
PF: predicated region fallthrough
CT: control target
= control target key end

     0   :  { %13 = vsyncpa [#allocation3], 0  ;;  %s10330_s27 = smov 0   ;;  %s12986_s0 = inlined_call_operand.vmem [shape: f32[32,4], index: 0, kind: input, shape index: {}]   ;;  %s12987_s1 = inlined_call_operand.vmem [shape: f32[4,128], index: 1, kind: input, shape index: {}]   ;;  %s12988_s2 = inlined_call_operand.vmem [shape: f32[1,128], index: 2, kind: input, shape index: {}]   ;;  %s12989_s3 = inlined_call_operand.vmem [shape: f32[128,128], index: 3, kind: input, shape index: {}]   ;;  %s12990_s4 = inlined_call_operand.hbm [shape: f32[128,128], index: 4, kind: input, shape index: {}]   ;;  %s12991_s5 = inlined_call_operand.vmem [shape: f32[1,128], index: 5, kind: input, shape index: {}]   ;;  %s12992_s6 = inlined_call_operand.vmem [shape: f32[1,128], index: 6, kind: input, shape index: {}]   ;;  %s12993_s7 = inlined_call_operand.vmem [shape: f32[128,6], index: 7, kind: input, shape index: {}]   ;;  %s12994_s8 = inlined_call_operand.vmem [shape: f32[32,4], index: 8, kind: output, shape index: {}]  }
   0x1 LB: > { %s6424_s28 = sadd.s32 4294967295, %s10269_s27   ;;  %p6426_p0 = scmp.ge.s32.totalorder %s10269_s27, 1  ;;  %s10269_s27 = sphi %s10330_s27, %s19_s27  }
   0x2   : > { %p223_p1 = scmp.lt.s32.totalorder %s10269_s27, 3  ;;  %s10271_s29 = smov [#allocation2]  }
   0x3   : > { %s244_s30 = sshll.u32 %s10271_s29, 4  ;;  %p10344_p3 = scmp.eq.s32.totalorder %s6424_s28, 0  ;;  %s245_s30 = int_to_ptr.vmem [resolvable:$true] %s244_s30 }
   0x4   : > { %p10338_p2 = pnand %p6426_p0, %p223_p1  ;;  %s10231_s14 = scalar_lea.hbm %s12990_s4, 2048 }
   0x5   : > { %s13297_s10 = scalar_select %p10344_p3, 1, 0 }
   0x6   : > { %s13296_s9 = scalar_select %p10338_p2, 1, 0 }
   0x7   : > { %p10166_p4 = pneg %p10338_p2  ;;  %p10232_p6 = scmp.ne.s32.totalorder %s12990_s4, %s10231_s14 }
   0x8   : > { %p10238_p10 = scmp.lt.u32.totalorder %s10231_s14, %s12990_s4 }
   0x9   : > { %p10352_p5 = pnand %p10344_p3, %p10166_p4 }
   0xb   : > { %p10233_p7 = pneg %p10352_p5 }
   0xd   : > { %p10234_p8 = pnand %p10233_p7, %p10232_p6 }
   0xf   : > { %p10235_p9 = pneg %p10234_p8 }
  0x11   : > { %p10240_p11 = pnand %p10238_p10, %p10235_p9 }
  0x13   : > { %10243 = shalt.err (!%p10240_p11)
}
  0x14   : > { %s10244_s19 = scalar_lea.vmem %s245_s30, 2048  ;;  %p10252_p1 = scmp.lt.s32.totalorder %s245_s30, %s245_s30 }
  0x15   : > { %p10245_p12 = scmp.ne.s32.totalorder %s245_s30, %s10244_s19  ;;  %p10253_p4 = scmp.lt.s32.totalorder %s10244_s19, %s10244_s19 }
  0x17   : > { %p10247_p13 = pnand %p10245_p12, %p10233_p7  ;;  %p10254_p3 = por %p10253_p4, %p10252_p1 }
  0x19   : > { %p10248_p0 = pneg %p10247_p13 }
  0x1b   : > { %p10255_p2 = pnand %p10254_p3, %p10248_p0 }
  0x1d   : > { %10258 = shalt.err (!%p10255_p2)
}
  0x1e   : > { %s10272_s20 = smov 128   ;;  %s10273_s21 = smov 8  }
  0x1f   : > { %10169 = dma.hbm_to_vmem [thread:$0]  (!%p10352_p5), %s12990_s4, 2048, %s245_s30, [#allocation3], %s10272_s20, %s10272_s20, %s10273_s21  }
  0x20   : > { %p13299_p6 = scmp.ne.s32.totalorder %s13296_s9, 0 }
  0x22   : > { %278 = sbr.rel (%p13299_p6) target bundleno = 4262 (0x10a6), region = 52 }
  0x29   : > { %p13300_p8 = scmp.ne.s32.totalorder %s13297_s10, 0 }
  0x2b   : > { %10264 = dma.done.wait (%p13300_p8), [#allocation3], 2048  }
  0x2c   : > { %10266 = vsyncadd (%p13300_p8), [#allocation3], 4294965248  ;;  %s6431_s24 = sshll.u32 %s6424_s28, 1  ;;  %v13001_v0 = vmov 1   ;;  %v10275_v1 = vmov 0   ;;  %v12999_v4 = vmov 2   ;;  %v388_v6 = vlaneseq }
  0x2d   : > { %10195 = vset.pattern.permute.xlu1 %v13001_v0  ;;  %10194 = vset.pattern.permute.xlu0 %v10275_v1  ;;  %p313_p2 = scmp.lt.s32.totalorder %s6431_s24, 3  ;;  %v12998_v5 = vmov 3   ;;  %v326_v9 = vld [vmem:[%s12987_s1] sm:$0xf]  ;;  %v10419_v42 = vld [vmem:[#allocation2] sm:$0xff]  ;;  %v10421_v43 = vld [vmem:[#allocation2 + $0x8] sm:$0xff] }
  0x2e   : > { %v389_v7 = vshrl.u32 %v388_v6, 7  ;;  %v6435_v19 = vld [vmem:[%s12988_s2] ss:$0 sm:$0xff]  ;;  %v475_v45 = vand.u32 4294901760, %v10419_v42  ;;  %v478_v46 = vand.u32 4294901760, %v10421_v43  ;;  %v10433_v47 = vld [vmem:[%s12993_s7 + $0x8] sm:$0xff] }
  0x2f   : > { %s13608_s24 = smov (!%p313_p2, %s6431_s24), 3  ;;  %v10426_v44 = vld [vmem:[%s12993_s7] sm:$0xff]  ;;  %v10436_v49 = vld [vmem:[#allocation2 + $0x10] sm:$0xff]  ;;  %v13013_v51 = vand.u32 4294901760, %v10433_v47  ;;  %v10446_v54 = vld [vmem:[%s12993_s7 + $0x10] sm:$0xff]  ;;  %s10279_s28 = smov 2  }
  0x30   : > { %s6432_s25 = sshll.u32 %s13608_s24, 3  ;;  %v390_v8 = vsub.s32 0, %v389_v7  ;;  %v412_v13 = vsub.s32 1, %v389_v7  ;;  %v428_v14 = vsub.s32 2, %v389_v7  ;;  %v444_v20 = vsub.s32 3, %v389_v7  ;;  %v10438_v50 = vld [vmem:[#allocation2 + $0x18] sm:$0xff] }
  0x31   : > { %s10389_s30 = scalar_lea.vmem %s12986_s0, %s6432_s25  ;;  %v13014_v48 = vand.u32 4294901760, %v10426_v44  ;;  %v13018_v52 = vand.u32 4294901760, %v10436_v49  ;;  %v13017_v53 = vand.u32 4294901760, %v10438_v50  ;;  %v10451_v55 = vld [vmem:[%s12993_s7 + $0x18] sm:$0xff]  ;;  %v10453_v56 = vld [vmem:[#allocation2 + $0x20] sm:$0xff]  ;;  %v10459_v57 = vpack.c.bf16 %v478_v46, %v475_v45  ;;  %v10463_v60 = vld [vmem:[#allocation2 + $0x28] sm:$0xff]  ;;  %s322_s15 = scalar_lea.vmem %s12994_s8, %s6432_s25 }
  0x32   : > { %v324_v2 = vld [vmem:[%s10389_s30] sm:$0xff]  ;;  %v325_v3 = vld [vmem:[%s10389_s30 + $0x8] sm:$0xff]  ;;  %v10400_v12 = vrot.slane %v326_v9, %v390_v8  ;;  %v10407_v21 = vrot.slane %v326_v9, %v412_v13  ;;  %v10409_v23 = vrot.slane %v326_v9, %v428_v14  ;;  %v10412_v28 = vrot.slane %v326_v9, %v444_v20  ;;  %v10525_v20 = vld [vmem:[#allocation2 + $0x30] sm:$0xff]  ;;  %s10280_s9 = smov 3   ;;  %s10281_s10 = smov 126  }
  0x33   : > { %403 = vperm.xlu1 %10195, %v324_v2   ;;  %380 = vperm.xlu0 %10194, %v324_v2   ;;  %v13012_v58 = vand.u32 4294901760, %v10446_v54  ;;  %v13009_v59 = vand.u32 4294901760, %v10451_v55  ;;  %v13016_v61 = vand.u32 4294901760, %v10453_v56  ;;  %v10470_v62 = vpack.c.bf16 %v13013_v51, %v13014_v48  ;;  %v10648_v48 = vld [vmem:[#allocation2 + $0x78] sm:$0xff]  ;;  %s10282_s11 = smov 1   ;;  %s10283_s12 = smov 125  }
  0x34   : > { %13301 = vst [vmem:[#allocation5_spill] sm:$0xff] %v10400_v12  ;;  %13302 = vst [vmem:[#allocation6_spill] sm:$0xff] %v10407_v21  ;;  %v10476_v63 = vpack.c.bf16 %v13017_v53, %v13018_v52  ;;  %8799 = vmatprep.subr.bf16.mxu0 %v10459_v57  ;;  %v10659_v53 = vld [vmem:[%s12993_s7 + $0x78] sm:$0xff]  ;;  %vm6278_vm0 = vcmask 7168   ;;  %vm6281_vm1 = vcmask 15368   ;;  %vm6332_vm2 = vcmask 23568  }
  0x35   : > { %13303 = vst [vmem:[#allocation7_spill] sm:$0xff] %v10409_v23  ;;  %13304 = vst [vmem:[#allocation8_spill] sm:$0xff] %v10412_v28  ;;  %8801 = vmatpush3.bf16.msra.mxu0 %v10459_v57  ;;  %8991 = vmatprep.subr.bf16.mxu1 %v10470_v62  ;;  %vm6353_vm3 = vcmask 31768  }
  0x36   : > { %13305 = vst [vmem:[#allocation9_spill] sm:$0xff] %v10470_v62  ;;  %8993 = vmatpush3.bf16.msra.mxu1 %v10470_v62  ;;  %8803 = vmatprep.subr.bf16.mxu0 %v10476_v63  ;;  %13320 = vst [vmem:[#allocation24_spill] sm:$0xff] %v10659_v53  ;;  %v13334_v62 = vand.u32 4294901760, %v10453_v56 }
  0x37   : > { %407 = vperm.xlu1 %10195, %v325_v3   ;;  %385 = vperm.xlu0 %10194, %v325_v3  }
  0x39   : > { %8805 = vmatpush3.bf16.msra.mxu0 %v10476_v63 }
  0x3b   : > { %10197 = vset.pattern.permute.xlu1 %v12999_v4  ;;  %10196 = vset.pattern.permute.xlu0 %v12999_v4 }
  0x3c   : > { %423 = vperm.xlu1 %10197, %v325_v3   ;;  %419 = vperm.xlu0 %10196, %v324_v2  }
  0x40   : > { %10198 = vset.pattern.permute.xlu1 %v12998_v5  ;;  %10199 = vset.pattern.permute.xlu0 %v12998_v5  ;;  %v10606_v5 = vld [vmem:[%s12993_s7 + $0x58] sm:$0xff] }
  0x41   : > { %435 = vperm.xlu1 %10198, %v324_v2   ;;  %439 = vperm.xlu0 %10199, %v325_v3   ;;  %v10484_v2 = vpack.c.bf16 %v13009_v59, %v13012_v58  ;;  %13314 = vst [vmem:[#allocation18_spill] sm:$0xff] %v10606_v5  ;;  %v13010_v0 = vand.u32 4294901760, %v10606_v5  ;;  %v10635_v59 = vld [vmem:[%s12993_s7 + $0x60] sm:$0xff] }
  0x42   : > { %13317 = vst [vmem:[#allocation21_spill] sm:$0xff] %v10635_v59  ;;  %v13029_v58 = vand.u32 4294901760, %v10635_v59 }
  0x43   : > { %13306 = vst [vmem:[#allocation10_spill] sm:$0xff] %v10484_v2  ;;  %8995 = vmatprep.subr.bf16.mxu1 %v10484_v2 }
  0x44   : > { %8997 = vmatpush3.bf16.msra.mxu1 %v10484_v2 }
  0x45   : > { %10201 = vset.pattern.permute.xlu0 %v10275_v1  ;;  %10200 = vset.pattern.permute.xlu1 %v10275_v1  ;;  %v13015_v1 = vand.u32 4294901760, %v10463_v60 }
  0x47   : > { %v10494_v3 = vpack.c.bf16 %v13015_v1, %v13016_v61  ;;  %v10654_v61 = vld [vmem:[%s12993_s7 + $0x70] sm:$0xff] }
  0x48   : > { %13319 = vst [vmem:[#allocation23_spill] sm:$0xff] %v10654_v61 }
  0x49   : > { %8807 = vmatprep.subr.bf16.mxu0 %v10494_v3 }
  0x4a   : > { %8809 = vmatpush3.bf16.msra.mxu0 %v10494_v3 }
  0xb2   : > { %v404_v10 = vpop.permute.xlu1 %403  ;;  %v381_v11 = vpop.permute.xlu0 %380 }
  0xb3   : > { %v392_v17 = vmul.f32 %v10400_v12, %v381_v11  ;;  %v414_v29 = vmul.f32 %v10407_v21, %v404_v10 }
  0xb5   : > { %v400_v24 = vadd.f32 %v6435_v19, %v392_v17 }
  0xb6   : > { %v408_v15 = vpop.permute.xlu1 %407  ;;  %v386_v16 = vpop.permute.xlu0 %385 }
  0xb7   : > { %v393_v18 = vmul.f32 %v10400_v12, %v386_v16  ;;  %v415_v25 = vmul.f32 %v10407_v21, %v408_v15  ;;  %v416_v33 = vadd.f32 %v414_v29, %v400_v24  ;;  %v10510_v15 = vld [vmem:[%s12993_s7 + $0x20] sm:$0xff]  ;;  %v10515_v16 = vld [vmem:[%s12993_s7 + $0x28] sm:$0xff]  ;;  %v493_v24 = vand.u32 4294901760, %v10525_v20 }
  0xb8   : > { %v13008_v17 = vand.u32 4294901760, %v10510_v15 }
  0xb9   : > { %v401_v22 = vadd.f32 %v6435_v19, %v393_v18  ;;  %v13007_v18 = vand.u32 4294901760, %v10515_v16 }
  0xbb   : > { %v424_v26 = vpop.permute.xlu1 %423  ;;  %v420_v27 = vpop.permute.xlu0 %419  ;;  %v417_v30 = vadd.f32 %v415_v25, %v401_v22  ;;  %v10523_v19 = vpack.c.bf16 %v13007_v18, %v13008_v17  ;;  %v10527_v22 = vld [vmem:[#allocation2 + $0x38] sm:$0xff] }
  0xbc   : > { %v431_v31 = vmul.f32 %v10409_v23, %v424_v26  ;;  %v430_v32 = vmul.f32 %v10409_v23, %v420_v27  ;;  %v13023_v25 = vand.u32 4294901760, %v10527_v22  ;;  %v10534_v26 = vld [vmem:[%s12993_s7 + $0x30] sm:$0xff]  ;;  %v10539_v27 = vld [vmem:[%s12993_s7 + $0x38] sm:$0xff] }
  0xbd   : > { %13307 = vst [vmem:[#allocation11_spill] sm:$0xff] %v10523_v19  ;;  %8999 = vmatprep.subr.bf16.mxu1 %v10523_v19  ;;  %v13006_v29 = vand.u32 4294901760, %v10534_v26 }
  0xbe   : > { %v433_v36 = vadd.f32 %v431_v31, %v417_v30  ;;  %v432_v37 = vadd.f32 %v430_v32, %v416_v33  ;;  %v13005_v30 = vand.u32 4294901760, %v10539_v27  ;;  %9001 = vmatpush3.bf16.msra.mxu1 %v10523_v19  ;;  %v10549_v31 = vpack.c.bf16 %v13023_v25, %v493_v24  ;;  %v10557_v33 = vld [vmem:[#allocation2 + $0x40] sm:$0xff] }
  0xbf   : > { %v10680_v25 = vsub.f32 %v10419_v42, %v475_v45 }
  0xc0   : > { %v436_v34 = vpop.permute.xlu1 %435  ;;  %v440_v35 = vpop.permute.xlu0 %439  ;;  %13308 = vst [vmem:[#allocation12_spill] sm:$0xff] %v10549_v31  ;;  %v10555_v32 = vpack.c.bf16 %v13005_v30, %v13006_v29  ;;  %8811 = vmatprep.subr.bf16.mxu0 %v10549_v31  ;;  %v10625_v30 = vld [vmem:[#allocation2 + $0x60] sm:$0xff]  ;;  %v10627_v29 = vld [vmem:[#allocation2 + $0x68] sm:$0xff] }
  0xc1   : > { %v446_v38 = vmul.f32 %v10412_v28, %v436_v34  ;;  %v447_v39 = vmul.f32 %v10412_v28, %v440_v35  ;;  %v10559_v34 = vld [vmem:[#allocation2 + $0x48] sm:$0xff]  ;;  %v13022_v35 = vand.u32 4294901760, %v10557_v33  ;;  %8813 = vmatpush3.bf16.msra.mxu0 %v10549_v31  ;;  %v13025_v18 = vand.u32 4294901760, %v10625_v30 }
  0xc2   : > { %13309 = vst [vmem:[#allocation13_spill] sm:$0xff] %v10555_v32  ;;  %9003 = vmatprep.subr.bf16.mxu1 %v10555_v32  ;;  %v13024_v17 = vand.u32 4294901760, %v10627_v29  ;;  %v13032_v42 = vand.u32 4294901760, %v10680_v25  ;;  %v10717_v28 = vsub.f32 %v10525_v20, %v493_v24  ;;  %v13327_v20 = vand.u32 4294901760, %v10559_v34 }
  0xc3   : > { %v448_v40 = vadd.f32 %v446_v38, %v432_v37  ;;  %v449_v41 = vadd.f32 %v447_v39, %v433_v36  ;;  %v13021_v36 = vand.u32 4294901760, %v10559_v34  ;;  %v10567_v37 = vld [vmem:[%s12993_s7 + $0x40] sm:$0xff]  ;;  %v10572_v38 = vld [vmem:[%s12993_s7 + $0x48] sm:$0xff]  ;;  %9005 = vmatpush3.bf16.msra.mxu1 %v10555_v32 }
  0xc4   : > { %13310 = vst [vmem:[#allocation14_spill] sm:$0xff] %v10572_v38  ;;  %v13004_v39 = vand.u32 4294901760, %v10567_v37  ;;  %v10666_v52 = vpack.c.bf16 %v13024_v17, %v13025_v18  ;;  %v10685_v17 = vsub.f32 %v10421_v43, %v478_v46  ;;  %v579_v43 = vsub.f32 %v10680_v25, %v13032_v42 }
  0xc5   : > { %450 = vmax.xlane.f32.xlu1 %v448_v40  ;;  %452 = vmax.xlane.f32.xlu0 %v449_v41  ;;  %v13325_v42 = vand.u32 4294901760, %v10527_v22  ;;  %v10737_v24 = vsub.f32 %v10559_v34, %v13327_v20 }
  0xc6   : > { %13321 = vst [vmem:[#allocation25_spill] sm:$0xff] %v10666_v52  ;;  %v13035_v45 = vand.u32 4294901760, %v10685_v17 }
  0xc7   : > { %v10722_v23 = vsub.f32 %v10527_v22, %v13325_v42  ;;  %v13057_v12 = vand.u32 4294901760, %v10737_v24 }
  0xc8   : > { %v586_v46 = vsub.f32 %v10685_v17, %v13035_v45  ;;  %v13040_v45 = vand.u32 4294901760, %v10717_v28 }
 0x152   : > { %v451_v6 = vpop.xlane.xlu1 %450  ;;  %v453_v7 = vpop.xlane.xlu0 %452 }
 0x153   : > { %v454_v8 = vsub.f32 %v448_v40, %v451_v6  ;;  %v455_v9 = vsub.f32 %v449_v41, %v453_v7  ;;  %v13003_v40 = vand.u32 4294901760, %v10572_v38  ;;  %v10583_v41 = vpack.c.bf16 %v13021_v36, %v13022_v35  ;;  %v10591_v7 = vld [vmem:[#allocation2 + $0x50] sm:$0xff] }
 0x154   : > { %v13027_v36 = vand.u32 4294901760, %v10659_v53  ;;  %v13328_v34 = vand.u32 4294901760, %v10591_v7 }
 0x155   : > { %v456_v10 = vmul.f32 1.442695, %v454_v8  ;;  %v458_v11 = vmul.f32 1.442695, %v455_v9  ;;  %13311 = vst [vmem:[#allocation15_spill] sm:$0xff] %v10583_v41  ;;  %v10589_v6 = vpack.c.bf16 %v13003_v40, %v13004_v39  ;;  %v10593_v8 = vld [vmem:[#allocation2 + $0x58] sm:$0xff]  ;;  %8815 = vmatprep.subr.bf16.mxu0 %v10583_v41 }
 0x156   : > { %v13020_v9 = vand.u32 4294901760, %v10591_v7  ;;  %8817 = vmatpush3.bf16.msra.mxu0 %v10583_v41  ;;  %v10753_v20 = vsub.f32 %v10591_v7, %v13328_v34 }
 0x157   : > { %10209 = vpow2.f32 %v456_v10  ;;  %13312 = vst [vmem:[#allocation16_spill] sm:$0xff] %v10589_v6  ;;  %v13019_v10 = vand.u32 4294901760, %v10593_v8  ;;  %9007 = vmatprep.subr.bf16.mxu1 %v10589_v6 }
 0x158   : > { %10211 = vpow2.f32 %v458_v11  ;;  %v10601_v11 = vld [vmem:[%s12993_s7 + $0x50] sm:$0xff]  ;;  %9009 = vmatpush3.bf16.msra.mxu1 %v10589_v6 }
 0x159   : > { %13313 = vst [vmem:[#allocation17_spill] sm:$0xff] %v10601_v11  ;;  %v13011_v4 = vand.u32 4294901760, %v10601_v11  ;;  %v10617_v40 = vpack.c.bf16 %v13019_v10, %v13020_v9  ;;  %v520_v10 = vand.u32 4294901760, %v10648_v48  ;;  %v13028_v9 = vand.u32 4294901760, %v10654_v61 }
 0x15b   : > { %13315 = vst [vmem:[#allocation19_spill] sm:$0xff] %v10617_v40  ;;  %v10623_v39 = vpack.c.bf16 %v13010_v0, %v13011_v4  ;;  %8819 = vmatprep.subr.bf16.mxu0 %v10617_v40  ;;  %v10640_v0 = vld [vmem:[%s12993_s7 + $0x68] sm:$0xff]  ;;  %v10642_v4 = vld [vmem:[#allocation2 + $0x70] sm:$0xff] }
 0x15c   : > { %13318 = vst [vmem:[#allocation22_spill] sm:$0xff] %v10640_v0  ;;  %8821 = vmatpush3.bf16.msra.mxu0 %v10617_v40  ;;  %v13026_v51 = vand.u32 4294901760, %v10640_v0  ;;  %v517_v1 = vand.u32 4294901760, %v10642_v4 }
 0x15d   : > { %13316 = vst [vmem:[#allocation20_spill] sm:$0xff] %v10623_v39  ;;  %9011 = vmatprep.subr.bf16.mxu1 %v10623_v39  ;;  %8823 = vmatprep.subr.bf16.mxu0 %v10666_v52 }
 0x15e   : > { %9013 = vmatpush3.bf16.msra.mxu1 %v10623_v39  ;;  %v10675_v35 = vpack.c.bf16 %v13026_v51, %v13029_v58  ;;  %v10688_v18 = vpack.c.bf16 %v520_v10, %v517_v1  ;;  %v10694_v51 = vpack.c.bf16 %v13027_v36, %v13028_v9  ;;  %v580_v36 = vand.u32 4294901760, %v579_v43 }
 0x15f   : > { %v587_v9 = vand.u32 4294901760, %v586_v46  ;;  %v13041_v43 = vand.u32 4294901760, %v10722_v23 }
 0x160   : > { %13322 = vst [vmem:[#allocation26_spill] sm:$0xff] %v10675_v35  ;;  %13323 = vst [vmem:[#allocation27_spill] sm:$0xff] %v10688_v18  ;;  %8825 = vmatpush3.bf16.msra.mxu0 %v10666_v52  ;;  %9015 = vmatprep.subr.bf16.mxu1 %v10675_v35 }
 0x161   : > { %v10501_v13 = vpop.eup %10209  ;;  %13324 = vst [vmem:[#allocation28_spill] sm:$0xff] %v10694_v51  ;;  %8827 = vmatprep.subr.bf16.mxu0 %v10688_v18  ;;  %v10711_v58 = vpack.c.bf16 %v587_v9, %v580_v36  ;;  %v621_v36 = vsub.f32 %v10717_v28, %v13040_v45  ;;  %v13326_v9 = vand.u32 4294901760, %v10557_v33  ;;  %v628_v22 = vsub.f32 %v10722_v23, %v13041_v43 }
 0x162   : > { %v10503_v14 = vpop.eup %10211  ;;  %460 = vadd.xlane.f32.xlu1 %v10501_v13  ;;  %9017 = vmatpush3.bf16.msra.mxu1 %v10675_v35 }
 0x163   : > { %462 = vadd.xlane.f32.xlu0 %v10503_v14  ;;  %9019 = vmatprep.subr.bf16.mxu1 %v10694_v51  ;;  %v10732_v46 = vsub.f32 %v10557_v33, %v13326_v9  ;;  %v622_v42 = vand.u32 4294901760, %v621_v36  ;;  %v629_v45 = vand.u32 4294901760, %v628_v22  ;;  %v642_v9 = vsub.f32 %v10737_v24, %v13057_v12 }
 0x164   : > { %8829 = vmatpush3.bf16.msra.mxu0 %v10688_v18  ;;  %v13329_v36 = vand.u32 4294901760, %v10593_v8 }
 0x165   : > { %8831 = vmatprep.subr.bf16.mxu0 %v10711_v58  ;;  %v13046_v21 = vand.u32 4294901760, %v10732_v46  ;;  %v643_v35 = vand.u32 4294901760, %v642_v9 }
 0x166   : > { %9021 = vmatpush3.bf16.msra.mxu1 %v10694_v51  ;;  %v10758_v43 = vsub.f32 %v10593_v8, %v13329_v36  ;;  %v10760_v51 = vpack.c.bf16 %v629_v45, %v622_v42  ;;  %v13330_v8 = vand.u32 4294901760, %v10625_v30  ;;  %v13331_v42 = vand.u32 4294901760, %v10627_v29 }
 0x167   : > { %v635_v33 = vsub.f32 %v10732_v46, %v13046_v21  ;;  %v13051_v21 = vand.u32 4294901760, %v10753_v20 }
 0x168   : > { %v13052_v39 = vand.u32 4294901760, %v10758_v43  ;;  %v10775_v45 = vsub.f32 %v10625_v30, %v13330_v8  ;;  %v10790_v30 = vsub.f32 %v10642_v4, %v517_v1  ;;  %v10793_v8 = vsub.f32 %v10648_v48, %v520_v10 }
 0x169   : > { %v636_v22 = vand.u32 4294901760, %v635_v33  ;;  %v649_v7 = vsub.f32 %v10753_v20, %v13051_v21  ;;  %v10780_v33 = vsub.f32 %v10627_v29, %v13331_v42 }
 0x16a   : > { %v656_v34 = vsub.f32 %v10758_v43, %v13052_v39  ;;  %v13053_v36 = vand.u32 4294901760, %v10775_v45  ;;  %v13055_v42 = vand.u32 4294901760, %v10793_v8 }
 0x16b   : > { %v10764_v6 = vpack.c.bf16 %v643_v35, %v636_v22  ;;  %v650_v35 = vand.u32 4294901760, %v649_v7  ;;  %v13056_v22 = vand.u32 4294901760, %v10780_v33 }
 0x16c   : > { %v657_v9 = vand.u32 4294901760, %v656_v34  ;;  %v663_v39 = vsub.f32 %v10775_v45, %v13053_v36  ;;  %v13054_v34 = vand.u32 4294901760, %v10790_v30  ;;  %v684_v4 = vsub.f32 %v10793_v8, %v13055_v42 }
 0x16d   : > { %v670_v29 = vsub.f32 %v10780_v33, %v13056_v22  ;;  %v13333_v22 = vand.u32 4294901760, %v10438_v50 }
 0x16e   : > { %v10784_v21 = vpack.c.bf16 %v657_v9, %v650_v35  ;;  %v664_v7 = vand.u32 4294901760, %v663_v39  ;;  %v677_v9 = vsub.f32 %v10790_v30, %v13054_v34  ;;  %v685_v10 = vand.u32 4294901760, %v684_v4 }
 0x16f   : > { %v671_v35 = vand.u32 4294901760, %v670_v29  ;;  %v10812_v39 = vpack.c.bf16 %v10685_v17, %v10680_v25  ;;  %v10816_v29 = vpack.c.bf16 %v10722_v23, %v10717_v28  ;;  %v10820_v34 = vpack.c.bf16 %v10737_v24, %v10732_v46 }
 0x170   : > { %v678_v1 = vand.u32 4294901760, %v677_v9  ;;  %v10832_v9 = vpack.c.bf16 %v10793_v8, %v10790_v30  ;;  %v10842_v12 = vsub.f32 %v10438_v50, %v13333_v22 }
 0x171   : > { %v10806_v48 = vpack.c.bf16 %v671_v35, %v664_v7  ;;  %v10824_v7 = vpack.c.bf16 %v10758_v43, %v10753_v20  ;;  %v10828_v35 = vpack.c.bf16 %v10780_v33, %v10775_v45 }
 0x172   : > { %v10808_v36 = vpack.c.bf16 %v685_v10, %v678_v1  ;;  %v13332_v10 = vand.u32 4294901760, %v10436_v49  ;;  %v13071_v2 = vand.u32 4294901760, %v10842_v12 }
 0x174   : > { %v10837_v42 = vsub.f32 %v10436_v49, %v13332_v10 }
 0x176   : > { %v13068_v32 = vand.u32 4294901760, %v10837_v42 }
 0x1ef   : > { %v461_v4 = vpop.xlane.xlu1 %460 }
 0x1f0   : > { %10213 = vrcp.f32 %v461_v4  ;;  %v463_v1 = vpop.xlane.xlu0 %462  ;;  %v10849_v4 = vsub.f32 %v10453_v56, %v13334_v62  ;;  %v593_v56 = vsub.f32 %v10837_v42, %v13068_v32 }
 0x1f1   : > { %10215 = vrcp.f32 %v463_v1  ;;  %v13335_v1 = vand.u32 4294901760, %v10463_v60 }
 0x1f2   : > { %v594_v32 = vand.u32 4294901760, %v593_v56 }
 0x1f3   : > { %v10854_v49 = vsub.f32 %v10463_v60, %v13335_v1  ;;  %v600_v60 = vsub.f32 %v10842_v12, %v13071_v2 }
 0x1f5   : > { %v601_v2 = vand.u32 4294901760, %v600_v60  ;;  %v13338_v0 = vand.u32 4294901760, %v10854_v49 }
 0x1f7   : > { %v10900_v11 = vpack.c.bf16 %v601_v2, %v594_v32  ;;  %v13340_v2 = vand.u32 4294901760, %v10685_v17  ;;  %v13345_v17 = vand.u32 4294901760, %v10854_v49 }
 0x1fa   : > { %v10214_v19 = vpop.eup %10213 }
 0x1fb   : > { %v10216_v10 = vpop.eup %10215  ;;  %v10857_v53 = vmul.f32 %v10214_v19, %v10501_v13  ;;  %v606_v13 = vand.u32 4294901760, %v10849_v4 }
 0x1fc   : > { %v10860_v50 = vmul.f32 %v10216_v10, %v10503_v14 }
 0x1fd   : > { %13336 = vst [vmem:[#allocation29_spill] sm:$0xff] %v10857_v53  ;;  %v10863_v22 = vand.u32 4294901760, %v10857_v53  ;;  %v607_v19 = vsub.f32 %v10849_v4, %v606_v13 }
 0x1fe   : > { %13337 = vst [vmem:[#allocation30_spill] sm:$0xff] %v10860_v50  ;;  %v10869_v62 = vand.u32 4294901760, %v10860_v50 }
 0x1ff   : > { %v10878_v14 = vsub.f32 %v10857_v53, %v10863_v22  ;;  %v614_v53 = vsub.f32 %v10854_v49, %v13338_v0  ;;  %v608_v38 = vand.u32 4294901760, %v607_v19 }
 0x200   : > { %v10882_v1 = vsub.f32 %v10860_v50, %v10869_v62 }
 0x201   : > { %v10885_v10 = vand.u32 4294901760, %v10878_v14  ;;  %v615_v60 = vand.u32 4294901760, %v614_v53  ;;  %v10931_v53 = vpack.c.bf16 %v10854_v49, %v10849_v4  ;;  %v13350_v4 = vand.u32 4294901760, %v10732_v46 }
 0x202   : > { %v10888_v61 = vand.u32 4294901760, %v10882_v1  ;;  %v13351_v49 = vand.u32 4294901760, %v10737_v24  ;;  %v13356_v46 = vand.u32 4294901760, %v10775_v45  ;;  %v13357_v24 = vand.u32 4294901760, %v10780_v33  ;;  %v6436_v45 = vld [vmem:[%s12991_s5] ss:$0 sm:$0xff] }
 0x203   : > { %v558_v50 = vsub.f32 %v10878_v14, %v10885_v10  ;;  %v10905_v0 = vpack.c.bf16 %v615_v60, %v608_v38  ;;  %v13342_v38 = vand.u32 4294901760, %v10837_v42 }
 0x204   : > { %v568_v59 = vsub.f32 %v10882_v1, %v10888_v61 }
 0x205   : > { %v559_v5 = vand.u32 4294901760, %v558_v50  ;;  %v13343_v50 = vand.u32 4294901760, %v10842_v12 }
 0x206   : > { %v569_v56 = vand.u32 4294901760, %v568_v59  ;;  %v13339_v59 = vand.u32 4294901760, %v10680_v25  ;;  %v10985_v25 = vpack.c.bf16 %v13345_v17, %v606_v13  ;;  %v11001_v13 = vpack.c.bf16 %v13351_v49, %v13350_v4 }
 0x207   : > { %7300 = vmatprep.mubr.f32.mxu0 %v559_v5  ;;  %7510 = vmatprep.mubr.f32.mxu1 %v559_v5  ;;  %v10923_v5 = vpack.c.bf16 %v10842_v12, %v10837_v42  ;;  %v10975_v19 = vpack.c.bf16 %v13343_v50, %v13342_v38  ;;  %v13347_v12 = vand.u32 4294901760, %v10717_v28  ;;  %v13348_v42 = vand.u32 4294901760, %v10722_v23 }
 0x208   : > { %7301 = vmatmul.mubr.f32.vlgmr.msra.gmra.mrb[0].mxu0 %v569_v56  ;;  %7511 = vmatmul.mubr.f32.vlgmr.msra.gmra.mrb[0].mxu1 %v569_v56  ;;  %v10967_v32 = vpack.c.bf16 %v13340_v2, %v13339_v59  ;;  %13346 = vst [vmem:[#allocation33_spill] sm:$0xff] %v10985_v25  ;;  %13352 = vst [vmem:[#allocation35_spill] sm:$0xff] %v11001_v13  ;;  %v13353_v28 = vand.u32 4294901760, %v10753_v20  ;;  %v13354_v23 = vand.u32 4294901760, %v10758_v43  ;;  %v13359_v20 = vand.u32 4294901760, %v10790_v30 }
 0x209   : > { %8833 = vmatpush3.bf16.msra.mxu0 %v10711_v58  ;;  %7335 = vmatprep.mubr.f32.mxu0 %v10863_v22  ;;  %13344 = vst [vmem:[#allocation32_spill] sm:$0xff] %v10975_v19  ;;  %v10993_v56 = vpack.c.bf16 %v13348_v42, %v13347_v12  ;;  %v11017_v59 = vpack.c.bf16 %v13357_v24, %v13356_v46  ;;  %v13360_v43 = vand.u32 4294901760, %v10793_v8  ;;  %v13362_v50 = vand.u32 4294901760, %v10426_v44 }
 0x20a   : > { %8835 = vmatprep.subr.bf16.mxu0 %v10900_v11  ;;  %13341 = vst [vmem:[#allocation31_spill] sm:$0xff] %v10967_v32  ;;  %v11009_v60 = vpack.c.bf16 %v13354_v23, %v13353_v28  ;;  %v13363_v12 = vand.u32 4294901760, %v10433_v47 }
 0x20b   : > { %13349 = vst [vmem:[#allocation34_spill] sm:$0xff] %v10993_v56  ;;  %13358 = vst [vmem:[#allocation37_spill] sm:$0xff] %v11017_v59  ;;  %v11025_v2 = vpack.c.bf16 %v13360_v43, %v13359_v20  ;;  %v11072_v17 = vsub.f32 %v10426_v44, %v13362_v50 }
 0x20c   : > { %13355 = vst [vmem:[#allocation36_spill] sm:$0xff] %v11009_v60  ;;  %v11077_v42 = vsub.f32 %v10433_v47, %v13363_v12 }
 0x20d   : > { %8837 = vmatpush3.bf16.msra.mxu0 %v10900_v11  ;;  %13361 = vst [vmem:[#allocation38_spill] sm:$0xff] %v11025_v2  ;;  %v13093_v4 = vand.u32 4294901760, %v11072_v17 }
 0x20e   : > { %8839 = vmatprep.subr.bf16.mxu0 %v10905_v0  ;;  %v13090_v49 = vand.u32 4294901760, %v11077_v42 }
 0x20f   : > { %v1301_v28 = vsub.f32 %v11072_v17, %v13093_v4 }
 0x210   : > { %v1308_v23 = vsub.f32 %v11077_v42, %v13090_v49 }
 0x211   : > { %8841 = vmatpush3.bf16.msra.mxu0 %v10905_v0  ;;  %v1302_v46 = vand.u32 4294901760, %v1301_v28  ;;  %v13364_v28 = vand.u32 4294901760, %v10446_v54 }
 0x212   : > { %8843 = vmatprep.subr.bf16.mxu0 %v10760_v51  ;;  %v1309_v44 = vand.u32 4294901760, %v1308_v23 }
 0x213   : > { %v11100_v23 = vsub.f32 %v10446_v54, %v13364_v28  ;;  %v13366_v54 = vand.u32 4294901760, %v10510_v15 }
 0x214   : > { %v11087_v24 = vpack.c.bf16 %v1309_v44, %v1302_v46 }
 0x215   : > { %8845 = vmatpush3.bf16.msra.mxu0 %v10760_v51  ;;  %v13086_v46 = vand.u32 4294901760, %v11100_v23 }
 0x216   : > { %8847 = vmatprep.subr.bf16.mxu0 %v10764_v6  ;;  %9023 = vmatprep.subr.bf16.mxu1 %v11087_v24 }
 0x217   : > { %9025 = vmatpush3.bf16.msra.mxu1 %v11087_v24 }
 0x219   : > { %8849 = vmatpush3.bf16.msra.mxu0 %v10764_v6 }
 0x21a   : > { %8851 = vmatprep.subr.bf16.mxu0 %v10784_v21 }
 0x21d   : > { %8853 = vmatpush3.bf16.msra.mxu0 %v10784_v21 }
 0x21e   : > { %8855 = vmatprep.subr.bf16.mxu0 %v10806_v48 }
 0x221   : > { %8857 = vmatpush3.bf16.msra.mxu0 %v10806_v48 }
 0x222   : > { %8859 = vmatprep.subr.bf16.mxu0 %v10808_v36 }
 0x225   : > { %8861 = vmatpush3.bf16.msra.mxu0 %v10808_v36 }
 0x226   : > { %8863 = vmatprep.subr.bf16.mxu0 %v10812_v39 }
 0x228   : > { %7336 = vmatmul.mubr.f32.vlgmr.msra.gmra.mrb[0].mxu0 %v10869_v62 }
 0x229   : > { %8865 = vmatpush3.bf16.msra.mxu0 %v10812_v39  ;;  %7370 = vmatprep.mubr.f32.mxu0 %v10878_v14 }
 0x22a   : > { %8867 = vmatprep.subr.bf16.mxu0 %v10923_v5 }
 0x22d   : > { %8869 = vmatpush3.bf16.msra.mxu0 %v10923_v5 }
 0x22e   : > { %8871 = vmatprep.subr.bf16.mxu0 %v10931_v53 }
 0x231   : > { %8873 = vmatpush3.bf16.msra.mxu0 %v10931_v53 }
 0x232   : > { %8875 = vmatprep.subr.bf16.mxu0 %v10816_v29 }
 0x235   : > { %8877 = vmatpush3.bf16.msra.mxu0 %v10816_v29 }
 0x236   : > { %8879 = vmatprep.subr.bf16.mxu0 %v10820_v34 }
 0x239   : > { %8881 = vmatpush3.bf16.msra.mxu0 %v10820_v34 }
 0x23a   : > { %8883 = vmatprep.subr.bf16.mxu0 %v10824_v7 }
 0x23d   : > { %8885 = vmatpush3.bf16.msra.mxu0 %v10824_v7 }
 0x23e   : > { %8887 = vmatprep.subr.bf16.mxu0 %v10828_v35 }
 0x241   : > { %8889 = vmatpush3.bf16.msra.mxu0 %v10828_v35 }
 0x242   : > { %8891 = vmatprep.subr.bf16.mxu0 %v10832_v9 }
 0x245   : > { %8893 = vmatpush3.bf16.msra.mxu0 %v10832_v9 }
 0x246   : > { %8895 = vmatprep.subr.bf16.mxu0 %v10459_v57 }
 0x248   : > { %7371 = vmatmul.mubr.f32.vlgmr.msra.gmra.mrb[0].mxu0 %v10882_v1 }
 0x249   : > { %8897 = vmatpush3.bf16.msra.mxu0 %v10459_v57  ;;  %7405 = vmatprep.mubr.f32.mxu0 %v10885_v10 }
 0x24a   : > { %8899 = vmatprep.subr.bf16.mxu0 %v10476_v63 }
 0x24d   : > { %8901 = vmatpush3.bf16.msra.mxu0 %v10476_v63 }
 0x24e   : > { %8903 = vmatprep.subr.bf16.mxu0 %v10494_v3 }
 0x251   : > { %8905 = vmatpush3.bf16.msra.mxu0 %v10494_v3 }
 0x252   : > { %8907 = vmatprep.subr.bf16.mxu0 %v10549_v31 }
 0x255   : > { %8909 = vmatpush3.bf16.msra.mxu0 %v10549_v31 }
 0x256   : > { %8911 = vmatprep.subr.bf16.mxu0 %v10583_v41 }
 0x259   : > { %8913 = vmatpush3.bf16.msra.mxu0 %v10583_v41 }
 0x25a   : > { %8915 = vmatprep.subr.bf16.mxu0 %v10617_v40 }
 0x25d   : > { %8917 = vmatpush3.bf16.msra.mxu0 %v10617_v40 }
 0x25e   : > { %8919 = vmatprep.subr.bf16.mxu0 %v10666_v52 }
 0x261   : > { %8921 = vmatpush3.bf16.msra.mxu0 %v10666_v52 }
 0x262   : > { %8923 = vmatprep.subr.bf16.mxu0 %v10688_v18 }
 0x265   : > { %8925 = vmatpush3.bf16.msra.mxu0 %v10688_v18 }
 0x266   : > { %8927 = vmatprep.subr.bf16.mxu0 %v10967_v32 }
 0x268   : > { %7406 = vmatmul.mubr.f32.vlgmr.msra.gmra.mrb[0].mxu0 %v10888_v61 }
 0x269   : > { %8929 = vmatpush3.bf16.msra.mxu0 %v10967_v32  ;;  %7440 = vmatprep.mubr.f32.mxu0 %v10863_v22 }
 0x26a   : > { %8931 = vmatprep.subr.bf16.mxu0 %v10975_v19 }
 0x26d   : > { %8933 = vmatpush3.bf16.msra.mxu0 %v10975_v19 }
 0x26e   : > { %8935 = vmatprep.subr.bf16.mxu0 %v10985_v25 }
 0x271   : > { %8937 = vmatpush3.bf16.msra.mxu0 %v10985_v25 }
 0x272   : > { %8939 = vmatprep.subr.bf16.mxu0 %v10993_v56 }
 0x275   : > { %8941 = vmatpush3.bf16.msra.mxu0 %v10993_v56 }
 0x276   : > { %8943 = vmatprep.subr.bf16.mxu0 %v11001_v13 }
 0x279   : > { %8945 = vmatpush3.bf16.msra.mxu0 %v11001_v13 }
 0x27a   : > { %8947 = vmatprep.subr.bf16.mxu0 %v11009_v60 }
 0x27d   : > { %8949 = vmatpush3.bf16.msra.mxu0 %v11009_v60 }
 0x27e   : > { %8951 = vmatprep.subr.bf16.mxu0 %v11017_v59 }
 0x281   : > { %8953 = vmatpush3.bf16.msra.mxu0 %v11017_v59 }
 0x282   : > { %8955 = vmatprep.subr.bf16.mxu0 %v11025_v2 }
 0x285   : > { %8957 = vmatpush3.bf16.msra.mxu0 %v11025_v2 }
 0x286   : > { %8959 = vmatprep.subr.bf16.mxu0 %v10459_v57 }
 0x288   : > { %7441 = vmatmul.mubr.f32.vlgmr.msra.gmra.mrb[0].mxu0 %v10869_v62 }
 0x289   : > { %8961 = vmatpush3.bf16.msra.mxu0 %v10459_v57  ;;  %7475 = vmatprep.mubr.f32.mxu0 %v10863_v22 }
 0x28a   : > { %8963 = vmatprep.subr.bf16.mxu0 %v10476_v63 }
 0x28d   : > { %8965 = vmatpush3.bf16.msra.mxu0 %v10476_v63 }
 0x28e   : > { %8967 = vmatprep.subr.bf16.mxu0 %v10494_v3 }
 0x291   : > { %8969 = vmatpush3.bf16.msra.mxu0 %v10494_v3 }
 0x292   : > { %8971 = vmatprep.subr.bf16.mxu0 %v10549_v31 }
 0x295   : > { %8973 = vmatpush3.bf16.msra.mxu0 %v10549_v31 }
 0x296   : > { %8975 = vmatprep.subr.bf16.mxu0 %v10583_v41 }
 0x299   : > { %8977 = vmatpush3.bf16.msra.mxu0 %v10583_v41 }
 0x29a   : > { %8979 = vmatprep.subr.bf16.mxu0 %v10617_v40 }
 0x29d   : > { %8981 = vmatpush3.bf16.msra.mxu0 %v10617_v40 }
 0x29e   : > { %8983 = vmatprep.subr.bf16.mxu0 %v10666_v52 }
 0x2a1   : > { %8985 = vmatpush3.bf16.msra.mxu0 %v10666_v52 }
 0x2a2   : > { %8987 = vmatprep.subr.bf16.mxu0 %v10688_v18 }
 0x2a5   : > { %8989 = vmatpush3.bf16.msra.mxu0 %v10688_v18 }
 0x2a6   : > { %9183 = vmatprep.subr.bf16.mxu0 %v10459_v57 }
 0x2a8   : > { %7476 = vmatmul.mubr.f32.vlgmr.msra.gmra.mrb[0].mxu0 %v10869_v62 }
 0x2a9   : > { %9185 = vmatpush3.bf16.msra.mxu0 %v10459_v57 }
 0x2aa   : > { %9187 = vmatprep.subr.bf16.mxu0 %v10476_v63 }
 0x2ad   : > { %9189 = vmatpush3.bf16.msra.mxu0 %v10476_v63 }
 0x2ae   : > { %9191 = vmatprep.subr.bf16.mxu0 %v10494_v3 }
 0x2b1   : > { %9193 = vmatpush3.bf16.msra.mxu0 %v10494_v3 }
 0x2b2   : > { %9195 = vmatprep.subr.bf16.mxu0 %v10549_v31 }
 0x2b5   : > { %9197 = vmatpush3.bf16.msra.mxu0 %v10549_v31 }
 0x2b6   : > { %9199 = vmatprep.subr.bf16.mxu0 %v10583_v41 }
 0x2b9   : > { %9201 = vmatpush3.bf16.msra.mxu0 %v10583_v41 }
 0x2ba   : > { %9203 = vmatprep.subr.bf16.mxu0 %v10617_v40 }
 0x2bd   : > { %9205 = vmatpush3.bf16.msra.mxu0 %v10617_v40 }
 0x2be   : > { %9207 = vmatprep.subr.bf16.mxu0 %v10666_v52 }
 0x2c1   : > { %9209 = vmatpush3.bf16.msra.mxu0 %v10666_v52 }
 0x2c2   : > { %9211 = vmatprep.subr.bf16.mxu0 %v10688_v18 }
 0x2c5   : > { %9213 = vmatpush3.bf16.msra.mxu0 %v10688_v18 }
 0x2c6   : > { %9215 = vmatprep.subr.bf16.mxu0 %v10711_v58 }
 0x37b   : > { %v7477_v33 = vpop.f32.mrb[0].mxu0 }
 0x37c   : > { %v9950_v30 = vadd.f32 %v7477_v33, %v6436_v45  ;;  %v1148_v8 = vpop.f32.mrb[1].mxu0 }
 0x37d   : > { %v9951_v38 = vadd.f32 %v6436_v45, %v1148_v8 }
 0x37e   : > { %1160 = vmax.xlane.f32.xlu0 %v9950_v30 }
 0x37f   : > { %1158 = vmax.xlane.f32.xlu1 %v9951_v38 }
 0x40b   : > { %v1161_v47 = vpop.xlane.xlu0 %1160 }
 0x40c   : > { %v1163_v20 = vsub.f32 %v9950_v30, %v1161_v47  ;;  %v1159_v43 = vpop.xlane.xlu1 %1158  ;;  %v13365_v30 = vand.u32 4294901760, %v10451_v55  ;;  %v1315_v47 = vsub.f32 %v11100_v23, %v13086_v46 }
 0x40d   : > { %v1162_v45 = vsub.f32 %v9951_v38, %v1159_v43  ;;  %v11118_v43 = vsub.f32 %v10510_v15, %v13366_v54  ;;  %v13369_v54 = vand.u32 4294901760, %v10534_v26 }
 0x40e   : > { %v1166_v33 = vmul.f32 1.442695, %v1163_v20  ;;  %v11105_v38 = vsub.f32 %v10451_v55, %v13365_v30  ;;  %v13367_v55 = vand.u32 4294901760, %v10515_v16 }
 0x40f   : > { %v1164_v8 = vmul.f32 1.442695, %v1162_v45  ;;  %v13089_v28 = vand.u32 4294901760, %v11118_v43 }
 0x410   : > { %10217 = vpow2.f32 %v1166_v33  ;;  %v13087_v44 = vand.u32 4294901760, %v11105_v38  ;;  %v11123_v45 = vsub.f32 %v10515_v16, %v13367_v55  ;;  %v1316_v33 = vand.u32 4294901760, %v1315_v47 }
 0x411   : > { %10219 = vpow2.f32 %v1164_v8  ;;  %v11138_v16 = vsub.f32 %v10534_v26, %v13369_v54  ;;  %v13370_v47 = vand.u32 4294901760, %v10539_v27  ;;  %v13372_v54 = vand.u32 4294901760, %v10567_v37 }
 0x412   : > { %v1322_v20 = vsub.f32 %v11105_v38, %v13087_v44  ;;  %v13088_v30 = vand.u32 4294901760, %v11123_v45  ;;  %v1329_v44 = vsub.f32 %v11118_v43, %v13089_v28 }
 0x414   : > { %v1323_v8 = vand.u32 4294901760, %v1322_v20  ;;  %v1336_v15 = vsub.f32 %v11123_v45, %v13088_v30  ;;  %v11143_v20 = vsub.f32 %v10539_v27, %v13370_v47  ;;  %v1330_v55 = vand.u32 4294901760, %v1329_v44  ;;  %v13373_v47 = vld [vmem:[#allocation14_spill] sm:$0xff] }
 0x415   : > { %v11157_v27 = vsub.f32 %v10567_v37, %v13372_v54  ;;  %v13374_v44 = vand.u32 4294901760, %v13373_v47 }
 0x416   : > { %v11127_v46 = vpack.c.bf16 %v1323_v8, %v1316_v33  ;;  %v1337_v33 = vand.u32 4294901760, %v1336_v15  ;;  %v13091_v8 = vand.u32 4294901760, %v11138_v16  ;;  %v13092_v30 = vand.u32 4294901760, %v11143_v20 }
 0x417   : > { %v11162_v15 = vsub.f32 %v13373_v47, %v13374_v44  ;;  %v13375_v44 = vld [vmem:[#allocation17_spill] sm:$0xff] }
 0x418   : > { %13368 = vst [vmem:[#allocation39_spill] sm:$0xff] %v11127_v46  ;;  %9027 = vmatprep.subr.bf16.mxu1 %v11127_v46  ;;  %v11149_v28 = vpack.c.bf16 %v1337_v33, %v1330_v55  ;;  %v1343_v26 = vsub.f32 %v11138_v16, %v13091_v8  ;;  %v1350_v49 = vsub.f32 %v11143_v20, %v13092_v30  ;;  %v13102_v33 = vand.u32 4294901760, %v11157_v27 }
 0x419   : > { %9029 = vmatpush3.bf16.msra.mxu1 %v11127_v46  ;;  %v13105_v8 = vand.u32 4294901760, %v11162_v15  ;;  %v13376_v30 = vand.u32 4294901760, %v13375_v44 }
 0x41a   : > { %v11091_v50 = vpop.eup %10217  ;;  %13371 = vst [vmem:[#allocation40_spill] sm:$0xff] %v11149_v28  ;;  %9031 = vmatprep.subr.bf16.mxu1 %v11149_v28  ;;  %v1344_v55 = vand.u32 4294901760, %v1343_v26  ;;  %v1351_v37 = vand.u32 4294901760, %v1350_v49  ;;  %v1357_v54 = vsub.f32 %v11157_v27, %v13102_v33  ;;  %v13377_v26 = vld [vmem:[#allocation18_spill] sm:$0xff] }
 0x41b   : > { %v11093_v12 = vpop.eup %10219  ;;  %1170 = vadd.xlane.f32.xlu0 %v11091_v50  ;;  %v1364_v47 = vsub.f32 %v11162_v15, %v13105_v8  ;;  %v11180_v4 = vsub.f32 %v13375_v44, %v13376_v30  ;;  %v13378_v46 = vand.u32 4294901760, %v13377_v26 }
 0x41c   : > { %1168 = vadd.xlane.f32.xlu1 %v11093_v12  ;;  %v1358_v49 = vand.u32 4294901760, %v1357_v54 }
 0x41d   : > { %9033 = vmatpush3.bf16.msra.mxu1 %v11149_v28  ;;  %v11185_v2 = vsub.f32 %v13377_v26, %v13378_v46  ;;  %v11187_v28 = vpack.c.bf16 %v1351_v37, %v1344_v55  ;;  %v1365_v59 = vand.u32 4294901760, %v1364_v47  ;;  %v13106_v33 = vand.u32 4294901760, %v11180_v4  ;;  %v13381_v55 = vld [vmem:[#allocation21_spill] sm:$0xff]  ;;  %v13383_v47 = vld [vmem:[#allocation22_spill] sm:$0xff] }
 0x41e   : > { %v13382_v37 = vand.u32 4294901760, %v13381_v55  ;;  %v13384_v44 = vand.u32 4294901760, %v13383_v47 }
 0x41f   : > { %13379 = vst [vmem:[#allocation14_spill] sm:$0xff] %v11187_v28  ;;  %v13109_v60 = vand.u32 4294901760, %v11185_v2  ;;  %9035 = vmatprep.subr.bf16.mxu1 %v11187_v28  ;;  %v11193_v8 = vpack.c.bf16 %v1365_v59, %v1358_v49  ;;  %v1371_v30 = vsub.f32 %v11180_v4, %v13106_v33 }
 0x420   : > { %v11204_v54 = vsub.f32 %v13381_v55, %v13382_v37  ;;  %v11209_v26 = vsub.f32 %v13383_v47, %v13384_v44  ;;  %v13386_v37 = vld [vmem:[#allocation23_spill] sm:$0xff]  ;;  %v13388_v44 = vld [vmem:[#allocation24_spill] sm:$0xff] }
 0x421   : > { %9037 = vmatpush3.bf16.msra.mxu1 %v11187_v28  ;;  %13380 = vst [vmem:[#allocation17_spill] sm:$0xff] %v11193_v8  ;;  %v1378_v46 = vsub.f32 %v11185_v2, %v13109_v60  ;;  %v1372_v59 = vand.u32 4294901760, %v1371_v30  ;;  %v13387_v13 = vand.u32 4294901760, %v13386_v37  ;;  %v13389_v30 = vand.u32 4294901760, %v13388_v44 }
 0x422   : > { %9039 = vmatprep.subr.bf16.mxu1 %v11193_v8  ;;  %v13114_v33 = vand.u32 4294901760, %v11204_v54  ;;  %v13117_v28 = vand.u32 4294901760, %v11209_v26 }
 0x423   : > { %v1379_v49 = vand.u32 4294901760, %v1378_v46  ;;  %v11223_v47 = vsub.f32 %v13386_v37, %v13387_v13  ;;  %v11228_v46 = vsub.f32 %v13388_v44, %v13389_v30 }
 0x424   : > { %v1385_v55 = vsub.f32 %v11204_v54, %v13114_v33 }
 0x425   : > { %9041 = vmatpush3.bf16.msra.mxu1 %v11193_v8  ;;  %v11215_v60 = vpack.c.bf16 %v1379_v49, %v1372_v59  ;;  %v1392_v8 = vsub.f32 %v11209_v26, %v13117_v28  ;;  %v13119_v49 = vand.u32 4294901760, %v11223_v47  ;;  %v13118_v33 = vand.u32 4294901760, %v11228_v46 }
 0x426   : > { %v1386_v59 = vand.u32 4294901760, %v1385_v55 }
 0x427   : > { %13385 = vst [vmem:[#allocation18_spill] sm:$0xff] %v11215_v60  ;;  %9043 = vmatprep.subr.bf16.mxu1 %v11215_v60  ;;  %v1393_v56 = vand.u32 4294901760, %v1392_v8  ;;  %v1399_v13 = vsub.f32 %v11223_v47, %v13119_v49  ;;  %v1406_v37 = vsub.f32 %v11228_v46, %v13118_v33  ;;  %v11253_v8 = vpack.c.bf16 %v11077_v42, %v11072_v17 }
 0x428   : > { %v11282_v33 = vpack.c.bf16 %v11228_v46, %v11223_v47 }
 0x429   : > { %9045 = vmatpush3.bf16.msra.mxu1 %v11215_v60  ;;  %v11243_v44 = vpack.c.bf16 %v1393_v56, %v1386_v59  ;;  %v1400_v30 = vand.u32 4294901760, %v1399_v13  ;;  %v1407_v28 = vand.u32 4294901760, %v1406_v37  ;;  %v11258_v56 = vpack.c.bf16 %v11105_v38, %v11100_v23 }
 0x42a   : > { %v11262_v59 = vpack.c.bf16 %v11123_v45, %v11118_v43  ;;  %v11270_v13 = vpack.c.bf16 %v11162_v15, %v11157_v27  ;;  %v11274_v37 = vpack.c.bf16 %v11185_v2, %v11180_v4  ;;  %13398 = vst [vmem:[#allocation45_spill] sm:$0xff] %v11282_v33 }
 0x42b   : > { %13390 = vst [vmem:[#allocation21_spill] sm:$0xff] %v11243_v44  ;;  %9047 = vmatprep.subr.bf16.mxu1 %v11243_v44  ;;  %v11247_v55 = vpack.c.bf16 %v1407_v28, %v1400_v30  ;;  %13392 = vst [vmem:[#allocation23_spill] sm:$0xff] %v11258_v56  ;;  %v11266_v28 = vpack.c.bf16 %v11143_v20, %v11138_v16  ;;  %v11278_v30 = vpack.c.bf16 %v11209_v26, %v11204_v54 }
 0x42c   : > { %13393 = vst [vmem:[#allocation24_spill] sm:$0xff] %v11262_v59  ;;  %13395 = vst [vmem:[#allocation42_spill] sm:$0xff] %v11270_v13 }
 0x42d   : > { %9049 = vmatpush3.bf16.msra.mxu1 %v11243_v44  ;;  %13391 = vst [vmem:[#allocation22_spill] sm:$0xff] %v11247_v55  ;;  %13394 = vst [vmem:[#allocation41_spill] sm:$0xff] %v11266_v28 }
 0x42e   : > { %9051 = vmatprep.subr.bf16.mxu1 %v11247_v55  ;;  %13396 = vst [vmem:[#allocation43_spill] sm:$0xff] %v11274_v37  ;;  %13397 = vst [vmem:[#allocation44_spill] sm:$0xff] %v11278_v30 }
 0x431   : > { %9053 = vmatpush3.bf16.msra.mxu1 %v11247_v55 }
 0x432   : > { %9055 = vmatprep.subr.bf16.mxu1 %v11253_v8 }
 0x4a8   : > { %v1171_v49 = vpop.xlane.xlu0 %1170 }
 0x4a9   : > { %10221 = vrcp.f32 %v1171_v49  ;;  %v1169_v55 = vpop.xlane.xlu1 %1168 }
 0x4aa   : > { %10223 = vrcp.f32 %v1169_v55 }
 0x4b3   : > { %v10222_v44 = vpop.eup %10221 }
 0x4b4   : > { %v10224_v60 = vpop.eup %10223  ;;  %v11285_v25 = vmul.f32 %v10222_v44, %v11091_v50 }
 0x4b5   : > { %v11288_v19 = vmul.f32 %v10224_v60, %v11093_v12  ;;  %v13402_v60 = vld [vmem:[#allocation13_spill] sm:$0xff]  ;;  %v13403_v12 = vld [vmem:[#allocation16_spill] sm:$0xff] }
 0x4b6   : > { %v11291_v32 = vand.u32 4294901760, %v11285_v25 }
 0x4b7   : > { %v11294_v18 = vand.u32 4294901760, %v11288_v19 }
 0x4b8   : > { %v1288_v52 = vsub.f32 %v11285_v25, %v11291_v32 }
 0x4b9   : > { %v1278_v49 = vsub.f32 %v11288_v19, %v11294_v18 }
 0x4ba   : > { %v1289_v55 = vand.u32 4294901760, %v1288_v52 }
 0x4bb   : > { %v1279_v40 = vand.u32 4294901760, %v1278_v49 }
 0x4bc   : > { %v1290_v41 = vsub.f32 %v1288_v52, %v1289_v55 }
 0x4bd   : > { %v1280_v50 = vsub.f32 %v1278_v49, %v1279_v40 }
 0x4be   : > { %v1291_v31 = vand.u32 4294901760, %v1290_v41  ;;  %v13400_v41 = vld [vmem:[#allocation10_spill] sm:$0xff] }
 0x4bf   : > { %v1281_v44 = vand.u32 4294901760, %v1280_v50  ;;  %v13408_v50 = vand.u32 4294901760, %v11077_v42  ;;  %v13414_v42 = vand.u32 4294901760, %v11123_v45 }
 0x4c1   : > { %7513 = vmatprep.mubr.f32.mxu1 %v1281_v44 }
 0x4c2   : > { %7514 = vmatmul.mubr.f32.gmra.mrb[2].mxu1 %v1291_v31  ;;  %v13399_v31 = vld [vmem:[#allocation9_spill] sm:$0xff] }
 0x4c3   : > { %7548 = vmatprep.mubr.f32.mxu1 %v10863_v22 }
 0x4c6   : > { %7549 = vmatmul.mubr.f32.vlgmr.msra.gmra.mrb[0].mxu1 %v10869_v62 }
 0x4c7   : > { %9057 = vmatpush3.bf16.msra.mxu1 %v11253_v8  ;;  %7551 = vmatprep.mubr.f32.mxu1 %v11294_v18 }
 0x4c8   : > { %9059 = vmatprep.subr.bf16.mxu1 %v11258_v56 }
 0x4ca   : > { %7552 = vmatmul.mubr.f32.gmra.mrb[2].mxu1 %v11291_v32 }
 0x4cb   : > { %9061 = vmatpush3.bf16.msra.mxu1 %v11258_v56  ;;  %7586 = vmatprep.mubr.f32.mxu1 %v10878_v14  ;;  %v13401_v14 = vld [vmem:[#allocation11_spill] sm:$0xff] }
 0x4cc   : > { %9063 = vmatprep.subr.bf16.mxu1 %v11262_v59 }
 0x4cf   : > { %9065 = vmatpush3.bf16.msra.mxu1 %v11262_v59 }
 0x4d0   : > { %9067 = vmatprep.subr.bf16.mxu1 %v11266_v28 }
 0x4d3   : > { %9069 = vmatpush3.bf16.msra.mxu1 %v11266_v28 }
 0x4d4   : > { %9071 = vmatprep.subr.bf16.mxu1 %v11270_v13 }
 0x4d7   : > { %9073 = vmatpush3.bf16.msra.mxu1 %v11270_v13 }
 0x4d8   : > { %9075 = vmatprep.subr.bf16.mxu1 %v11274_v37 }
 0x4db   : > { %9077 = vmatpush3.bf16.msra.mxu1 %v11274_v37 }
 0x4dc   : > { %9079 = vmatprep.subr.bf16.mxu1 %v11278_v30 }
 0x4df   : > { %9081 = vmatpush3.bf16.msra.mxu1 %v11278_v30  ;;  %v13411_v30 = vand.u32 4294901760, %v11105_v38  ;;  %v13419_v38 = vand.u32 4294901760, %v11157_v27  ;;  %v13425_v27 = vand.u32 4294901760, %v11204_v54  ;;  %v13433_v54 = vmov 1  }
 0x4e0   : > { %9083 = vmatprep.subr.bf16.mxu1 %v11282_v33 }
 0x4e3   : > { %9085 = vmatpush3.bf16.msra.mxu1 %v11282_v33  ;;  %v13410_v33 = vand.u32 4294901760, %v11100_v23 }
 0x4e4   : > { %9087 = vmatprep.subr.bf16.mxu1 %v13399_v31 }
 0x4e5   : > { %v11349_v37 = vpack.c.bf16 %v13411_v30, %v13410_v33 }
 0x4e6   : > { %7587 = vmatmul.mubr.f32.vlgmr.msra.gmra.mrb[0].mxu1 %v10882_v1  ;;  %v13404_v1 = vld [vmem:[#allocation20_spill] sm:$0xff] }
 0x4e7   : > { %7589 = vmatprep.mubr.f32.mxu1 %v1278_v49  ;;  %9089 = vmatpush3.bf16.msra.mxu1 %v13399_v31  ;;  %v13407_v49 = vand.u32 4294901760, %v11072_v17  ;;  %13412 = vst [vmem:[#allocation47_spill] sm:$0xff] %v11349_v37  ;;  %v13413_v17 = vand.u32 4294901760, %v11118_v43  ;;  %v13420_v43 = vand.u32 4294901760, %v11162_v15  ;;  %v13426_v15 = vand.u32 4294901760, %v11209_v26 }
 0x4e8   : > { %9091 = vmatprep.subr.bf16.mxu1 %v13400_v41  ;;  %v13434_v26 = vmov 2  }
 0x4e9   : > { %v11341_v44 = vpack.c.bf16 %v13408_v50, %v13407_v49  ;;  %v11358_v49 = vpack.c.bf16 %v13414_v42, %v13413_v17  ;;  %v11375_v45 = vpack.c.bf16 %v13420_v43, %v13419_v38  ;;  %v11391_v30 = vpack.c.bf16 %v13426_v15, %v13425_v27  ;;  %v13436_v50 = vld [vmem:[#allocation5_spill] sm:$0xff] }
 0x4ea   : > { %7590 = vmatmul.mubr.f32.gmra.mrb[2].mxu1 %v1288_v52  ;;  %v13405_v52 = vld [vmem:[#allocation26_spill] sm:$0xff]  ;;  %v13439_v43 = vld [vmem:[#allocation29_spill] sm:$0xff] }
 0x4eb   : > { %9093 = vmatpush3.bf16.msra.mxu1 %v13400_v41  ;;  %7624 = vmatprep.mubr.f32.mxu1 %v10885_v10  ;;  %v13406_v10 = vld [vmem:[#allocation28_spill] sm:$0xff]  ;;  %13409 = vst [vmem:[#allocation46_spill] sm:$0xff] %v11341_v44  ;;  %13415 = vst [vmem:[#allocation48_spill] sm:$0xff] %v11358_v49 }
 0x4ec   : > { %9095 = vmatprep.subr.bf16.mxu1 %v13401_v14  ;;  %13421 = vst [vmem:[#allocation50_spill] sm:$0xff] %v11375_v45  ;;  %13427 = vst [vmem:[#allocation52_spill] sm:$0xff] %v11391_v30 }
 0x4ef   : > { %9097 = vmatpush3.bf16.msra.mxu1 %v13401_v14 }
 0x4f0   : > { %9099 = vmatprep.subr.bf16.mxu1 %v13402_v60 }
 0x4f3   : > { %9101 = vmatpush3.bf16.msra.mxu1 %v13402_v60 }
 0x4f4   : > { %9103 = vmatprep.subr.bf16.mxu1 %v13403_v12 }
 0x4f7   : > { %9105 = vmatpush3.bf16.msra.mxu1 %v13403_v12 }
 0x4f8   : > { %9107 = vmatprep.subr.bf16.mxu1 %v13404_v1 }
 0x4fb   : > { %9109 = vmatpush3.bf16.msra.mxu1 %v13404_v1 }
 0x4fc   : > { %9111 = vmatprep.subr.bf16.mxu1 %v13405_v52 }
 0x4ff   : > { %9113 = vmatpush3.bf16.msra.mxu1 %v13405_v52 }
 0x500   : > { %9115 = vmatprep.subr.bf16.mxu1 %v13406_v10 }
 0x503   : > { %9117 = vmatpush3.bf16.msra.mxu1 %v13406_v10 }
 0x504   : > { %9119 = vmatprep.subr.bf16.mxu1 %v11341_v44 }
 0x506   : > { %7625 = vmatmul.mubr.f32.vlgmr.msra.gmra.mrb[0].mxu1 %v10888_v61  ;;  %v13416_v61 = vand.u32 4294901760, %v11138_v16  ;;  %v13422_v16 = vand.u32 4294901760, %v11180_v4  ;;  %v13428_v4 = vand.u32 4294901760, %v11223_v47  ;;  %v13435_v47 = vmov 3  }
 0x507   : > { %7627 = vmatprep.mubr.f32.mxu1 %v1279_v40  ;;  %9121 = vmatpush3.bf16.msra.mxu1 %v11341_v44  ;;  %v13417_v40 = vand.u32 4294901760, %v11143_v20  ;;  %v13423_v20 = vand.u32 4294901760, %v11185_v2  ;;  %v13429_v2 = vand.u32 4294901760, %v11228_v46 }
 0x508   : > { %9123 = vmatprep.subr.bf16.mxu1 %v11349_v37 }
 0x509   : > { %v11367_v23 = vpack.c.bf16 %v13417_v40, %v13416_v61  ;;  %v11383_v33 = vpack.c.bf16 %v13423_v20, %v13422_v16  ;;  %v13437_v40 = vld [vmem:[#allocation30_spill] sm:$0xff] }
 0x50a   : > { %7628 = vmatmul.mubr.f32.gmra.mrb[2].mxu1 %v1289_v55  ;;  %v11399_v55 = vpack.c.bf16 %v13429_v2, %v13428_v4  ;;  %v13441_v2 = vld [vmem:[#allocation6_spill] sm:$0xff] }
 0x50b   : > { %9125 = vmatpush3.bf16.msra.mxu1 %v11349_v37  ;;  %7662 = vmatprep.mubr.f32.mxu1 %v10863_v22  ;;  %13418 = vst [vmem:[#allocation49_spill] sm:$0xff] %v11367_v23  ;;  %13424 = vst [vmem:[#allocation51_spill] sm:$0xff] %v11383_v33 }
 0x50c   : > { %9127 = vmatprep.subr.bf16.mxu1 %v11358_v49  ;;  %13430 = vst [vmem:[#allocation53_spill] sm:$0xff] %v11399_v55 }
 0x50f   : > { %9129 = vmatpush3.bf16.msra.mxu1 %v11358_v49 }
 0x510   : > { %9131 = vmatprep.subr.bf16.mxu1 %v11367_v23 }
 0x513   : > { %9133 = vmatpush3.bf16.msra.mxu1 %v11367_v23 }
 0x514   : > { %9135 = vmatprep.subr.bf16.mxu1 %v11375_v45 }
 0x517   : > { %9137 = vmatpush3.bf16.msra.mxu1 %v11375_v45 }
 0x518   : > { %9139 = vmatprep.subr.bf16.mxu1 %v11383_v33 }
 0x51b   : > { %9141 = vmatpush3.bf16.msra.mxu1 %v11383_v33 }
 0x51c   : > { %9143 = vmatprep.subr.bf16.mxu1 %v11391_v30 }
 0x51f   : > { %9145 = vmatpush3.bf16.msra.mxu1 %v11391_v30 }
 0x520   : > { %9147 = vmatprep.subr.bf16.mxu1 %v11399_v55 }
 0x523   : > { %9149 = vmatpush3.bf16.msra.mxu1 %v11399_v55 }
 0x524   : > { %9151 = vmatprep.subr.bf16.mxu1 %v13399_v31 }
 0x526   : > { %7663 = vmatmul.mubr.f32.vlgmr.msra.gmra.mrb[0].mxu1 %v10869_v62 }
 0x527   : > { %7665 = vmatprep.mubr.f32.mxu1 %v11294_v18  ;;  %9153 = vmatpush3.bf16.msra.mxu1 %v13399_v31 }
 0x528   : > { %9155 = vmatprep.subr.bf16.mxu1 %v13400_v41 }
 0x52a   : > { %7666 = vmatmul.mubr.f32.gmra.mrb[2].mxu1 %v11291_v32 }
 0x52b   : > { %9157 = vmatpush3.bf16.msra.mxu1 %v13400_v41  ;;  %7700 = vmatprep.mubr.f32.mxu1 %v10863_v22 }
 0x52c   : > { %9159 = vmatprep.subr.bf16.mxu1 %v13401_v14 }
 0x52f   : > { %9161 = vmatpush3.bf16.msra.mxu1 %v13401_v14 }
 0x530   : > { %9163 = vmatprep.subr.bf16.mxu1 %v13402_v60 }
 0x533   : > { %9165 = vmatpush3.bf16.msra.mxu1 %v13402_v60 }
 0x534   : > { %9167 = vmatprep.subr.bf16.mxu1 %v13403_v12 }
 0x537   : > { %9169 = vmatpush3.bf16.msra.mxu1 %v13403_v12 }
 0x538   : > { %9171 = vmatprep.subr.bf16.mxu1 %v13404_v1 }
 0x53b   : > { %9173 = vmatpush3.bf16.msra.mxu1 %v13404_v1 }
 0x53c   : > { %9175 = vmatprep.subr.bf16.mxu1 %v13405_v52 }
 0x53f   : > { %9177 = vmatpush3.bf16.msra.mxu1 %v13405_v52 }
 0x540   : > { %9179 = vmatprep.subr.bf16.mxu1 %v13406_v10 }
 0x543   : > { %9181 = vmatpush3.bf16.msra.mxu1 %v13406_v10 }
 0x544   : > { %9375 = vmatprep.subr.bf16.mxu1 %v13399_v31 }
 0x546   : > { %7701 = vmatmul.mubr.f32.vlgmr.msra.gmra.mrb[0].mxu1 %v10869_v62 }
 0x547   : > { %7703 = vmatprep.mubr.f32.mxu1 %v11294_v18  ;;  %9377 = vmatpush3.bf16.msra.mxu1 %v13399_v31 }
 0x548   : > { %9379 = vmatprep.subr.bf16.mxu1 %v13400_v41 }
 0x54a   : > { %7704 = vmatmul.mubr.f32.gmra.mrb[2].mxu1 %v11291_v32 }
 0x54b   : > { %9381 = vmatpush3.bf16.msra.mxu1 %v13400_v41 }
 0x54c   : > { %9383 = vmatprep.subr.bf16.mxu1 %v13401_v14 }
 0x54f   : > { %9385 = vmatpush3.bf16.msra.mxu1 %v13401_v14 }
 0x550   : > { %9387 = vmatprep.subr.bf16.mxu1 %v13402_v60 }
 0x553   : > { %9389 = vmatpush3.bf16.msra.mxu1 %v13402_v60 }
 0x554   : > { %9391 = vmatprep.subr.bf16.mxu1 %v13403_v12 }
 0x557   : > { %9393 = vmatpush3.bf16.msra.mxu1 %v13403_v12 }
 0x558   : > { %9395 = vmatprep.subr.bf16.mxu1 %v13404_v1 }
 0x55b   : > { %9397 = vmatpush3.bf16.msra.mxu1 %v13404_v1 }
 0x55c   : > { %9399 = vmatprep.subr.bf16.mxu1 %v13405_v52 }
 0x55f   : > { %9401 = vmatpush3.bf16.msra.mxu1 %v13405_v52 }
 0x560   : > { %9403 = vmatprep.subr.bf16.mxu1 %v13406_v10 }
 0x563   : > { %9405 = vmatpush3.bf16.msra.mxu1 %v13406_v10 }
 0x564   : > { %9407 = vmatprep.subr.bf16.mxu1 %v11087_v24 }
 0x619   : > { %v11444_v18 = vpop.f32.mrb[0].mxu1 }
 0x61a   : > { %13431 = vst [vmem:[#allocation54_spill] sm:$0xff] %v11444_v18  ;;  %1973 = vperm.xlu0 %10201, %v11444_v18   ;;  %v11447_v22 = vpop.f32.mrb[1].mxu1 }
 0x61b   : > { %13432 = vst [vmem:[#allocation55_spill] sm:$0xff] %v11447_v22  ;;  %1968 = vperm.xlu1 %10200, %v11447_v22  }
 0x61d   : > { %v11450_v62 = vpop.f32.mrb[2].mxu1 }
 0x61e   : > { %v11452_v32 = vpop.f32.mrb[3].mxu1 }
 0x61f   : > { %10202 = vset.pattern.permute.xlu1 %v13433_v54 }
 0x620   : > { %1985 = vperm.xlu1 %10202, %v11444_v18  }
 0x624   : > { %10203 = vset.pattern.permute.xlu1 %v13434_v26 }
 0x625   : > { %1997 = vperm.xlu1 %10203, %v11444_v18  }
 0x629   : > { %10204 = vset.pattern.permute.xlu1 %v13433_v54 }
 0x62a   : > { %1981 = vperm.xlu1 %10204, %v11447_v22  }
 0x62e   : > { %10205 = vset.pattern.permute.xlu1 %v13434_v26 }
 0x62f   : > { %1993 = vperm.xlu1 %10205, %v11447_v22  }
 0x633   : > { %10206 = vset.pattern.permute.xlu1 %v13435_v47 }
 0x634   : > { %2005 = vperm.xlu1 %10206, %v11447_v22  }
 0x638   : > { %2009 = vperm.xlu1 %10206, %v11444_v18  }
 0x699   : > { %v1974_v46 = vpop.permute.xlu0 %1973 }
 0x69a   : > { %v1977_v17 = vsub.f32 %v13436_v50, %v1974_v46  ;;  %v1969_v42 = vpop.permute.xlu1 %1968 }
 0x69b   : > { %v1976_v61 = vsub.f32 %v13436_v50, %v1969_v42 }
 0x69c   : > { %v11468_v38 = vmul.f32 %v1977_v17, %v13437_v40 }
 0x69d   : > { %v11471_v16 = vmul.f32 %v1976_v61, %v13439_v43  ;;  %v13443_v61 = vld [vmem:[#allocation7_spill] sm:$0xff] }
 0x69e   : > { %13438 = vst [vmem:[#allocation5_spill] sm:$0xff] %v11468_v38  ;;  %v11474_v20 = vand.u32 4294901760, %v11468_v38 }
 0x69f   : > { %13440 = vst [vmem:[#allocation56_spill] sm:$0xff] %v11471_v16  ;;  %v11477_v27 = vand.u32 4294901760, %v11471_v16  ;;  %v1986_v15 = vpop.permute.xlu1 %1985 }
 0x6a0   : > { %v11481_v4 = vsub.f32 %v11468_v38, %v11474_v20  ;;  %v1989_v54 = vsub.f32 %v13441_v2, %v1986_v15 }
 0x6a1   : > { %v11486_v26 = vsub.f32 %v11471_v16, %v11477_v27 }
 0x6a2   : > { %v13158_v47 = vand.u32 4294901760, %v11481_v4  ;;  %v11490_v46 = vmul.f32 %v1989_v54, %v13437_v40 }
 0x6a3   : > { %v13159_v50 = vand.u32 4294901760, %v11486_v26 }
 0x6a4   : > { %13442 = vst [vmem:[#allocation6_spill] sm:$0xff] %v11490_v46  ;;  %v1998_v17 = vpop.permute.xlu1 %1997  ;;  %v2110_v42 = vsub.f32 %v11481_v4, %v13158_v47  ;;  %v11501_v16 = vand.u32 4294901760, %v11490_v46 }
 0x6a5   : > { %v2001_v38 = vsub.f32 %v13443_v61, %v1998_v17  ;;  %v2100_v15 = vsub.f32 %v11486_v26, %v13159_v50  ;;  %v13447_v50 = vld [vmem:[#allocation8_spill] sm:$0xff] }
 0x6a6   : > { %v2111_v18 = vand.u32 4294901760, %v2110_v42  ;;  %v11509_v17 = vsub.f32 %v11490_v46, %v11501_v16 }
 0x6a7   : > { %v2101_v22 = vand.u32 4294901760, %v2100_v15  ;;  %v11504_v54 = vmul.f32 %v2001_v38, %v13437_v40 }
 0x6a9   : > { %13444 = vst [vmem:[#allocation7_spill] sm:$0xff] %v11504_v54  ;;  %7738 = vmatprep.mubr.f32.mxu0 %v2101_v22  ;;  %v1982_v55 = vpop.permute.xlu1 %1981  ;;  %v11513_v47 = vand.u32 4294901760, %v11504_v54 }
 0x6aa   : > { %v1988_v30 = vsub.f32 %v13441_v2, %v1982_v55  ;;  %7739 = vmatmul.mubr.f32.vlgmr.msra.gmra.mrb[2].mxu0 %v2111_v18  ;;  %v13165_v18 = vand.u32 4294901760, %v11509_v17 }
 0x6ab   : > { %9217 = vmatpush3.bf16.msra.mxu0 %v10711_v58  ;;  %v11527_v58 = vsub.f32 %v11504_v54, %v11513_v47 }
 0x6ac   : > { %v11516_v15 = vmul.f32 %v1988_v30, %v13439_v43  ;;  %9219 = vmatprep.subr.bf16.mxu0 %v10900_v11 }
 0x6ad   : > { %v13171_v54 = vand.u32 4294901760, %v11527_v58 }
 0x6ae   : > { %13445 = vst [vmem:[#allocation57_spill] sm:$0xff] %v11516_v15  ;;  %v11520_v22 = vand.u32 4294901760, %v11516_v15  ;;  %v1994_v38 = vpop.permute.xlu1 %1993 }
 0x6af   : > { %9221 = vmatpush3.bf16.msra.mxu0 %v10900_v11  ;;  %v2000_v55 = vsub.f32 %v13443_v61, %v1994_v38  ;;  %v2130_v38 = vsub.f32 %v11509_v17, %v13165_v18 }
 0x6b0   : > { %v11531_v30 = vsub.f32 %v11516_v15, %v11520_v22  ;;  %9223 = vmatprep.subr.bf16.mxu0 %v10905_v0 }
 0x6b1   : > { %v11535_v2 = vmul.f32 %v2000_v55, %v13439_v43 }
 0x6b2   : > { %v13170_v42 = vand.u32 4294901760, %v11531_v30 }
 0x6b3   : > { %13446 = vst [vmem:[#allocation58_spill] sm:$0xff] %v11535_v2  ;;  %v11539_v11 = vand.u32 4294901760, %v11535_v2  ;;  %9225 = vmatpush3.bf16.msra.mxu0 %v10905_v0  ;;  %v2006_v61 = vpop.permute.xlu1 %2005 }
 0x6b4   : > { %v2012_v15 = vsub.f32 %v13447_v50, %v2006_v61  ;;  %9227 = vmatprep.subr.bf16.mxu0 %v10760_v51  ;;  %v2120_v55 = vsub.f32 %v11531_v30, %v13170_v42  ;;  %v2131_v61 = vand.u32 4294901760, %v2130_v38 }
 0x6b5   : > { %v11553_v46 = vsub.f32 %v11535_v2, %v11539_v11 }
 0x6b6   : > { %v11556_v0 = vmul.f32 %v2012_v15, %v13439_v43  ;;  %v2121_v33 = vand.u32 4294901760, %v2120_v55  ;;  %v2150_v15 = vsub.f32 %v11527_v58, %v13171_v54 }
 0x6b7   : > { %9229 = vmatpush3.bf16.msra.mxu0 %v10760_v51  ;;  %v2010_v18 = vpop.permute.xlu1 %2009  ;;  %v2139_v45 = vand.u32 4294901760, %v11553_v46 }
 0x6b8   : > { %13448 = vst [vmem:[#allocation8_spill] sm:$0xff] %v11556_v0  ;;  %v11561_v23 = vand.u32 4294901760, %v11556_v0  ;;  %v2013_v42 = vsub.f32 %v13447_v50, %v2010_v18  ;;  %7741 = vmatprep.mubr.f32.mxu0 %v2121_v33  ;;  %9231 = vmatprep.subr.bf16.mxu0 %v10764_v6  ;;  %v2151_v18 = vand.u32 4294901760, %v2150_v15 }
 0x6b9   : > { %7742 = vmatmul.mubr.f32.gmra.mrb[4].mxu0 %v2131_v61  ;;  %v2140_v51 = vsub.f32 %v11553_v46, %v2139_v45 }
 0x6ba   : > { %v11573_v38 = vsub.f32 %v11556_v0, %v11561_v23  ;;  %v11576_v55 = vmul.f32 %v2013_v42, %v13437_v40 }
 0x6bb   : > { %9233 = vmatpush3.bf16.msra.mxu0 %v10764_v6  ;;  %v2141_v33 = vand.u32 4294901760, %v2140_v51 }
 0x6bc   : > { %13449 = vst [vmem:[#allocation59_spill] sm:$0xff] %v11576_v55  ;;  %v11580_v50 = vand.u32 4294901760, %v11576_v55  ;;  %9235 = vmatprep.subr.bf16.mxu0 %v10784_v21  ;;  %v2159_v61 = vand.u32 4294901760, %v11573_v38 }
 0x6bd   : > { %7744 = vmatprep.mubr.f32.mxu0 %v2141_v33 }
 0x6be   : > { %v11586_v54 = vsub.f32 %v11576_v55, %v11580_v50  ;;  %7745 = vmatmul.mubr.f32.gmra.mrb[6].mxu0 %v2151_v18  ;;  %v2160_v42 = vsub.f32 %v11573_v38, %v2159_v61 }
 0x6bf   : > { %9237 = vmatpush3.bf16.msra.mxu0 %v10784_v21  ;;  %v13450_v21 = vld [vmem:[#allocation12_spill] sm:$0xff] }
 0x6c0   : > { %9239 = vmatprep.subr.bf16.mxu0 %v10806_v48  ;;  %v2161_v6 = vand.u32 4294901760, %v2160_v42  ;;  %v2169_v51 = vand.u32 4294901760, %v11586_v54 }
 0x6c2   : > { %7747 = vmatprep.mubr.f32.mxu0 %v2161_v6  ;;  %v2170_v15 = vsub.f32 %v11586_v54, %v2169_v51 }
 0x6c3   : > { %9241 = vmatpush3.bf16.msra.mxu0 %v10806_v48  ;;  %v13453_v48 = vld [vmem:[#allocation19_spill] sm:$0xff] }
 0x6c4   : > { %9243 = vmatprep.subr.bf16.mxu0 %v10808_v36  ;;  %v2171_v33 = vand.u32 4294901760, %v2170_v15  ;;  %v11752_v15 = vld [vmem:[%s12989_s3 + $0x8] sm:$0xff] }
 0x6c6   : > { %7748 = vmatmul.mubr.f32.gmra.mrb[8].mxu0 %v2171_v33 }
 0x6c7   : > { %9245 = vmatpush3.bf16.msra.mxu0 %v10808_v36  ;;  %7782 = vmatprep.mubr.f32.mxu0 %v11477_v27  ;;  %v13451_v36 = vand.u32 4294901760, %v11486_v26 }
 0x6c8   : > { %9247 = vmatprep.subr.bf16.mxu0 %v10812_v39 }
 0x6ca   : > { %7783 = vmatmul.mubr.f32.vlgmr.msra.gmra.mrb[2].mxu0 %v11474_v20 }
 0x6cb   : > { %9249 = vmatpush3.bf16.msra.mxu0 %v10812_v39  ;;  %7785 = vmatprep.mubr.f32.mxu0 %v11520_v22  ;;  %v13454_v39 = vld [vmem:[#allocation25_spill] sm:$0xff] }
 0x6cc   : > { %9251 = vmatprep.subr.bf16.mxu0 %v10923_v5 }
 0x6ce   : > { %7786 = vmatmul.mubr.f32.gmra.mrb[4].mxu0 %v11501_v16 }
 0x6cf   : > { %9253 = vmatpush3.bf16.msra.mxu0 %v10923_v5  ;;  %7788 = vmatprep.mubr.f32.mxu0 %v11539_v11  ;;  %v13459_v5 = vld [vmem:[#allocation32_spill] sm:$0xff] }
 0x6d0   : > { %9255 = vmatprep.subr.bf16.mxu0 %v10931_v53 }
 0x6d2   : > { %7789 = vmatmul.mubr.f32.gmra.mrb[6].mxu0 %v11513_v47 }
 0x6d3   : > { %9257 = vmatpush3.bf16.msra.mxu0 %v10931_v53  ;;  %7791 = vmatprep.mubr.f32.mxu0 %v11561_v23  ;;  %v13460_v53 = vand.u32 4294901760, %v11509_v17 }
 0x6d4   : > { %9259 = vmatprep.subr.bf16.mxu0 %v10816_v29 }
 0x6d6   : > { %7792 = vmatmul.mubr.f32.gmra.mrb[8].mxu0 %v11580_v50 }
 0x6d7   : > { %9261 = vmatpush3.bf16.msra.mxu0 %v10816_v29  ;;  %7826 = vmatprep.mubr.f32.mxu0 %v11486_v26  ;;  %v13455_v29 = vld [vmem:[#allocation27_spill] sm:$0xff]  ;;  %v13461_v26 = vld [vmem:[#allocation33_spill] sm:$0xff] }
 0x6d8   : > { %9263 = vmatprep.subr.bf16.mxu0 %v10820_v34 }
 0x6db   : > { %9265 = vmatpush3.bf16.msra.mxu0 %v10820_v34  ;;  %v13452_v34 = vld [vmem:[#allocation15_spill] sm:$0xff] }
 0x6dc   : > { %9267 = vmatprep.subr.bf16.mxu0 %v10824_v7 }
 0x6df   : > { %9269 = vmatpush3.bf16.msra.mxu0 %v10824_v7  ;;  %v13456_v7 = vld [vmem:[#allocation31_spill] sm:$0xff] }
 0x6e0   : > { %9271 = vmatprep.subr.bf16.mxu0 %v10828_v35 }
 0x6e3   : > { %9273 = vmatpush3.bf16.msra.mxu0 %v10828_v35  ;;  %v13457_v35 = vand.u32 4294901760, %v11481_v4 }
 0x6e4   : > { %9275 = vmatprep.subr.bf16.mxu0 %v10832_v9 }
 0x6e7   : > { %9277 = vmatpush3.bf16.msra.mxu0 %v10832_v9  ;;  %v13458_v9 = vand.u32 4294901760, %v11531_v30 }
 0x6e8   : > { %9279 = vmatprep.subr.bf16.mxu0 %v10459_v57 }
 0x6ea   : > { %7827 = vmatmul.mubr.f32.vlgmr.msra.gmra.mrb[2].mxu0 %v11481_v4  ;;  %v13462_v4 = vand.u32 4294901760, %v11527_v58 }
 0x6eb   : > { %7829 = vmatprep.mubr.f32.mxu0 %v11531_v30  ;;  %9281 = vmatpush3.bf16.msra.mxu0 %v10459_v57  ;;  %v13463_v30 = vld [vmem:[#allocation34_spill] sm:$0xff] }
 0x6ec   : > { %9283 = vmatprep.subr.bf16.mxu0 %v10476_v63 }
 0x6ee   : > { %7830 = vmatmul.mubr.f32.gmra.mrb[4].mxu0 %v11509_v17  ;;  %v13466_v17 = vld [vmem:[#allocation37_spill] sm:$0xff] }
 0x6ef   : > { %7832 = vmatprep.mubr.f32.mxu0 %v11553_v46  ;;  %9285 = vmatpush3.bf16.msra.mxu0 %v10476_v63  ;;  %v13465_v46 = vld [vmem:[#allocation36_spill] sm:$0xff] }
 0x6f0   : > { %9287 = vmatprep.subr.bf16.mxu0 %v10494_v3 }
 0x6f2   : > { %7833 = vmatmul.mubr.f32.gmra.mrb[6].mxu0 %v11527_v58  ;;  %v13467_v58 = vld [vmem:[#allocation38_spill] sm:$0xff] }
 0x6f3   : > { %7835 = vmatprep.mubr.f32.mxu0 %v11573_v38  ;;  %9289 = vmatpush3.bf16.msra.mxu0 %v10494_v3 }
 0x6f4   : > { %9291 = vmatprep.subr.bf16.mxu0 %v13450_v21 }
 0x6f6   : > { %7836 = vmatmul.mubr.f32.gmra.mrb[8].mxu0 %v11586_v54 }
 0x6f7   : > { %9293 = vmatpush3.bf16.msra.mxu0 %v13450_v21  ;;  %7870 = vmatprep.mubr.f32.mxu0 %v13451_v36 }
 0x6f8   : > { %9295 = vmatprep.subr.bf16.mxu0 %v13452_v34 }
 0x6fb   : > { %9297 = vmatpush3.bf16.msra.mxu0 %v13452_v34 }
 0x6fc   : > { %9299 = vmatprep.subr.bf16.mxu0 %v13453_v48 }
 0x6ff   : > { %9301 = vmatpush3.bf16.msra.mxu0 %v13453_v48 }
 0x700   : > { %9303 = vmatprep.subr.bf16.mxu0 %v13454_v39 }
 0x703   : > { %9305 = vmatpush3.bf16.msra.mxu0 %v13454_v39 }
 0x704   : > { %9307 = vmatprep.subr.bf16.mxu0 %v13455_v29 }
 0x707   : > { %9309 = vmatpush3.bf16.msra.mxu0 %v13455_v29 }
 0x708   : > { %9311 = vmatprep.subr.bf16.mxu0 %v13456_v7 }
 0x70a   : > { %7871 = vmatmul.mubr.f32.vlgmr.msra.gmra.mrb[2].mxu0 %v13457_v35  ;;  %v11785_v35 = vld [vmem:[%s12989_s3 + $0x20] sm:$0xff] }
 0x70b   : > { %7873 = vmatprep.mubr.f32.mxu0 %v13458_v9  ;;  %9313 = vmatpush3.bf16.msra.mxu0 %v13456_v7  ;;  %13471 = vst [vmem:[#allocation25_spill] sm:$0xff] %v11785_v35  ;;  %v11790_v9 = vld [vmem:[%s12989_s3 + $0x28] sm:$0xff] }
 0x70c   : > { %9315 = vmatprep.subr.bf16.mxu0 %v13459_v5  ;;  %13472 = vst [vmem:[#allocation27_spill] sm:$0xff] %v11790_v9 }
 0x70e   : > { %7874 = vmatmul.mubr.f32.gmra.mrb[4].mxu0 %v13460_v53  ;;  %v13178_v53 = vand.u32 4294901760, %v11790_v9 }
 0x70f   : > { %7876 = vmatprep.mubr.f32.mxu0 %v2139_v45  ;;  %9317 = vmatpush3.bf16.msra.mxu0 %v13459_v5  ;;  %v13464_v45 = vld [vmem:[#allocation35_spill] sm:$0xff]  ;;  %v13181_v5 = vand.u32 4294901760, %v11785_v35 }
 0x710   : > { %9319 = vmatprep.subr.bf16.mxu0 %v13461_v26 }
 0x712   : > { %7877 = vmatmul.mubr.f32.gmra.mrb[6].mxu0 %v13462_v4  ;;  %v11805_v4 = vld [vmem:[%s12989_s3 + $0x30] sm:$0xff] }
 0x713   : > { %7879 = vmatprep.mubr.f32.mxu0 %v2159_v61  ;;  %9321 = vmatpush3.bf16.msra.mxu0 %v13461_v26  ;;  %v11800_v26 = vpack.c.bf16 %v13178_v53, %v13181_v5  ;;  %13474 = vst [vmem:[#allocation32_spill] sm:$0xff] %v11805_v4 }
 0x714   : > { %9323 = vmatprep.subr.bf16.mxu0 %v13463_v30 }
 0x715   : > { %13473 = vst [vmem:[#allocation31_spill] sm:$0xff] %v11800_v26 }
 0x716   : > { %7880 = vmatmul.mubr.f32.gmra.mrb[8].mxu0 %v2169_v51  ;;  %v11747_v51 = vld [vmem:[%s12989_s3] sm:$0xff] }
 0x717   : > { %9325 = vmatpush3.bf16.msra.mxu0 %v13463_v30  ;;  %7914 = vmatprep.mubr.f32.mxu0 %v11477_v27  ;;  %v13185_v33 = vand.u32 4294901760, %v11747_v51  ;;  %v11810_v30 = vld [vmem:[%s12989_s3 + $0x38] sm:$0xff] }
 0x718   : > { %9327 = vmatprep.subr.bf16.mxu0 %v13464_v45  ;;  %13475 = vst [vmem:[#allocation33_spill] sm:$0xff] %v11810_v30 }
 0x71b   : > { %9329 = vmatpush3.bf16.msra.mxu0 %v13464_v45  ;;  %v13177_v45 = vand.u32 4294901760, %v11805_v4 }
 0x71c   : > { %9331 = vmatprep.subr.bf16.mxu0 %v13465_v46 }
 0x71f   : > { %9333 = vmatpush3.bf16.msra.mxu0 %v13465_v46  ;;  %v13176_v46 = vand.u32 4294901760, %v11810_v30 }
 0x720   : > { %9335 = vmatprep.subr.bf16.mxu0 %v13466_v17 }
 0x723   : > { %9337 = vmatpush3.bf16.msra.mxu0 %v13466_v17  ;;  %v11820_v17 = vpack.c.bf16 %v13176_v46, %v13177_v45  ;;  %v11892_v46 = vld [vmem:[%s12989_s3 + $0x78] sm:$0xff] }
 0x724   : > { %9339 = vmatprep.subr.bf16.mxu0 %v13467_v58  ;;  %13487 = vst [vmem:[#allocation66_spill] sm:$0xff] %v11892_v46  ;;  %v13188_v53 = vand.u32 4294901760, %v11892_v46 }
 0x725   : > { %13476 = vst [vmem:[#allocation34_spill] sm:$0xff] %v11820_v17 }
 0x727   : > { %9341 = vmatpush3.bf16.msra.mxu0 %v13467_v58  ;;  %v11826_v58 = vld [vmem:[%s12989_s3 + $0x40] sm:$0xff] }
 0x728   : > { %9343 = vmatprep.subr.bf16.mxu0 %v10459_v57  ;;  %13477 = vst [vmem:[#allocation35_spill] sm:$0xff] %v11826_v58 }
 0x72a   : > { %7915 = vmatmul.mubr.f32.vlgmr.msra.gmra.mrb[2].mxu0 %v11474_v20 }
 0x72b   : > { %7917 = vmatprep.mubr.f32.mxu0 %v11520_v22  ;;  %9345 = vmatpush3.bf16.msra.mxu0 %v10459_v57  ;;  %v10278_v57 = vmov 4  }
 0x72c   : > { %9347 = vmatprep.subr.bf16.mxu0 %v10476_v63  ;;  %10207 = vset.pattern.permute.xlu1 %v10278_v57 }
 0x72d   : > { %10208 = vset.pattern.permute.xlu0 %v10278_v57  ;;  %v11831_v57 = vld [vmem:[%s12989_s3 + $0x48] sm:$0xff] }
 0x72e   : > { %7918 = vmatmul.mubr.f32.gmra.mrb[4].mxu0 %v11501_v16  ;;  %13478 = vst [vmem:[#allocation36_spill] sm:$0xff] %v11831_v57 }
 0x72f   : > { %7920 = vmatprep.mubr.f32.mxu0 %v11539_v11  ;;  %9349 = vmatpush3.bf16.msra.mxu0 %v10476_v63 }
 0x730   : > { %9351 = vmatprep.subr.bf16.mxu0 %v10494_v3 }
 0x732   : > { %7921 = vmatmul.mubr.f32.gmra.mrb[6].mxu0 %v11513_v47 }
 0x733   : > { %7923 = vmatprep.mubr.f32.mxu0 %v11561_v23  ;;  %9353 = vmatpush3.bf16.msra.mxu0 %v10494_v3 }
 0x734   : > { %9355 = vmatprep.subr.bf16.mxu0 %v13450_v21 }
 0x736   : > { %7924 = vmatmul.mubr.f32.gmra.mrb[8].mxu0 %v11580_v50 }
 0x737   : > { %9357 = vmatpush3.bf16.msra.mxu0 %v13450_v21  ;;  %7958 = vmatprep.mubr.f32.mxu0 %v11477_v27  ;;  %v13184_v21 = vand.u32 4294901760, %v11752_v15 }
 0x738   : > { %9359 = vmatprep.subr.bf16.mxu0 %v13452_v34 }
 0x739   : > { %v11760_v36 = vpack.c.bf16 %v13184_v21, %v13185_v33 }
 0x73b   : > { %9361 = vmatpush3.bf16.msra.mxu0 %v13452_v34  ;;  %13468 = vst [vmem:[#allocation12_spill] sm:$0xff] %v11760_v36  ;;  %v11765_v34 = vld [vmem:[%s12989_s3 + $0x10] sm:$0xff] }
 0x73c   : > { %9363 = vmatprep.subr.bf16.mxu0 %v13453_v48 }
 0x73f   : > { %9365 = vmatpush3.bf16.msra.mxu0 %v13453_v48  ;;  %v11770_v48 = vld [vmem:[%s12989_s3 + $0x18] sm:$0xff] }
 0x740   : > { %9367 = vmatprep.subr.bf16.mxu0 %v13454_v39  ;;  %13469 = vst [vmem:[#allocation15_spill] sm:$0xff] %v11770_v48 }
 0x743   : > { %9369 = vmatpush3.bf16.msra.mxu0 %v13454_v39  ;;  %v13183_v39 = vand.u32 4294901760, %v11765_v34 }
 0x744   : > { %9371 = vmatprep.subr.bf16.mxu0 %v13455_v29 }
 0x747   : > { %9373 = vmatpush3.bf16.msra.mxu0 %v13455_v29  ;;  %v13182_v29 = vand.u32 4294901760, %v11770_v48 }
 0x748   : > { %9567 = vmatprep.subr.bf16.mxu0 %v11760_v36 }
 0x749   : > { %v11780_v7 = vpack.c.bf16 %v13182_v29, %v13183_v39 }
 0x74a   : > { %7959 = vmatmul.mubr.f32.vlgmr.msra.gmra.mrb[2].mxu0 %v11474_v20 }
 0x74b   : > { %7961 = vmatprep.mubr.f32.mxu0 %v11520_v22  ;;  %9569 = vmatpush3.bf16.msra.mxu0 %v11760_v36  ;;  %13470 = vst [vmem:[#allocation19_spill] sm:$0xff] %v11780_v7 }
 0x74c   : > { %9571 = vmatprep.subr.bf16.mxu0 %v11780_v7 }
 0x74e   : > { %7962 = vmatmul.mubr.f32.gmra.mrb[4].mxu0 %v11501_v16 }
 0x74f   : > { %7964 = vmatprep.mubr.f32.mxu0 %v11539_v11  ;;  %9573 = vmatpush3.bf16.msra.mxu0 %v11780_v7 }
 0x750   : > { %9575 = vmatprep.subr.bf16.mxu0 %v11800_v26 }
 0x752   : > { %7965 = vmatmul.mubr.f32.gmra.mrb[6].mxu0 %v11513_v47 }
 0x753   : > { %7967 = vmatprep.mubr.f32.mxu0 %v11561_v23  ;;  %9577 = vmatpush3.bf16.msra.mxu0 %v11800_v26 }
 0x754   : > { %9579 = vmatprep.subr.bf16.mxu0 %v11820_v17 }
 0x756   : > { %7968 = vmatmul.mubr.f32.gmra.mrb[8].mxu0 %v11580_v50 }
 0x757   : > { %9581 = vmatpush3.bf16.msra.mxu0 %v11820_v17 }
 0x81d   : > { %v11712_v63 = vpop.f32.mrb[2].mxu0 }
 0x81e   : > { %v11714_v3 = vpop.f32.mrb[3].mxu0  ;;  %v2959_v20 = vmul.f32 %v11712_v63, %v11285_v25 }
 0x81f   : > { %v2958_v16 = vmul.f32 %v11714_v3, %v11288_v19 }
 0x820   : > { %2968 = vadd.xlane.f32.xlu0 %v2959_v20  ;;  %v13173_v20 = vand.u32 4294901760, %v11826_v58 }
 0x821   : > { %2966 = vadd.xlane.f32.xlu1 %v2958_v16  ;;  %v11720_v27 = vpop.f32.mrb[4].mxu0  ;;  %v13172_v16 = vand.u32 4294901760, %v11831_v57 }
 0x822   : > { %v11722_v23 = vpop.f32.mrb[5].mxu0  ;;  %v2961_v47 = vmul.f32 %v11720_v27, %v11285_v25 }
 0x823   : > { %v2960_v54 = vmul.f32 %v11722_v23, %v11288_v19 }
 0x824   : > { %2972 = vadd.xlane.f32.xlu0 %v2961_v47  ;;  %v11841_v47 = vpack.c.bf16 %v13172_v16, %v13173_v20  ;;  %v11872_v16 = vld [vmem:[%s12989_s3 + $0x68] sm:$0xff] }
 0x825   : > { %2970 = vadd.xlane.f32.xlu1 %v2960_v54  ;;  %v11728_v22 = vpop.f32.mrb[6].mxu0  ;;  %v11846_v54 = vld [vmem:[%s12989_s3 + $0x50] sm:$0xff]  ;;  %13484 = vst [vmem:[#allocation63_spill] sm:$0xff] %v11872_v16  ;;  %v13179_v20 = vand.u32 4294901760, %v11872_v16 }
 0x826   : > { %v11730_v11 = vpop.f32.mrb[7].mxu0  ;;  %v2963_v38 = vmul.f32 %v11728_v22, %v11285_v25  ;;  %13479 = vst [vmem:[#allocation37_spill] sm:$0xff] %v11841_v47  ;;  %13480 = vst [vmem:[#allocation38_spill] sm:$0xff] %v11846_v54  ;;  %9583 = vmatprep.subr.bf16.mxu0 %v11841_v47 }
 0x827   : > { %v2962_v50 = vmul.f32 %v11730_v11, %v11288_v19  ;;  %9585 = vmatpush3.bf16.msra.mxu0 %v11841_v47 }
 0x828   : > { %2976 = vadd.xlane.f32.xlu0 %v2963_v38  ;;  %v11851_v38 = vld [vmem:[%s12989_s3 + $0x58] sm:$0xff] }
 0x829   : > { %2974 = vadd.xlane.f32.xlu1 %v2962_v50  ;;  %v11736_v18 = vpop.f32.mrb[8].mxu0  ;;  %13481 = vst [vmem:[#allocation60_spill] sm:$0xff] %v11851_v38  ;;  %v13174_v50 = vand.u32 4294901760, %v11851_v38 }
 0x82a   : > { %v11738_v61 = vpop.f32.mrb[9].mxu0  ;;  %v2965_v42 = vmul.f32 %v11736_v18, %v11285_v25 }
 0x82b   : > { %v2964_v6 = vmul.f32 %v11738_v61, %v11288_v19 }
 0x82c   : > { %2980 = vadd.xlane.f32.xlu0 %v2965_v42 }
 0x82d   : > { %2978 = vadd.xlane.f32.xlu1 %v2964_v6  ;;  %v11867_v6 = vld [vmem:[%s12989_s3 + $0x60] sm:$0xff] }
 0x82e   : > { %13483 = vst [vmem:[#allocation62_spill] sm:$0xff] %v11867_v6 }
 0x83e   : > { %1954 = vperm.xlu1 %10207, %v11452_v32   ;;  %v13175_v32 = vand.u32 4294901760, %v11846_v54 }
 0x840   : > { %v11862_v42 = vpack.c.bf16 %v13174_v50, %v13175_v32  ;;  %v11887_v32 = vld [vmem:[%s12989_s3 + $0x70] sm:$0xff] }
 0x841   : > { %13486 = vst [vmem:[#allocation65_spill] sm:$0xff] %v11887_v32  ;;  %v13189_v45 = vand.u32 4294901760, %v11887_v32 }
 0x842   : > { %1959 = vperm.xlu0 %10208, %v11450_v62   ;;  %13482 = vst [vmem:[#allocation61_spill] sm:$0xff] %v11862_v42  ;;  %9587 = vmatprep.subr.bf16.mxu0 %v11862_v42  ;;  %v13180_v62 = vand.u32 4294901760, %v11867_v6 }
 0x843   : > { %9589 = vmatpush3.bf16.msra.mxu0 %v11862_v42 }
 0x844   : > { %v11882_v50 = vpack.c.bf16 %v13179_v20, %v13180_v62  ;;  %v11902_v20 = vpack.c.bf16 %v13188_v53, %v13189_v45 }
 0x846   : > { %13485 = vst [vmem:[#allocation64_spill] sm:$0xff] %v11882_v50  ;;  %9591 = vmatprep.subr.bf16.mxu0 %v11882_v50  ;;  %13488 = vst [vmem:[#allocation67_spill] sm:$0xff] %v11902_v20 }
 0x847   : > { %9593 = vmatpush3.bf16.msra.mxu0 %v11882_v50 }
 0x848   : > { %9595 = vmatprep.subr.bf16.mxu0 %v11902_v20 }
 0x84b   : > { %9597 = vmatpush3.bf16.msra.mxu0 %v11902_v20 }
 0x8ad   : > { %v2969_v62 = vpop.xlane.xlu0 %2968 }
 0x8ae   : > { %v2983_v5 = vsub.f32 %v11712_v63, %v2969_v62  ;;  %v2967_v29 = vpop.xlane.xlu1 %2966 }
 0x8af   : > { %v2982_v39 = vsub.f32 %v11714_v3, %v2967_v29 }
 0x8b0   : > { %v11909_v21 = vmul.f32 %v2983_v5, %v11285_v25 }
 0x8b1   : > { %v2990_v33 = vmul.f32 %v2982_v39, %v11288_v19  ;;  %v2973_v55 = vpop.xlane.xlu0 %2972 }
 0x8b2   : > { %v11913_v0 = vand.u32 4294901760, %v11909_v21  ;;  %v2985_v53 = vsub.f32 %v11720_v27, %v2973_v55  ;;  %v2971_v45 = vpop.xlane.xlu1 %2970 }
 0x8b3   : > { %v11916_v2 = vand.u32 4294901760, %v2990_v33  ;;  %v2984_v43 = vsub.f32 %v11722_v23, %v2971_v45 }
 0x8b4   : > { %v11921_v63 = vsub.f32 %v11909_v21, %v11913_v0  ;;  %v11924_v3 = vmul.f32 %v2985_v53, %v11285_v25 }
 0x8b5   : > { %v11927_v39 = vsub.f32 %v2990_v33, %v11916_v2  ;;  %v2992_v29 = vmul.f32 %v2984_v43, %v11288_v19  ;;  %v2977_v5 = vpop.xlane.xlu0 %2976 }
 0x8b6   : > { %v13199_v55 = vand.u32 4294901760, %v11921_v63  ;;  %v11932_v27 = vand.u32 4294901760, %v11924_v3  ;;  %v2987_v23 = vsub.f32 %v11728_v22, %v2977_v5  ;;  %v2975_v45 = vpop.xlane.xlu1 %2974 }
 0x8b7   : > { %v11935_v62 = vand.u32 4294901760, %v2992_v29  ;;  %v2986_v40 = vsub.f32 %v11730_v11, %v2975_v45  ;;  %v13212_v53 = vand.u32 4294901760, %v11927_v39 }
 0x8b8   : > { %v3092_v20 = vsub.f32 %v11921_v63, %v13199_v55  ;;  %v11944_v43 = vsub.f32 %v11924_v3, %v11932_v27  ;;  %v2995_v50 = vmul.f32 %v2987_v23, %v11285_v25 }
 0x8b9   : > { %v11948_v42 = vsub.f32 %v2992_v29, %v11935_v62  ;;  %v2994_v22 = vmul.f32 %v2986_v40, %v11288_v19  ;;  %v2981_v5 = vpop.xlane.xlu0 %2980  ;;  %v3082_v11 = vsub.f32 %v11927_v39, %v13212_v53 }
 0x8ba   : > { %v11954_v45 = vand.u32 4294901760, %v2995_v50  ;;  %v2989_v55 = vsub.f32 %v11736_v18, %v2981_v5  ;;  %v2979_v47 = vpop.xlane.xlu1 %2978  ;;  %v13217_v17 = vand.u32 4294901760, %v11944_v43  ;;  %v3093_v53 = vand.u32 4294901760, %v3092_v20  ;;  %v6437_v18 = vld [vmem:[%s12992_s6] ss:$0 sm:$0xff] }
 0x8bb   : > { %v11958_v26 = vand.u32 4294901760, %v2994_v22  ;;  %v2988_v23 = vsub.f32 %v11738_v61, %v2979_v47  ;;  %v3083_v7 = vand.u32 4294901760, %v3082_v11  ;;  %v13222_v36 = vand.u32 4294901760, %v11948_v42 }
 0x8bc   : > { %v11963_v40 = vsub.f32 %v2995_v50, %v11954_v45  ;;  %v2997_v46 = vmul.f32 %v2989_v55, %v11285_v25  ;;  %v3112_v5 = vsub.f32 %v11944_v43, %v13217_v17 }
 0x8bd   : > { %v11973_v32 = vsub.f32 %v2994_v22, %v11958_v26  ;;  %v2996_v61 = vmul.f32 %v2988_v23, %v11288_v19  ;;  %8002 = vmatprep.mubr.f32.mxu1 %v3083_v7  ;;  %v3102_v47 = vsub.f32 %v11948_v42, %v13222_v36  ;;  %v13489_v23 = vld [vmem:[#allocation39_spill] sm:$0xff] }
 0x8be   : > { %v11979_v55 = vand.u32 4294901760, %v2997_v46  ;;  %8003 = vmatmul.mubr.f32.vlgmr.msra.gmra.mrb[4].mxu1 %v3093_v53  ;;  %v1955_v20 = vpop.permute.xlu1 %1954  ;;  %v13235_v11 = vand.u32 4294901760, %v11963_v40  ;;  %v3113_v36 = vand.u32 4294901760, %v3112_v5 }
 0x8bf   : > { %v11982_v16 = vand.u32 4294901760, %v2996_v61  ;;  %9409 = vmatpush3.bf16.msra.mxu1 %v11087_v24  ;;  %v1962_v17 = vsub.f32 %v6437_v18, %v1955_v20  ;;  %v3103_v6 = vand.u32 4294901760, %v3102_v47  ;;  %v13240_v38 = vand.u32 4294901760, %v11973_v32 }
 0x8c0   : > { %v11987_v7 = vsub.f32 %v2997_v46, %v11979_v55  ;;  %9411 = vmatprep.subr.bf16.mxu1 %v13489_v23  ;;  %v3132_v53 = vsub.f32 %v11963_v40, %v13235_v11 }
 0x8c1   : > { %v11994_v54 = vsub.f32 %v2996_v61, %v11982_v16  ;;  %8005 = vmatprep.mubr.f32.mxu1 %v3103_v6  ;;  %v1960_v57 = vpop.permute.xlu0 %1959  ;;  %v3122_v47 = vsub.f32 %v11973_v32, %v13240_v38  ;;  %v1964_v20 = vmul.f32 %v1962_v17, %v11288_v19  ;;  %v12000_v58 = vmul.f32 %v2990_v33, %v1962_v17  ;;  %v13490_v33 = vld [vmem:[#allocation40_spill] sm:$0xff] }
 0x8c2   : > { %v1963_v30 = vsub.f32 %v6437_v18, %v1960_v57  ;;  %8006 = vmatmul.mubr.f32.gmra.mrb[6].mxu1 %v3113_v36  ;;  %v3133_v5 = vand.u32 4294901760, %v3132_v53  ;;  %v13242_v4 = vand.u32 4294901760, %v11987_v7  ;;  %v12003_v9 = vmul.f32 %v2992_v29, %v1962_v17 }
 0x8c3   : > { %9413 = vmatpush3.bf16.msra.mxu1 %v13489_v23  ;;  %v3123_v11 = vand.u32 4294901760, %v3122_v47  ;;  %v13243_v6 = vand.u32 4294901760, %v11994_v54  ;;  %v12007_v35 = vand.u32 4294901760, %v1964_v20  ;;  %v12009_v48 = vmul.f32 %v2994_v22, %v1962_v17 }
 0x8c4   : > { %v1965_v38 = vmul.f32 %v1963_v30, %v11285_v25  ;;  %9415 = vmatprep.subr.bf16.mxu1 %v13490_v33  ;;  %v3152_v36 = vsub.f32 %v11987_v7, %v13242_v4  ;;  %v12017_v57 = vmul.f32 %v11909_v21, %v1963_v30  ;;  %v12020_v29 = vmul.f32 %v11924_v3, %v1963_v30 }
 0x8c5   : > { %8008 = vmatprep.mubr.f32.mxu1 %v3123_v11  ;;  %v3142_v22 = vsub.f32 %v11994_v54, %v13243_v6  ;;  %v12026_v18 = vsub.f32 %v1964_v20, %v12007_v35  ;;  %v12028_v53 = vmul.f32 %v2997_v46, %v1963_v30  ;;  %v12030_v47 = vmul.f32 %v2995_v50, %v1963_v30  ;;  %v13491_v6 = vld [vmem:[#allocation14_spill] sm:$0xff]  ;;  %v13492_v50 = vld [vmem:[#allocation17_spill] sm:$0xff] }
 0x8c6   : > { %v12032_v23 = vand.u32 4294901760, %v1965_v38  ;;  %8009 = vmatmul.mubr.f32.gmra.mrb[8].mxu1 %v3133_v5  ;;  %v12034_v21 = vmul.f32 %v2996_v61, %v1962_v17  ;;  %v3153_v20 = vand.u32 4294901760, %v3152_v36  ;;  %v13493_v5 = vld [vmem:[#allocation18_spill] sm:$0xff]  ;;  %v13494_v36 = vld [vmem:[#allocation21_spill] sm:$0xff] }
 0x8c7   : > { %9417 = vmatpush3.bf16.msra.mxu1 %v13490_v33  ;;  %v3143_v3 = vand.u32 4294901760, %v3142_v22  ;;  %v13246_v11 = vand.u32 4294901760, %v12026_v18  ;;  %v13495_v22 = vld [vmem:[#allocation22_spill] sm:$0xff] }
 0x8c8   : > { %v12039_v4 = vsub.f32 %v1965_v38, %v12032_v23  ;;  %9419 = vmatprep.subr.bf16.mxu1 %v13491_v6 }
 0x8c9   : > { %8011 = vmatprep.mubr.f32.mxu1 %v3143_v3  ;;  %v4088_v30 = vsub.f32 %v12026_v18, %v13246_v11  ;;  %v13496_v3 = vld [vmem:[#allocation43_spill] sm:$0xff] }
 0x8ca   : > { %8012 = vmatmul.mubr.f32.gmra.mrb[10].mxu1 %v3153_v20  ;;  %v13244_v46 = vand.u32 4294901760, %v12039_v4  ;;  %v13497_v20 = vld [vmem:[#allocation44_spill] sm:$0xff] }
 0x8cb   : > { %9421 = vmatpush3.bf16.msra.mxu1 %v13491_v6  ;;  %8046 = vmatprep.mubr.f32.mxu1 %v11916_v2  ;;  %v4089_v17 = vand.u32 4294901760, %v4088_v30  ;;  %v13498_v30 = vld [vmem:[#allocation45_spill] sm:$0xff] }
 0x8cc   : > { %9423 = vmatprep.subr.bf16.mxu1 %v13492_v50  ;;  %v4098_v38 = vsub.f32 %v12039_v4, %v13244_v46 }
 0x8cd   : > { %8266 = vmatprep.mubr.f32.mxu0 %v4089_v17  ;;  %v13499_v17 = vand.u32 4294901760, %v11927_v39 }
 0x8ce   : > { %v4099_v61 = vand.u32 4294901760, %v4098_v38  ;;  %v13501_v38 = vand.u32 4294901760, %v11948_v42 }
 0x8cf   : > { %9425 = vmatpush3.bf16.msra.mxu1 %v13492_v50 }
 0x8d0   : > { %8267 = vmatmul.mubr.f32.vlgmr.msra.gmra.mrb[10].mxu0 %v4099_v61  ;;  %9427 = vmatprep.subr.bf16.mxu1 %v13493_v5  ;;  %v13502_v61 = vand.u32 4294901760, %v11944_v43 }
 0x8d3   : > { %9429 = vmatpush3.bf16.msra.mxu1 %v13493_v5 }
 0x8d4   : > { %9431 = vmatprep.subr.bf16.mxu1 %v13494_v36 }
 0x8d7   : > { %9433 = vmatpush3.bf16.msra.mxu1 %v13494_v36 }
 0x8d8   : > { %9435 = vmatprep.subr.bf16.mxu1 %v13495_v22 }
 0x8db   : > { %9437 = vmatpush3.bf16.msra.mxu1 %v13495_v22 }
 0x8dc   : > { %9439 = vmatprep.subr.bf16.mxu1 %v11253_v8 }
 0x8de   : > { %8047 = vmatmul.mubr.f32.vlgmr.msra.gmra.mrb[4].mxu1 %v11913_v0 }
 0x8df   : > { %8049 = vmatprep.mubr.f32.mxu1 %v11935_v62  ;;  %9441 = vmatpush3.bf16.msra.mxu1 %v11253_v8 }
 0x8e0   : > { %9443 = vmatprep.subr.bf16.mxu1 %v11258_v56 }
 0x8e2   : > { %8050 = vmatmul.mubr.f32.gmra.mrb[6].mxu1 %v11932_v27 }
 0x8e3   : > { %8052 = vmatprep.mubr.f32.mxu1 %v11958_v26  ;;  %9445 = vmatpush3.bf16.msra.mxu1 %v11258_v56 }
 0x8e4   : > { %9447 = vmatprep.subr.bf16.mxu1 %v11262_v59 }
 0x8e6   : > { %8053 = vmatmul.mubr.f32.gmra.mrb[8].mxu1 %v11954_v45 }
 0x8e7   : > { %8055 = vmatprep.mubr.f32.mxu1 %v11982_v16  ;;  %9449 = vmatpush3.bf16.msra.mxu1 %v11262_v59 }
 0x8e8   : > { %9451 = vmatprep.subr.bf16.mxu1 %v11266_v28 }
 0x8ea   : > { %8056 = vmatmul.mubr.f32.gmra.mrb[10].mxu1 %v11979_v55 }
 0x8eb   : > { %9453 = vmatpush3.bf16.msra.mxu1 %v11266_v28  ;;  %8090 = vmatprep.mubr.f32.mxu1 %v11927_v39  ;;  %v13500_v39 = vand.u32 4294901760, %v11921_v63 }
 0x8ec   : > { %9455 = vmatprep.subr.bf16.mxu1 %v11270_v13 }
 0x8ef   : > { %9457 = vmatpush3.bf16.msra.mxu1 %v11270_v13 }
 0x8f0   : > { %9459 = vmatprep.subr.bf16.mxu1 %v13496_v3 }
 0x8f3   : > { %9461 = vmatpush3.bf16.msra.mxu1 %v13496_v3 }
 0x8f4   : > { %9463 = vmatprep.subr.bf16.mxu1 %v13497_v20 }
 0x8f7   : > { %9465 = vmatpush3.bf16.msra.mxu1 %v13497_v20 }
 0x8f8   : > { %9467 = vmatprep.subr.bf16.mxu1 %v13498_v30 }
 0x8fb   : > { %9469 = vmatpush3.bf16.msra.mxu1 %v13498_v30 }
 0x8fc   : > { %9471 = vmatprep.subr.bf16.mxu1 %v13399_v31 }
 0x8fe   : > { %8091 = vmatmul.mubr.f32.vlgmr.msra.gmra.mrb[4].mxu1 %v11921_v63  ;;  %v13504_v63 = vand.u32 4294901760, %v11963_v40 }
 0x8ff   : > { %8093 = vmatprep.mubr.f32.mxu1 %v11948_v42  ;;  %9473 = vmatpush3.bf16.msra.mxu1 %v13399_v31  ;;  %v13505_v42 = vand.u32 4294901760, %v11994_v54 }
 0x900   : > { %9475 = vmatprep.subr.bf16.mxu1 %v13400_v41 }
 0x902   : > { %8094 = vmatmul.mubr.f32.gmra.mrb[6].mxu1 %v11944_v43  ;;  %v13507_v43 = vand.u32 4294901760, %v11987_v7 }
 0x903   : > { %8096 = vmatprep.mubr.f32.mxu1 %v11973_v32  ;;  %9477 = vmatpush3.bf16.msra.mxu1 %v13400_v41 }
 0x904   : > { %9479 = vmatprep.subr.bf16.mxu1 %v13401_v14 }
 0x906   : > { %8097 = vmatmul.mubr.f32.gmra.mrb[8].mxu1 %v11963_v40  ;;  %v13509_v40 = vld [vmem:[#allocation51_spill] sm:$0xff] }
 0x907   : > { %8099 = vmatprep.mubr.f32.mxu1 %v11994_v54  ;;  %9481 = vmatpush3.bf16.msra.mxu1 %v13401_v14  ;;  %v13510_v54 = vld [vmem:[#allocation52_spill] sm:$0xff] }
 0x908   : > { %9483 = vmatprep.subr.bf16.mxu1 %v13402_v60 }
 0x90a   : > { %8100 = vmatmul.mubr.f32.gmra.mrb[10].mxu1 %v11987_v7 }
 0x90b   : > { %9485 = vmatpush3.bf16.msra.mxu1 %v13402_v60  ;;  %8134 = vmatprep.mubr.f32.mxu1 %v13499_v17  ;;  %v13503_v17 = vand.u32 4294901760, %v11973_v32  ;;  %v13508_v32 = vld [vmem:[#allocation50_spill] sm:$0xff] }
 0x90c   : > { %9487 = vmatprep.subr.bf16.mxu1 %v13403_v12 }
 0x90f   : > { %9489 = vmatpush3.bf16.msra.mxu1 %v13403_v12 }
 0x910   : > { %9491 = vmatprep.subr.bf16.mxu1 %v13404_v1 }
 0x913   : > { %9493 = vmatpush3.bf16.msra.mxu1 %v13404_v1 }
 0x914   : > { %9495 = vmatprep.subr.bf16.mxu1 %v13405_v52 }
 0x917   : > { %9497 = vmatpush3.bf16.msra.mxu1 %v13405_v52 }
 0x918   : > { %9499 = vmatprep.subr.bf16.mxu1 %v13406_v10 }
 0x91b   : > { %9501 = vmatpush3.bf16.msra.mxu1 %v13406_v10 }
 0x91c   : > { %9503 = vmatprep.subr.bf16.mxu1 %v11341_v44 }
 0x91e   : > { %8135 = vmatmul.mubr.f32.vlgmr.msra.gmra.mrb[4].mxu1 %v13500_v39  ;;  %v13506_v39 = vld [vmem:[#allocation49_spill] sm:$0xff] }
 0x91f   : > { %8137 = vmatprep.mubr.f32.mxu1 %v13501_v38  ;;  %9505 = vmatpush3.bf16.msra.mxu1 %v11341_v44  ;;  %v13511_v38 = vld [vmem:[#allocation53_spill] sm:$0xff] }
 0x920   : > { %9507 = vmatprep.subr.bf16.mxu1 %v11349_v37 }
 0x922   : > { %8138 = vmatmul.mubr.f32.gmra.mrb[6].mxu1 %v13502_v61 }
 0x923   : > { %8140 = vmatprep.mubr.f32.mxu1 %v13503_v17  ;;  %9509 = vmatpush3.bf16.msra.mxu1 %v11349_v37 }
 0x924   : > { %9511 = vmatprep.subr.bf16.mxu1 %v11358_v49 }
 0x926   : > { %8141 = vmatmul.mubr.f32.gmra.mrb[8].mxu1 %v13504_v63  ;;  %v13514_v63 = vand.u32 4294901760, %v11765_v34 }
 0x927   : > { %8143 = vmatprep.mubr.f32.mxu1 %v13505_v42  ;;  %9513 = vmatpush3.bf16.msra.mxu1 %v11358_v49  ;;  %v13515_v42 = vld [vmem:[#allocation15_spill] sm:$0xff]  ;;  %v13533_v49 = vld [vmem:[#allocation62_spill] sm:$0xff] }
 0x928   : > { %9515 = vmatprep.subr.bf16.mxu1 %v13506_v39  ;;  %v13534_v37 = vand.u32 4294901760, %v13533_v49 }
 0x92a   : > { %8144 = vmatmul.mubr.f32.gmra.mrb[10].mxu1 %v13507_v43  ;;  %v13516_v43 = vand.u32 4294901760, %v13515_v42 }
 0x92b   : > { %9517 = vmatpush3.bf16.msra.mxu1 %v13506_v39  ;;  %8178 = vmatprep.mubr.f32.mxu1 %v11916_v2 }
 0x92c   : > { %9519 = vmatprep.subr.bf16.mxu1 %v13508_v32 }
 0x92f   : > { %9521 = vmatpush3.bf16.msra.mxu1 %v13508_v32 }
 0x930   : > { %9523 = vmatprep.subr.bf16.mxu1 %v13509_v40 }
 0x933   : > { %9525 = vmatpush3.bf16.msra.mxu1 %v13509_v40 }
 0x934   : > { %9527 = vmatprep.subr.bf16.mxu1 %v13510_v54 }
 0x937   : > { %9529 = vmatpush3.bf16.msra.mxu1 %v13510_v54 }
 0x938   : > { %9531 = vmatprep.subr.bf16.mxu1 %v13511_v38 }
 0x93b   : > { %9533 = vmatpush3.bf16.msra.mxu1 %v13511_v38 }
 0x93c   : > { %9535 = vmatprep.subr.bf16.mxu1 %v13399_v31 }
 0x93e   : > { %8179 = vmatmul.mubr.f32.vlgmr.msra.gmra.mrb[4].mxu1 %v11913_v0 }
 0x93f   : > { %8181 = vmatprep.mubr.f32.mxu1 %v11935_v62  ;;  %9537 = vmatpush3.bf16.msra.mxu1 %v13399_v31 }
 0x940   : > { %9539 = vmatprep.subr.bf16.mxu1 %v13400_v41 }
 0x942   : > { %8182 = vmatmul.mubr.f32.gmra.mrb[6].mxu1 %v11932_v27 }
 0x943   : > { %8184 = vmatprep.mubr.f32.mxu1 %v11958_v26  ;;  %9541 = vmatpush3.bf16.msra.mxu1 %v13400_v41 }
 0x944   : > { %9543 = vmatprep.subr.bf16.mxu1 %v13401_v14 }
 0x946   : > { %8185 = vmatmul.mubr.f32.gmra.mrb[8].mxu1 %v11954_v45 }
 0x947   : > { %8187 = vmatprep.mubr.f32.mxu1 %v11982_v16  ;;  %9545 = vmatpush3.bf16.msra.mxu1 %v13401_v14 }
 0x948   : > { %9547 = vmatprep.subr.bf16.mxu1 %v13402_v60 }
 0x94a   : > { %8188 = vmatmul.mubr.f32.gmra.mrb[10].mxu1 %v11979_v55 }
 0x94b   : > { %9549 = vmatpush3.bf16.msra.mxu1 %v13402_v60  ;;  %8222 = vmatprep.mubr.f32.mxu1 %v11916_v2 }
 0x94c   : > { %9551 = vmatprep.subr.bf16.mxu1 %v13403_v12 }
 0x94f   : > { %9553 = vmatpush3.bf16.msra.mxu1 %v13403_v12 }
 0x950   : > { %9555 = vmatprep.subr.bf16.mxu1 %v13404_v1 }
 0x953   : > { %9557 = vmatpush3.bf16.msra.mxu1 %v13404_v1 }
 0x954   : > { %9559 = vmatprep.subr.bf16.mxu1 %v13405_v52 }
 0x957   : > { %9561 = vmatpush3.bf16.msra.mxu1 %v13405_v52 }
 0x958   : > { %9563 = vmatprep.subr.bf16.mxu1 %v13406_v10 }
 0x95b   : > { %9565 = vmatpush3.bf16.msra.mxu1 %v13406_v10 }
 0x95c   : > { %9759 = vmatprep.subr.bf16.mxu1 %v13399_v31 }
 0x95e   : > { %8223 = vmatmul.mubr.f32.vlgmr.msra.gmra.mrb[4].mxu1 %v11913_v0 }
 0x95f   : > { %8225 = vmatprep.mubr.f32.mxu1 %v11935_v62  ;;  %9761 = vmatpush3.bf16.msra.mxu1 %v13399_v31 }
 0x960   : > { %9763 = vmatprep.subr.bf16.mxu1 %v13400_v41 }
 0x962   : > { %8226 = vmatmul.mubr.f32.gmra.mrb[6].mxu1 %v11932_v27  ;;  %v13513_v27 = vand.u32 4294901760, %v11752_v15 }
 0x963   : > { %8228 = vmatprep.mubr.f32.mxu1 %v11958_v26  ;;  %9765 = vmatpush3.bf16.msra.mxu1 %v13400_v41  ;;  %v13512_v26 = vand.u32 4294901760, %v11747_v51 }
 0x964   : > { %9767 = vmatprep.subr.bf16.mxu1 %v13401_v14  ;;  %v12195_v62 = vsub.f32 %v11752_v15, %v13513_v27  ;;  %v12208_v15 = vsub.f32 %v11765_v34, %v13514_v63 }
 0x966   : > { %8229 = vmatmul.mubr.f32.gmra.mrb[8].mxu1 %v11954_v45  ;;  %v13250_v27 = vand.u32 4294901760, %v12208_v15 }
 0x967   : > { %8231 = vmatprep.mubr.f32.mxu1 %v11982_v16  ;;  %9769 = vmatpush3.bf16.msra.mxu1 %v13401_v14  ;;  %v12190_v16 = vsub.f32 %v11747_v51, %v13512_v26 }
 0x968   : > { %9771 = vmatprep.subr.bf16.mxu1 %v13402_v60  ;;  %v4203_v34 = vsub.f32 %v12208_v15, %v13250_v27 }
 0x969   : > { %v13245_v45 = vand.u32 4294901760, %v12190_v16 }
 0x96a   : > { %8232 = vmatmul.mubr.f32.gmra.mrb[10].mxu1 %v11979_v55  ;;  %v13247_v55 = vand.u32 4294901760, %v12195_v62 }
 0x96b   : > { %9773 = vmatpush3.bf16.msra.mxu1 %v13402_v60  ;;  %v4189_v17 = vsub.f32 %v12190_v16, %v13245_v45 }
 0x96c   : > { %9775 = vmatprep.subr.bf16.mxu1 %v13403_v12  ;;  %v4196_v51 = vsub.f32 %v12195_v62, %v13247_v55 }
 0x96e   : > { %v4197_v26 = vand.u32 4294901760, %v4196_v51  ;;  %v13519_v51 = vld [vmem:[#allocation27_spill] sm:$0xff] }
 0x96f   : > { %9777 = vmatpush3.bf16.msra.mxu1 %v13403_v12  ;;  %v13520_v38 = vand.u32 4294901760, %v13519_v51 }
 0x970   : > { %9779 = vmatprep.subr.bf16.mxu1 %v13404_v1 }
 0x971   : > { %v12231_v54 = vsub.f32 %v13519_v51, %v13520_v38 }
 0x973   : > { %9781 = vmatpush3.bf16.msra.mxu1 %v13404_v1  ;;  %v13255_v40 = vand.u32 4294901760, %v12231_v54 }
 0x974   : > { %9783 = vmatprep.subr.bf16.mxu1 %v13405_v52 }
 0x975   : > { %v4224_v38 = vsub.f32 %v12231_v54, %v13255_v40 }
 0x977   : > { %9785 = vmatpush3.bf16.msra.mxu1 %v13405_v52 }
 0x978   : > { %9787 = vmatprep.subr.bf16.mxu1 %v13406_v10 }
 0x97b   : > { %9789 = vmatpush3.bf16.msra.mxu1 %v13406_v10 }
 0x97c   : > { %9791 = vmatprep.subr.bf16.mxu1 %v11087_v24 }
 0xa31   : > { %v8224_v2 = vpop.f32.mrb[4].mxu1 }
 0xa32   : > { %3955 = vperm.xlu1 %10207, %v8224_v2   ;;  %v3894_v0 = vpop.f32.mrb[5].mxu1  ;;  %v12213_v2 = vsub.f32 %v13515_v42, %v13516_v43  ;;  %v13517_v42 = vld [vmem:[#allocation25_spill] sm:$0xff] }
 0xa33   : > { %v13518_v43 = vand.u32 4294901760, %v13517_v42 }
 0xa34   : > { %v13252_v46 = vand.u32 4294901760, %v12213_v2 }
 0xa35   : > { %v8227_v7 = vpop.f32.mrb[6].mxu1 }
 0xa36   : > { %3950 = vperm.xlu1 %10207, %v3894_v0   ;;  %v3906_v61 = vpop.f32.mrb[7].mxu1  ;;  %v4190_v0 = vand.u32 4294901760, %v4189_v17  ;;  %v4210_v63 = vsub.f32 %v12213_v2, %v13252_v46  ;;  %v12226_v17 = vsub.f32 %v13517_v42, %v13518_v43 }
 0xa38   : > { %v9598_v55 = vpack.c.bf16 %v4197_v26, %v4190_v0  ;;  %v4211_v0 = vand.u32 4294901760, %v4210_v63  ;;  %v13254_v26 = vand.u32 4294901760, %v12226_v17 }
 0xa39   : > { %v8230_v45 = vpop.f32.mrb[8].mxu1 }
 0xa3a   : > { %3965 = vperm.xlu1 %10207, %v8227_v7   ;;  %v3918_v11 = vpop.f32.mrb[9].mxu1  ;;  %9599 = vmatprep.subr.bf16.mxu0 %v9598_v55  ;;  %v4204_v7 = vand.u32 4294901760, %v4203_v34  ;;  %v4217_v42 = vsub.f32 %v12226_v17, %v13254_v26  ;;  %v13521_v34 = vld [vmem:[#allocation32_spill] sm:$0xff] }
 0xa3b   : > { %9601 = vmatpush3.bf16.msra.mxu0 %v9598_v55  ;;  %v13522_v63 = vand.u32 4294901760, %v13521_v34  ;;  %v13523_v55 = vld [vmem:[#allocation33_spill] sm:$0xff] }
 0xa3c   : > { %v9602_v32 = vpack.c.bf16 %v4211_v0, %v4204_v7  ;;  %v13524_v51 = vand.u32 4294901760, %v13523_v55  ;;  %v4225_v7 = vand.u32 4294901760, %v4224_v38 }
 0xa3d   : > { %v8233_v27 = vpop.f32.mrb[10].mxu1  ;;  %v12244_v43 = vsub.f32 %v13521_v34, %v13522_v63 }
 0xa3e   : > { %3960 = vperm.xlu1 %10207, %v3906_v61   ;;  %3985 = vperm.xlu0 %10208, %v8233_v27   ;;  %v3930_v46 = vpop.f32.mrb[11].mxu1  ;;  %v12249_v61 = vsub.f32 %v13523_v55, %v13524_v51  ;;  %v4218_v27 = vand.u32 4294901760, %v4217_v42 }
 0xa3f   : > { %9603 = vmatprep.subr.bf16.mxu0 %v9602_v32  ;;  %v13256_v0 = vand.u32 4294901760, %v12244_v43 }
 0xa40   : > { %9605 = vmatpush3.bf16.msra.mxu0 %v9602_v32  ;;  %v13258_v26 = vand.u32 4294901760, %v12249_v61  ;;  %v9606_v40 = vpack.c.bf16 %v4225_v7, %v4218_v27  ;;  %v13525_v32 = vld [vmem:[#allocation35_spill] sm:$0xff] }
 0xa41   : > { %v4231_v34 = vsub.f32 %v12244_v43, %v13256_v0  ;;  %v13526_v42 = vand.u32 4294901760, %v13525_v32 }
 0xa42   : > { %3975 = vperm.xlu1 %10207, %v8230_v45   ;;  %v4238_v63 = vsub.f32 %v12249_v61, %v13258_v26  ;;  %9607 = vmatprep.subr.bf16.mxu0 %v9606_v40  ;;  %v13527_v45 = vld [vmem:[#allocation36_spill] sm:$0xff] }
 0xa43   : > { %v4232_v55 = vand.u32 4294901760, %v4231_v34  ;;  %v12262_v38 = vsub.f32 %v13525_v32, %v13526_v42  ;;  %v13528_v27 = vand.u32 4294901760, %v13527_v45  ;;  %v13529_v34 = vld [vmem:[#allocation38_spill] sm:$0xff] }
 0xa44   : > { %v4239_v51 = vand.u32 4294901760, %v4238_v63  ;;  %9609 = vmatpush3.bf16.msra.mxu0 %v9606_v40  ;;  %v13530_v63 = vand.u32 4294901760, %v13529_v34 }
 0xa45   : > { %v12267_v7 = vsub.f32 %v13527_v45, %v13528_v27  ;;  %v13259_v39 = vand.u32 4294901760, %v12262_v38 }
 0xa46   : > { %3970 = vperm.xlu1 %10207, %v3918_v11   ;;  %v9610_v0 = vpack.c.bf16 %v4239_v51, %v4232_v55  ;;  %v12280_v32 = vsub.f32 %v13529_v34, %v13530_v63  ;;  %v13531_v55 = vld [vmem:[#allocation60_spill] sm:$0xff]  ;;  %v12295_v34 = vsub.f32 %v13533_v49, %v13534_v37  ;;  %v13535_v63 = vld [vmem:[#allocation63_spill] sm:$0xff]  ;;  %v13537_v49 = vld [vmem:[#allocation65_spill] sm:$0xff] }
 0xa47   : > { %v13260_v26 = vand.u32 4294901760, %v12267_v7  ;;  %v4245_v11 = vsub.f32 %v12262_v38, %v13259_v39  ;;  %v13532_v51 = vand.u32 4294901760, %v13531_v55  ;;  %v13536_v44 = vand.u32 4294901760, %v13535_v63 }
 0xa48   : > { %9611 = vmatprep.subr.bf16.mxu0 %v9610_v0  ;;  %v13268_v45 = vand.u32 4294901760, %v12280_v32 }
 0xa49   : > { %9613 = vmatpush3.bf16.msra.mxu0 %v9610_v0  ;;  %v4252_v40 = vsub.f32 %v12267_v7, %v13260_v26  ;;  %v12285_v42 = vsub.f32 %v13531_v55, %v13532_v51  ;;  %v12300_v55 = vsub.f32 %v13535_v63, %v13536_v44  ;;  %v13272_v51 = vand.u32 4294901760, %v12295_v34 }
 0xa4a   : > { %3980 = vperm.xlu1 %10207, %v3930_v46   ;;  %v4246_v46 = vand.u32 4294901760, %v4245_v11  ;;  %v4259_v26 = vsub.f32 %v12280_v32, %v13268_v45  ;;  %v13538_v63 = vand.u32 4294901760, %v13537_v49 }
 0xa4b   : > { %v4253_v0 = vand.u32 4294901760, %v4252_v40  ;;  %v13267_v27 = vand.u32 4294901760, %v12285_v42  ;;  %v4273_v37 = vsub.f32 %v12295_v34, %v13272_v51 }
 0xa4c   : > { %v4260_v40 = vand.u32 4294901760, %v4259_v26  ;;  %v13539_v26 = vld [vmem:[#allocation66_spill] sm:$0xff] }
 0xa4d   : > { %v9614_v39 = vpack.c.bf16 %v4253_v0, %v4246_v46  ;;  %v4266_v11 = vsub.f32 %v12285_v42, %v13267_v27  ;;  %v13273_v46 = vand.u32 4294901760, %v12300_v55  ;;  %v12316_v27 = vsub.f32 %v13537_v49, %v13538_v63 }
 0xa4e   : > { %v13540_v45 = vand.u32 4294901760, %v13539_v26 }
 0xa4f   : > { %9615 = vmatprep.subr.bf16.mxu0 %v9614_v39  ;;  %v4267_v0 = vand.u32 4294901760, %v4266_v11  ;;  %v4280_v44 = vsub.f32 %v12300_v55, %v13273_v46  ;;  %v4274_v11 = vand.u32 4294901760, %v4273_v37  ;;  %v13275_v1 = vand.u32 4294901760, %v12316_v27 }
 0xa50   : > { %9617 = vmatpush3.bf16.msra.mxu0 %v9614_v39  ;;  %v12321_v10 = vsub.f32 %v13539_v26, %v13540_v45  ;;  %v12333_v37 = vpack.c.bf16 %v12195_v62, %v12190_v16  ;;  %v12350_v26 = vpack.c.bf16 %v12267_v7, %v12262_v38 }
 0xa51   : > { %v9618_v39 = vpack.c.bf16 %v4267_v0, %v4260_v40  ;;  %v4281_v52 = vand.u32 4294901760, %v4280_v44  ;;  %v4287_v49 = vsub.f32 %v12316_v27, %v13275_v1  ;;  %v12342_v44 = vpack.c.bf16 %v12231_v54, %v12226_v17 }
 0xa52   : > { %v13274_v51 = vand.u32 4294901760, %v12321_v10 }
 0xa53   : > { %9619 = vmatprep.subr.bf16.mxu0 %v9618_v39  ;;  %v9622_v46 = vpack.c.bf16 %v4281_v52, %v4274_v11  ;;  %v4288_v45 = vand.u32 4294901760, %v4287_v49  ;;  %v12337_v52 = vpack.c.bf16 %v12213_v2, %v12208_v15  ;;  %v12358_v11 = vpack.c.bf16 %v12300_v55, %v12295_v34 }
 0xa54   : > { %9621 = vmatpush3.bf16.msra.mxu0 %v9618_v39  ;;  %v4294_v63 = vsub.f32 %v12321_v10, %v13274_v51  ;;  %v12354_v39 = vpack.c.bf16 %v12285_v42, %v12280_v32  ;;  %v12362_v49 = vpack.c.bf16 %v12321_v10, %v12316_v27 }
 0xa55   : > { %9623 = vmatprep.subr.bf16.mxu0 %v9622_v46 }
 0xa56   : > { %v4295_v40 = vand.u32 4294901760, %v4294_v63 }
 0xa58   : > { %9625 = vmatpush3.bf16.msra.mxu0 %v9622_v46  ;;  %v9626_v0 = vpack.c.bf16 %v4295_v40, %v4288_v45  ;;  %v12346_v46 = vpack.c.bf16 %v12249_v61, %v12244_v43 }
 0xa5a   : > { %9627 = vmatprep.subr.bf16.mxu0 %v9626_v0 }
 0xa5c   : > { %9629 = vmatpush3.bf16.msra.mxu0 %v9626_v0 }
 0xa5d   : > { %9631 = vmatprep.subr.bf16.mxu0 %v12333_v37 }
 0xab1   : > { %v3956_v63 = vpop.permute.xlu1 %3955 }
 0xab2   : > { %v3989_v45 = vmul.f32 %v3956_v63, %v11285_v25 }
 0xab4   : > { %v3997_v40 = vsub.f32 %v12017_v57, %v3989_v45 }
 0xab5   : > { %v3951_v0 = vpop.permute.xlu1 %3950 }
 0xab6   : > { %v12366_v51 = vand.u32 4294901760, %v3997_v40  ;;  %v3988_v1 = vmul.f32 %v3951_v0, %v11288_v19 }
 0xab8   : > { %v12370_v12 = vsub.f32 %v3997_v40, %v12366_v51  ;;  %v3996_v60 = vsub.f32 %v12000_v58, %v3988_v1 }
 0xab9   : > { %v3966_v14 = vpop.permute.xlu1 %3965 }
 0xaba   : > { %v12373_v41 = vand.u32 4294901760, %v3996_v60  ;;  %v3991_v31 = vmul.f32 %v3966_v14, %v11285_v25  ;;  %v13290_v30 = vand.u32 4294901760, %v12370_v12 }
 0xabc   : > { %v12378_v63 = vsub.f32 %v3996_v60, %v12373_v41  ;;  %v3999_v57 = vsub.f32 %v12020_v29, %v3991_v31  ;;  %v4118_v14 = vsub.f32 %v12370_v12, %v13290_v30 }
 0xabd   : > { %v3961_v45 = vpop.permute.xlu1 %3960  ;;  %v3986_v20 = vpop.permute.xlu0 %3985 }
 0xabe   : > { %v12381_v0 = vand.u32 4294901760, %v3999_v57  ;;  %v3990_v40 = vmul.f32 %v3961_v45, %v11288_v19  ;;  %v13291_v1 = vand.u32 4294901760, %v12378_v63  ;;  %v3995_v58 = vmul.f32 %v3986_v20, %v11285_v25 }
 0xabf   : > { %v4119_v59 = vand.u32 4294901760, %v4118_v14 }
 0xac0   : > { %v12390_v3 = vsub.f32 %v3999_v57, %v12381_v0  ;;  %v3998_v60 = vsub.f32 %v12003_v9, %v3990_v40  ;;  %v4108_v31 = vsub.f32 %v12378_v63, %v13291_v1  ;;  %v4003_v20 = vsub.f32 %v12028_v53, %v3995_v58 }
 0xac1   : > { %v3976_v29 = vpop.permute.xlu1 %3975 }
 0xac2   : > { %v12396_v13 = vand.u32 4294901760, %v3998_v60  ;;  %v3993_v45 = vmul.f32 %v3976_v29, %v11285_v25  ;;  %v4109_v28 = vand.u32 4294901760, %v4108_v31  ;;  %v13294_v30 = vand.u32 4294901760, %v12390_v3 }
 0xac3   : > { %v12409_v31 = vand.u32 4294901760, %v4003_v20 }
 0xac4   : > { %v12402_v57 = vsub.f32 %v3998_v60, %v12396_v13  ;;  %v4001_v9 = vsub.f32 %v12030_v47, %v3993_v45  ;;  %8269 = vmatprep.mubr.f32.mxu0 %v4109_v28  ;;  %v4138_v53 = vsub.f32 %v12390_v3, %v13294_v30 }
 0xac5   : > { %8270 = vmatmul.mubr.f32.gmra.mrb[12].mxu0 %v4119_v59  ;;  %v3971_v40 = vpop.permute.xlu1 %3970  ;;  %v12425_v45 = vsub.f32 %v4003_v20, %v12409_v31 }
 0xac6   : > { %v12405_v1 = vand.u32 4294901760, %v4001_v9  ;;  %v3992_v56 = vmul.f32 %v3971_v40, %v11288_v19  ;;  %v13295_v25 = vand.u32 4294901760, %v12402_v57  ;;  %v4139_v40 = vand.u32 4294901760, %v4138_v53 }
 0xac7   : > { %v4177_v20 = vand.u32 4294901760, %v12425_v45 }
 0xac8   : > { %v12415_v58 = vsub.f32 %v4001_v9, %v12405_v1  ;;  %v4000_v47 = vsub.f32 %v12009_v48, %v3992_v56  ;;  %v4128_v59 = vsub.f32 %v12402_v57, %v13295_v25 }
 0xac9   : > { %v3981_v28 = vpop.permute.xlu1 %3980 }
 0xaca   : > { %v12421_v14 = vand.u32 4294901760, %v4000_v47  ;;  %v3994_v60 = vmul.f32 %v3981_v28, %v11288_v19  ;;  %v4129_v29 = vand.u32 4294901760, %v4128_v59  ;;  %v4157_v30 = vand.u32 4294901760, %v12415_v58 }
 0xacc   : > { %v12429_v9 = vsub.f32 %v4000_v47, %v12421_v14  ;;  %v4002_v56 = vsub.f32 %v12034_v21, %v3994_v60  ;;  %8272 = vmatprep.mubr.f32.mxu0 %v4129_v29  ;;  %v4158_v19 = vsub.f32 %v12415_v58, %v4157_v30  ;;  %v4178_v60 = vsub.f32 %v12425_v45, %v4177_v20 }
 0xacd   : > { %8273 = vmatmul.mubr.f32.gmra.mrb[14].mxu0 %v4139_v40 }
 0xace   : > { %v12432_v48 = vand.u32 4294901760, %v4002_v56  ;;  %v4147_v25 = vand.u32 4294901760, %v12429_v9  ;;  %v4159_v28 = vand.u32 4294901760, %v4158_v19  ;;  %v13549_v19 = vld [vmem:[#allocation67_spill] sm:$0xff] }
 0xad0   : > { %v12440_v53 = vsub.f32 %v4002_v56, %v12432_v48  ;;  %v4148_v47 = vsub.f32 %v12429_v9, %v4147_v25  ;;  %v4179_v56 = vand.u32 4294901760, %v4178_v60  ;;  %v13553_v60 = vand.u32 4294901760, %v12213_v2 }
 0xad1   : > { %v13561_v2 = vand.u32 4294901760, %v12249_v61 }
 0xad2   : > { %v4149_v21 = vand.u32 4294901760, %v4148_v47  ;;  %v4167_v59 = vand.u32 4294901760, %v12440_v53  ;;  %v13550_v47 = vand.u32 4294901760, %v12190_v16  ;;  %v13556_v16 = vand.u32 4294901760, %v12226_v17 }
 0xad4   : > { %8275 = vmatprep.mubr.f32.mxu0 %v4149_v21  ;;  %v4168_v29 = vsub.f32 %v12440_v53, %v4167_v59  ;;  %v13551_v21 = vand.u32 4294901760, %v12195_v62  ;;  %v13557_v62 = vand.u32 4294901760, %v12231_v54  ;;  %v13564_v54 = vand.u32 4294901760, %v12267_v7 }
 0xad5   : > { %8276 = vmatmul.mubr.f32.gmra.mrb[16].mxu0 %v4159_v28 }
 0xad6   : > { %v4169_v40 = vand.u32 4294901760, %v4168_v29  ;;  %v9694_v28 = vpack.c.bf16 %v13551_v21, %v13550_v47  ;;  %v13558_v47 = vand.u32 4294901760, %v12370_v12  ;;  %v13562_v21 = vand.u32 4294901760, %v12390_v3 }
 0xad8   : > { %8278 = vmatprep.mubr.f32.mxu0 %v4169_v40  ;;  %v13554_v40 = vand.u32 4294901760, %v12039_v4 }
 0xad9   : > { %8279 = vmatmul.mubr.f32.gmra.mrb[18].mxu0 %v4179_v56  ;;  %v13555_v56 = vand.u32 4294901760, %v12378_v63 }
 0xada   : > { %8313 = vmatprep.mubr.f32.mxu0 %v12007_v35 }
 0xadd   : > { %8314 = vmatmul.mubr.f32.vlgmr.msra.gmra.mrb[10].mxu0 %v12032_v23 }
 0xade   : > { %9633 = vmatpush3.bf16.msra.mxu0 %v12333_v37  ;;  %8316 = vmatprep.mubr.f32.mxu0 %v12373_v41  ;;  %v13541_v37 = vld [vmem:[#allocation12_spill] sm:$0xff] }
 0xadf   : > { %9635 = vmatprep.subr.bf16.mxu0 %v12337_v52 }
 0xae1   : > { %8317 = vmatmul.mubr.f32.gmra.mrb[12].mxu0 %v12366_v51 }
 0xae2   : > { %9637 = vmatpush3.bf16.msra.mxu0 %v12337_v52  ;;  %8319 = vmatprep.mubr.f32.mxu0 %v12396_v13  ;;  %v13542_v52 = vld [vmem:[#allocation19_spill] sm:$0xff] }
 0xae3   : > { %9639 = vmatprep.subr.bf16.mxu0 %v12342_v44 }
 0xae5   : > { %8320 = vmatmul.mubr.f32.gmra.mrb[14].mxu0 %v12381_v0 }
 0xae6   : > { %9641 = vmatpush3.bf16.msra.mxu0 %v12342_v44  ;;  %8322 = vmatprep.mubr.f32.mxu0 %v12421_v14  ;;  %v13543_v44 = vld [vmem:[#allocation31_spill] sm:$0xff] }
 0xae7   : > { %9643 = vmatprep.subr.bf16.mxu0 %v12346_v46 }
 0xae9   : > { %8323 = vmatmul.mubr.f32.gmra.mrb[16].mxu0 %v12405_v1 }
 0xaea   : > { %9645 = vmatpush3.bf16.msra.mxu0 %v12346_v46  ;;  %8325 = vmatprep.mubr.f32.mxu0 %v12432_v48  ;;  %v13544_v46 = vld [vmem:[#allocation34_spill] sm:$0xff] }
 0xaeb   : > { %9647 = vmatprep.subr.bf16.mxu0 %v12350_v26 }
 0xaed   : > { %8326 = vmatmul.mubr.f32.gmra.mrb[18].mxu0 %v12409_v31 }
 0xaee   : > { %9649 = vmatpush3.bf16.msra.mxu0 %v12350_v26  ;;  %8360 = vmatprep.mubr.f32.mxu0 %v12026_v18  ;;  %v13545_v26 = vld [vmem:[#allocation37_spill] sm:$0xff] }
 0xaef   : > { %9651 = vmatprep.subr.bf16.mxu0 %v12354_v39 }
 0xaf2   : > { %9653 = vmatpush3.bf16.msra.mxu0 %v12354_v39  ;;  %v13546_v39 = vand.u32 4294901760, %v12026_v18  ;;  %v13552_v18 = vand.u32 4294901760, %v12208_v15  ;;  %v13559_v15 = vand.u32 4294901760, %v12402_v57 }
 0xaf3   : > { %9655 = vmatprep.subr.bf16.mxu0 %v12358_v11 }
 0xaf4   : > { %v9698_v29 = vpack.c.bf16 %v13553_v60, %v13552_v18  ;;  %v13577_v60 = vld [vmem:[#allocation7_spill] sm:$0xff] }
 0xaf6   : > { %9657 = vmatpush3.bf16.msra.mxu0 %v12358_v11  ;;  %v13547_v11 = vld [vmem:[#allocation61_spill] sm:$0xff] }
 0xaf7   : > { %9659 = vmatprep.subr.bf16.mxu0 %v12362_v49 }
 0xafa   : > { %9661 = vmatpush3.bf16.msra.mxu0 %v12362_v49  ;;  %v13548_v49 = vld [vmem:[#allocation64_spill] sm:$0xff] }
 0xafb   : > { %9663 = vmatprep.subr.bf16.mxu0 %v13541_v37 }
 0xafd   : > { %8361 = vmatmul.mubr.f32.vlgmr.msra.gmra.mrb[10].mxu0 %v12039_v4  ;;  %v13560_v4 = vand.u32 4294901760, %v12244_v43  ;;  %v13566_v43 = vand.u32 4294901760, %v12285_v42 }
 0xafe   : > { %8363 = vmatprep.mubr.f32.mxu0 %v12378_v63  ;;  %9665 = vmatpush3.bf16.msra.mxu0 %v13541_v37 }
 0xaff   : > { %9667 = vmatprep.subr.bf16.mxu0 %v13542_v52  ;;  %v9706_v63 = vpack.c.bf16 %v13561_v2, %v13560_v4 }
 0xb01   : > { %8364 = vmatmul.mubr.f32.gmra.mrb[12].mxu0 %v12370_v12  ;;  %v13563_v12 = vand.u32 4294901760, %v12262_v38  ;;  %v13567_v38 = vand.u32 4294901760, %v12295_v34  ;;  %v13572_v34 = vld [vmem:[#allocation29_spill] sm:$0xff] }
 0xb02   : > { %8366 = vmatprep.mubr.f32.mxu0 %v12402_v57  ;;  %9669 = vmatpush3.bf16.msra.mxu0 %v13542_v52  ;;  %v13569_v57 = vand.u32 4294901760, %v12316_v27  ;;  %v13571_v27 = vld [vmem:[#allocation30_spill] sm:$0xff] }
 0xb03   : > { %9671 = vmatprep.subr.bf16.mxu0 %v13543_v44  ;;  %v9710_v17 = vpack.c.bf16 %v13564_v54, %v13563_v12 }
 0xb05   : > { %8367 = vmatmul.mubr.f32.gmra.mrb[14].mxu0 %v12390_v3  ;;  %v13565_v3 = vand.u32 4294901760, %v12280_v32  ;;  %v13570_v32 = vand.u32 4294901760, %v12321_v10 }
 0xb06   : > { %8369 = vmatprep.mubr.f32.mxu0 %v12429_v9  ;;  %9673 = vmatpush3.bf16.msra.mxu0 %v13543_v44 }
 0xb07   : > { %9675 = vmatprep.subr.bf16.mxu0 %v13544_v46  ;;  %v9714_v61 = vpack.c.bf16 %v13566_v43, %v13565_v3  ;;  %v9722_v42 = vpack.c.bf16 %v13570_v32, %v13569_v57 }
 0xb09   : > { %8370 = vmatmul.mubr.f32.gmra.mrb[16].mxu0 %v12415_v58 }
 0xb0a   : > { %8372 = vmatprep.mubr.f32.mxu0 %v12440_v53  ;;  %9677 = vmatpush3.bf16.msra.mxu0 %v13544_v46 }
 0xb0b   : > { %9679 = vmatprep.subr.bf16.mxu0 %v13545_v26 }
 0xb0d   : > { %8373 = vmatmul.mubr.f32.gmra.mrb[18].mxu0 %v12425_v45  ;;  %v13573_v45 = vld [vmem:[#allocation54_spill] sm:$0xff] }
 0xb0e   : > { %9681 = vmatpush3.bf16.msra.mxu0 %v13545_v26  ;;  %8407 = vmatprep.mubr.f32.mxu0 %v13546_v39  ;;  %v9702_v39 = vpack.c.bf16 %v13557_v62, %v13556_v16  ;;  %v13579_v62 = vld [vmem:[#allocation57_spill] sm:$0xff] }
 0xb0f   : > { %9683 = vmatprep.subr.bf16.mxu0 %v13547_v11 }
 0xb12   : > { %9685 = vmatpush3.bf16.msra.mxu0 %v13547_v11 }
 0xb13   : > { %9687 = vmatprep.subr.bf16.mxu0 %v13548_v49 }
 0xb16   : > { %9689 = vmatpush3.bf16.msra.mxu0 %v13548_v49 }
 0xb17   : > { %9691 = vmatprep.subr.bf16.mxu0 %v13549_v19 }
 0xb1a   : > { %9693 = vmatpush3.bf16.msra.mxu0 %v13549_v19 }
 0xb1b   : > { %9695 = vmatprep.subr.bf16.mxu0 %v9694_v28 }
 0xb1d   : > { %8408 = vmatmul.mubr.f32.vlgmr.msra.gmra.mrb[10].mxu0 %v13554_v40 }
 0xb1e   : > { %8410 = vmatprep.mubr.f32.mxu0 %v13555_v56  ;;  %9697 = vmatpush3.bf16.msra.mxu0 %v9694_v28  ;;  %v13576_v28 = vld [vmem:[#allocation6_spill] sm:$0xff]  ;;  %v13578_v56 = vld [vmem:[#allocation56_spill] sm:$0xff] }
 0xb1f   : > { %9699 = vmatprep.subr.bf16.mxu0 %v9698_v29 }
 0xb21   : > { %8411 = vmatmul.mubr.f32.gmra.mrb[12].mxu0 %v13558_v47  ;;  %v13580_v47 = vld [vmem:[#allocation58_spill] sm:$0xff] }
 0xb22   : > { %8413 = vmatprep.mubr.f32.mxu0 %v13559_v15  ;;  %9701 = vmatpush3.bf16.msra.mxu0 %v9698_v29 }
 0xb23   : > { %9703 = vmatprep.subr.bf16.mxu0 %v9702_v39 }
 0xb25   : > { %8414 = vmatmul.mubr.f32.gmra.mrb[14].mxu0 %v13562_v21 }
 0xb26   : > { %8416 = vmatprep.mubr.f32.mxu0 %v4147_v25  ;;  %9705 = vmatpush3.bf16.msra.mxu0 %v9702_v39 }
 0xb27   : > { %9707 = vmatprep.subr.bf16.mxu0 %v9706_v63 }
 0xb29   : > { %8417 = vmatmul.mubr.f32.gmra.mrb[16].mxu0 %v4157_v30  ;;  %v13568_v30 = vand.u32 4294901760, %v12300_v55 }
 0xb2a   : > { %8419 = vmatprep.mubr.f32.mxu0 %v4167_v59  ;;  %9709 = vmatpush3.bf16.msra.mxu0 %v9706_v63 }
 0xb2b   : > { %9711 = vmatprep.subr.bf16.mxu0 %v9710_v17  ;;  %v9718_v7 = vpack.c.bf16 %v13568_v30, %v13567_v38 }
 0xb2d   : > { %8420 = vmatmul.mubr.f32.gmra.mrb[18].mxu0 %v4177_v20 }
 0xb2e   : > { %9713 = vmatpush3.bf16.msra.mxu0 %v9710_v17  ;;  %8454 = vmatprep.mubr.f32.mxu0 %v12007_v35 }
 0xb2f   : > { %9715 = vmatprep.subr.bf16.mxu0 %v9714_v61 }
 0xb32   : > { %9717 = vmatpush3.bf16.msra.mxu0 %v9714_v61 }
 0xb33   : > { %9719 = vmatprep.subr.bf16.mxu0 %v9718_v7 }
 0xb36   : > { %9721 = vmatpush3.bf16.msra.mxu0 %v9718_v7 }
 0xb37   : > { %9723 = vmatprep.subr.bf16.mxu0 %v9722_v42 }
 0xb3a   : > { %9725 = vmatpush3.bf16.msra.mxu0 %v9722_v42 }
 0xb3b   : > { %9727 = vmatprep.subr.bf16.mxu0 %v13541_v37 }
 0xb3d   : > { %8455 = vmatmul.mubr.f32.vlgmr.msra.gmra.mrb[10].mxu0 %v12032_v23 }
 0xb3e   : > { %8457 = vmatprep.mubr.f32.mxu0 %v12373_v41  ;;  %9729 = vmatpush3.bf16.msra.mxu0 %v13541_v37 }
 0xb3f   : > { %9731 = vmatprep.subr.bf16.mxu0 %v13542_v52 }
 0xb41   : > { %8458 = vmatmul.mubr.f32.gmra.mrb[12].mxu0 %v12366_v51 }
 0xb42   : > { %8460 = vmatprep.mubr.f32.mxu0 %v12396_v13  ;;  %9733 = vmatpush3.bf16.msra.mxu0 %v13542_v52 }
 0xb43   : > { %9735 = vmatprep.subr.bf16.mxu0 %v13543_v44 }
 0xb45   : > { %8461 = vmatmul.mubr.f32.gmra.mrb[14].mxu0 %v12381_v0 }
 0xb46   : > { %8463 = vmatprep.mubr.f32.mxu0 %v12421_v14  ;;  %9737 = vmatpush3.bf16.msra.mxu0 %v13543_v44 }
 0xb47   : > { %9739 = vmatprep.subr.bf16.mxu0 %v13544_v46 }
 0xb49   : > { %8464 = vmatmul.mubr.f32.gmra.mrb[16].mxu0 %v12405_v1 }
 0xb4a   : > { %8466 = vmatprep.mubr.f32.mxu0 %v12432_v48  ;;  %9741 = vmatpush3.bf16.msra.mxu0 %v13544_v46 }
 0xb4b   : > { %9743 = vmatprep.subr.bf16.mxu0 %v13545_v26 }
 0xb4d   : > { %8467 = vmatmul.mubr.f32.gmra.mrb[18].mxu0 %v12409_v31 }
 0xb4e   : > { %9745 = vmatpush3.bf16.msra.mxu0 %v13545_v26  ;;  %8501 = vmatprep.mubr.f32.mxu0 %v12007_v35 }
 0xb4f   : > { %9747 = vmatprep.subr.bf16.mxu0 %v13547_v11 }
 0xb52   : > { %9749 = vmatpush3.bf16.msra.mxu0 %v13547_v11 }
 0xb53   : > { %9751 = vmatprep.subr.bf16.mxu0 %v13548_v49 }
 0xb56   : > { %9753 = vmatpush3.bf16.msra.mxu0 %v13548_v49  ;;  %v13575_v49 = vld [vmem:[#allocation5_spill] sm:$0xff] }
 0xb57   : > { %9755 = vmatprep.subr.bf16.mxu0 %v13549_v19 }
 0xb5a   : > { %9757 = vmatpush3.bf16.msra.mxu0 %v13549_v19 }
 0xb5d   : > { %8502 = vmatmul.mubr.f32.vlgmr.msra.gmra.mrb[10].mxu0 %v12032_v23 }
 0xb5e   : > { %8504 = vmatprep.mubr.f32.mxu0 %v12373_v41 }
 0xb61   : > { %8505 = vmatmul.mubr.f32.gmra.mrb[12].mxu0 %v12366_v51 }
 0xb62   : > { %8507 = vmatprep.mubr.f32.mxu0 %v12396_v13 }
 0xb65   : > { %8508 = vmatmul.mubr.f32.gmra.mrb[14].mxu0 %v12381_v0 }
 0xb66   : > { %8510 = vmatprep.mubr.f32.mxu0 %v12421_v14 }
 0xb69   : > { %8511 = vmatmul.mubr.f32.gmra.mrb[16].mxu0 %v12405_v1 }
 0xb6a   : > { %8513 = vmatprep.mubr.f32.mxu0 %v12432_v48 }
 0xb6d   : > { %8514 = vmatmul.mubr.f32.gmra.mrb[18].mxu0 %v12409_v31  ;;  %v13574_v31 = vld [vmem:[#allocation55_spill] sm:$0xff] }
 0xc30   : > { %v8503_v10 = vpop.f32.mrb[10].mxu0 }
 0xc31   : > { %v4974_v35 = vpop.f32.mrb[11].mxu0  ;;  %v5033_v23 = vmul.f32 %v8503_v10, %v13571_v27 }
 0xc32   : > { %v5032_v41 = vmul.f32 %v4974_v35, %v13572_v34 }
 0xc33   : > { %5036 = vadd.xlane.f32.xlu0 %v5033_v23 }
 0xc34   : > { %5034 = vadd.xlane.f32.xlu1 %v5032_v41  ;;  %v8506_v55 = vpop.f32.mrb[12].mxu0 }
 0xc35   : > { %v4986_v13 = vpop.f32.mrb[13].mxu0  ;;  %v5051_v48 = vmul.f32 %v8506_v55, %v13571_v27 }
 0xc36   : > { %v5050_v20 = vmul.f32 %v4986_v13, %v13572_v34 }
 0xc38   : > { %v8509_v51 = vpop.f32.mrb[14].mxu0 }
 0xc39   : > { %v4998_v0 = vpop.f32.mrb[15].mxu0  ;;  %v5053_v53 = vmul.f32 %v8509_v51, %v13571_v27 }
 0xc3a   : > { %v5052_v52 = vmul.f32 %v4998_v0, %v13572_v34 }
 0xc3c   : > { %v8512_v25 = vpop.f32.mrb[16].mxu0 }
 0xc3d   : > { %v5010_v58 = vpop.f32.mrb[17].mxu0  ;;  %v5055_v44 = vmul.f32 %v8512_v25, %v13571_v27 }
 0xc3e   : > { %v5054_v46 = vmul.f32 %v5010_v58, %v13572_v34 }
 0xc40   : > { %v8515_v14 = vpop.f32.mrb[18].mxu0 }
 0xc41   : > { %v5022_v1 = vpop.f32.mrb[19].mxu0 }
 0xc45   : > { %6114 = vrot.lane.b32.xlu1 %v13573_v45, %s10279_s28 }
 0xc49   : > { %6112 = vrot.lane.b32.xlu0 %v13574_v31, %s10279_s28  ;;  %6094 = vrot.lane.b32.xlu1 %v13574_v31, %s10280_s9 }
 0xc4d   : > { %6096 = vrot.lane.b32.xlu0 %v13573_v45, %s10280_s9 }
 0xcc0   : > { %v5037_v9 = vpop.xlane.xlu0 %5036 }
 0xcc1   : > { %v5039_v59 = vsub.f32 %v8503_v10, %v5037_v9  ;;  %v5035_v37 = vpop.xlane.xlu1 %5034  ;;  %v5057_v9 = vmul.f32 %v8515_v14, %v13571_v27 }
 0xcc2   : > { %v5038_v26 = vsub.f32 %v4974_v35, %v5035_v37 }
 0xcc3   : > { %v5041_v11 = vmul.f32 %v5039_v59, %v13571_v27  ;;  %v5043_v19 = vmul.f32 %v5039_v59, %v13575_v49  ;;  %v5045_v18 = vmul.f32 %v5039_v59, %v13576_v28  ;;  %v5047_v29 = vmul.f32 %v5039_v59, %v13577_v60  ;;  %v13583_v60 = vld [vmem:[#allocation39_spill] sm:$0xff] }
 0xcc4   : > { %v5040_v40 = vmul.f32 %v5038_v26, %v13572_v34  ;;  %v5042_v16 = vmul.f32 %v5038_v26, %v13578_v56  ;;  %v5044_v39 = vmul.f32 %v5038_v26, %v13579_v62  ;;  %v5046_v15 = vmul.f32 %v5038_v26, %v13580_v47 }
 0xcc5   : > { %v12615_v4 = vand.u32 4294901760, %v5041_v11  ;;  %v5059_v2 = vadd.f32 %v5051_v48, %v5043_v19  ;;  %v5061_v63 = vadd.f32 %v5053_v53, %v5045_v18  ;;  %v5063_v21 = vadd.f32 %v5055_v44, %v5047_v29 }
 0xcc6   : > { %v12617_v12 = vand.u32 4294901760, %v5040_v40  ;;  %v5058_v54 = vadd.f32 %v5050_v20, %v5042_v16  ;;  %v5060_v17 = vadd.f32 %v5052_v52, %v5044_v39  ;;  %v5062_v3 = vadd.f32 %v5054_v46, %v5046_v15 }
 0xcc7   : > { %v12620_v43 = vsub.f32 %v5041_v11, %v12615_v4  ;;  %v12622_v61 = vand.u32 4294901760, %v5059_v2  ;;  %v12624_v38 = vand.u32 4294901760, %v5061_v63  ;;  %v12646_v55 = vand.u32 4294901760, %v5063_v21  ;;  %v13581_v11 = vld [vmem:[#allocation8_spill] sm:$0xff] }
 0xcc8   : > { %v12627_v30 = vsub.f32 %v5040_v40, %v12617_v12  ;;  %v12629_v7 = vand.u32 4294901760, %v5058_v54  ;;  %v12631_v57 = vand.u32 4294901760, %v5060_v17  ;;  %v12633_v32 = vand.u32 4294901760, %v5062_v3 }
 0xcc9   : > { %v5159_v42 = vand.u32 4294901760, %v12620_v43  ;;  %v12637_v10 = vsub.f32 %v5059_v2, %v12622_v61  ;;  %v12653_v0 = vsub.f32 %v5061_v63, %v12624_v38  ;;  %v5056_v48 = vmul.f32 %v5022_v1, %v13572_v34  ;;  %v13582_v1 = vld [vmem:[#allocation59_spill] sm:$0xff] }
 0xcca   : > { %v5149_v35 = vand.u32 4294901760, %v12627_v30  ;;  %v12641_v23 = vsub.f32 %v5058_v54, %v12629_v7  ;;  %v12644_v41 = vsub.f32 %v5060_v17, %v12631_v57  ;;  %v12661_v31 = vsub.f32 %v5062_v3, %v12633_v32 }
 0xccb   : > { %v5160_v13 = vsub.f32 %v12620_v43, %v5159_v42  ;;  %v5179_v51 = vand.u32 4294901760, %v12637_v10  ;;  %v12669_v37 = vsub.f32 %v5063_v21, %v12646_v55  ;;  %v5199_v46 = vand.u32 4294901760, %v12653_v0 }
 0xccc   : > { %v5150_v25 = vsub.f32 %v12627_v30, %v5149_v35  ;;  %v5169_v58 = vand.u32 4294901760, %v12641_v23  ;;  %v5189_v45 = vand.u32 4294901760, %v12644_v41  ;;  %v5048_v49 = vmul.f32 %v5038_v26, %v13581_v11  ;;  %v13597_v11 = vld [vmem:[#allocation26_spill] sm:$0xff] }
 0xccd   : > { %v5161_v52 = vand.u32 4294901760, %v5160_v13  ;;  %v5180_v44 = vsub.f32 %v12637_v10, %v5179_v51  ;;  %v5209_v14 = vand.u32 4294901760, %v12661_v31  ;;  %v5049_v19 = vmul.f32 %v5039_v59, %v13582_v1 }
 0xcce   : > { %v5151_v20 = vand.u32 4294901760, %v5150_v25  ;;  %v5170_v53 = vsub.f32 %v12641_v23, %v5169_v58  ;;  %v5190_v34 = vsub.f32 %v12644_v41, %v5189_v45  ;;  %v5064_v28 = vadd.f32 %v5056_v48, %v5048_v49  ;;  %v13592_v48 = vld [vmem:[#allocation10_spill] sm:$0xff]  ;;  %v13598_v49 = vld [vmem:[#allocation28_spill] sm:$0xff] }
 0xccf   : > { %v5065_v18 = vadd.f32 %v5057_v9, %v5049_v19  ;;  %v5181_v29 = vand.u32 4294901760, %v5180_v44  ;;  %v5200_v26 = vsub.f32 %v12653_v0, %v5199_v46  ;;  %v5219_v40 = vand.u32 4294901760, %v12669_v37  ;;  %v13591_v9 = vld [vmem:[#allocation9_spill] sm:$0xff]  ;;  %v13596_v44 = vld [vmem:[#allocation20_spill] sm:$0xff] }
 0xcd0   : > { %8548 = vmatprep.mubr.f32.mxu1 %v5151_v20  ;;  %v5171_v27 = vand.u32 4294901760, %v5170_v53  ;;  %v12687_v56 = vand.u32 4294901760, %v5064_v28  ;;  %v5191_v16 = vand.u32 4294901760, %v5190_v34  ;;  %v5210_v59 = vsub.f32 %v12661_v31, %v5209_v14  ;;  %v13593_v20 = vld [vmem:[#allocation11_spill] sm:$0xff]  ;;  %v13594_v53 = vld [vmem:[#allocation13_spill] sm:$0xff] }
 0xcd1   : > { %8549 = vmatmul.mubr.f32.vlgmr.msra.gmra.mrb[12].mxu1 %v5161_v52  ;;  %v12692_v62 = vand.u32 4294901760, %v5065_v18  ;;  %v5201_v47 = vand.u32 4294901760, %v5200_v26  ;;  %v5220_v15 = vsub.f32 %v12669_v37, %v5219_v40  ;;  %v13595_v52 = vld [vmem:[#allocation16_spill] sm:$0xff] }
 0xcd2   : > { %9793 = vmatpush3.bf16.msra.mxu1 %v11087_v24  ;;  %8551 = vmatprep.mubr.f32.mxu1 %v5171_v27  ;;  %v12695_v24 = vsub.f32 %v5064_v28, %v12687_v56  ;;  %v5211_v63 = vand.u32 4294901760, %v5210_v59  ;;  %v13599_v27 = vld [vmem:[#allocation46_spill] sm:$0xff]  ;;  %v12884_v28 = vld [vmem:[%s10389_s30 + $0x8] sm:$0xff] }
 0xcd3   : > { %9795 = vmatprep.subr.bf16.mxu1 %v13583_v60  ;;  %v12699_v39 = vsub.f32 %v5065_v18, %v12692_v62  ;;  %v5221_v17 = vand.u32 4294901760, %v5220_v15 }
 0xcd4   : > { %v5229_v2 = vand.u32 4294901760, %v12695_v24 }
 0xcd5   : > { %8552 = vmatmul.mubr.f32.gmra.mrb[14].mxu1 %v5181_v29  ;;  %v5239_v21 = vand.u32 4294901760, %v12699_v39 }
 0xcd6   : > { %9797 = vmatpush3.bf16.msra.mxu1 %v13583_v60  ;;  %8554 = vmatprep.mubr.f32.mxu1 %v5191_v16  ;;  %v5230_v54 = vsub.f32 %v12695_v24, %v5229_v2 }
 0xcd7   : > { %9799 = vmatprep.subr.bf16.mxu1 %v13490_v33  ;;  %v5240_v3 = vsub.f32 %v12699_v39, %v5239_v21 }
 0xcd8   : > { %v5231_v13 = vand.u32 4294901760, %v5230_v54 }
 0xcd9   : > { %8555 = vmatmul.mubr.f32.gmra.mrb[16].mxu1 %v5201_v47  ;;  %v5241_v25 = vand.u32 4294901760, %v5240_v3 }
 0xcda   : > { %9801 = vmatpush3.bf16.msra.mxu1 %v13490_v33  ;;  %8557 = vmatprep.mubr.f32.mxu1 %v5211_v63  ;;  %v13585_v33 = vld [vmem:[#allocation24_spill] sm:$0xff] }
 0xcdb   : > { %9803 = vmatprep.subr.bf16.mxu1 %v13491_v6 }
 0xcdd   : > { %8558 = vmatmul.mubr.f32.gmra.mrb[18].mxu1 %v5221_v17 }
 0xcde   : > { %9805 = vmatpush3.bf16.msra.mxu1 %v13491_v6  ;;  %8560 = vmatprep.mubr.f32.mxu1 %v5231_v13  ;;  %v13584_v6 = vld [vmem:[#allocation23_spill] sm:$0xff] }
 0xcdf   : > { %9807 = vmatprep.subr.bf16.mxu1 %v13492_v50 }
 0xce1   : > { %8561 = vmatmul.mubr.f32.gmra.mrb[20].mxu1 %v5241_v25 }
 0xce2   : > { %9809 = vmatpush3.bf16.msra.mxu1 %v13492_v50  ;;  %8595 = vmatprep.mubr.f32.mxu1 %v12617_v12  ;;  %v13586_v50 = vld [vmem:[#allocation41_spill] sm:$0xff] }
 0xce3   : > { %9811 = vmatprep.subr.bf16.mxu1 %v13493_v5 }
 0xce6   : > { %9813 = vmatpush3.bf16.msra.mxu1 %v13493_v5  ;;  %v13588_v5 = vld [vmem:[#allocation43_spill] sm:$0xff] }
 0xce7   : > { %9815 = vmatprep.subr.bf16.mxu1 %v13494_v36 }
 0xcea   : > { %9817 = vmatpush3.bf16.msra.mxu1 %v13494_v36  ;;  %v13589_v36 = vld [vmem:[#allocation44_spill] sm:$0xff] }
 0xceb   : > { %9819 = vmatprep.subr.bf16.mxu1 %v13495_v22 }
 0xcee   : > { %9821 = vmatpush3.bf16.msra.mxu1 %v13495_v22  ;;  %v13590_v22 = vld [vmem:[#allocation45_spill] sm:$0xff] }
 0xcef   : > { %9823 = vmatprep.subr.bf16.mxu1 %v11253_v8 }
 0xcf1   : > { %8596 = vmatmul.mubr.f32.vlgmr.msra.gmra.mrb[12].mxu1 %v12615_v4 }
 0xcf2   : > { %8598 = vmatprep.mubr.f32.mxu1 %v12629_v7  ;;  %9825 = vmatpush3.bf16.msra.mxu1 %v11253_v8  ;;  %v13587_v8 = vld [vmem:[#allocation42_spill] sm:$0xff] }
 0xcf3   : > { %9827 = vmatprep.subr.bf16.mxu1 %v13584_v6 }
 0xcf5   : > { %8599 = vmatmul.mubr.f32.gmra.mrb[14].mxu1 %v12622_v61 }
 0xcf6   : > { %8601 = vmatprep.mubr.f32.mxu1 %v12631_v57  ;;  %9829 = vmatpush3.bf16.msra.mxu1 %v13584_v6 }
 0xcf7   : > { %9831 = vmatprep.subr.bf16.mxu1 %v13585_v33 }
 0xcf9   : > { %8602 = vmatmul.mubr.f32.gmra.mrb[16].mxu1 %v12624_v38 }
 0xcfa   : > { %8604 = vmatprep.mubr.f32.mxu1 %v12633_v32  ;;  %9833 = vmatpush3.bf16.msra.mxu1 %v13585_v33 }
 0xcfb   : > { %9835 = vmatprep.subr.bf16.mxu1 %v13586_v50 }
 0xcfd   : > { %8605 = vmatmul.mubr.f32.gmra.mrb[18].mxu1 %v12646_v55 }
 0xcfe   : > { %8607 = vmatprep.mubr.f32.mxu1 %v12687_v56  ;;  %9837 = vmatpush3.bf16.msra.mxu1 %v13586_v50 }
 0xcff   : > { %9839 = vmatprep.subr.bf16.mxu1 %v13587_v8 }
 0xd01   : > { %8608 = vmatmul.mubr.f32.gmra.mrb[20].mxu1 %v12692_v62 }
 0xd02   : > { %9841 = vmatpush3.bf16.msra.mxu1 %v13587_v8  ;;  %8642 = vmatprep.mubr.f32.mxu1 %v12627_v30  ;;  %v13600_v30 = vld [vmem:[#allocation47_spill] sm:$0xff] }
 0xd03   : > { %9843 = vmatprep.subr.bf16.mxu1 %v13588_v5 }
 0xd06   : > { %9845 = vmatpush3.bf16.msra.mxu1 %v13588_v5 }
 0xd07   : > { %9847 = vmatprep.subr.bf16.mxu1 %v13589_v36 }
 0xd0a   : > { %9849 = vmatpush3.bf16.msra.mxu1 %v13589_v36 }
 0xd0b   : > { %9851 = vmatprep.subr.bf16.mxu1 %v13590_v22 }
 0xd0e   : > { %9853 = vmatpush3.bf16.msra.mxu1 %v13590_v22 }
 0xd0f   : > { %9855 = vmatprep.subr.bf16.mxu1 %v13591_v9 }
 0xd11   : > { %8643 = vmatmul.mubr.f32.vlgmr.msra.gmra.mrb[12].mxu1 %v12620_v43  ;;  %v13602_v43 = vld [vmem:[#allocation49_spill] sm:$0xff] }
 0xd12   : > { %8645 = vmatprep.mubr.f32.mxu1 %v12641_v23  ;;  %9857 = vmatpush3.bf16.msra.mxu1 %v13591_v9  ;;  %v13605_v23 = vld [vmem:[#allocation52_spill] sm:$0xff] }
 0xd13   : > { %9859 = vmatprep.subr.bf16.mxu1 %v13592_v48 }
 0xd15   : > { %8646 = vmatmul.mubr.f32.gmra.mrb[14].mxu1 %v12637_v10  ;;  %v13604_v10 = vld [vmem:[#allocation51_spill] sm:$0xff] }
 0xd16   : > { %8648 = vmatprep.mubr.f32.mxu1 %v12644_v41  ;;  %9861 = vmatpush3.bf16.msra.mxu1 %v13592_v48  ;;  %v13606_v41 = vld [vmem:[#allocation53_spill] sm:$0xff] }
 0xd17   : > { %9863 = vmatprep.subr.bf16.mxu1 %v13593_v20 }
 0xd19   : > { %8649 = vmatmul.mubr.f32.gmra.mrb[16].mxu1 %v12653_v0 }
 0xd1a   : > { %8651 = vmatprep.mubr.f32.mxu1 %v12661_v31  ;;  %9865 = vmatpush3.bf16.msra.mxu1 %v13593_v20 }
 0xd1b   : > { %9867 = vmatprep.subr.bf16.mxu1 %v13594_v53 }
 0xd1d   : > { %8652 = vmatmul.mubr.f32.gmra.mrb[18].mxu1 %v12669_v37 }
 0xd1e   : > { %8654 = vmatprep.mubr.f32.mxu1 %v12695_v24  ;;  %9869 = vmatpush3.bf16.msra.mxu1 %v13594_v53 }
 0xd1f   : > { %9871 = vmatprep.subr.bf16.mxu1 %v13595_v52 }
 0xd21   : > { %8655 = vmatmul.mubr.f32.gmra.mrb[20].mxu1 %v12699_v39 }
 0xd22   : > { %9873 = vmatpush3.bf16.msra.mxu1 %v13595_v52  ;;  %8689 = vmatprep.mubr.f32.mxu1 %v5149_v35  ;;  %v13601_v35 = vld [vmem:[#allocation48_spill] sm:$0xff] }
 0xd23   : > { %9875 = vmatprep.subr.bf16.mxu1 %v13596_v44 }
 0xd26   : > { %9877 = vmatpush3.bf16.msra.mxu1 %v13596_v44 }
 0xd27   : > { %9879 = vmatprep.subr.bf16.mxu1 %v13597_v11 }
 0xd2a   : > { %9881 = vmatpush3.bf16.msra.mxu1 %v13597_v11 }
 0xd2b   : > { %9883 = vmatprep.subr.bf16.mxu1 %v13598_v49 }
 0xd2e   : > { %9885 = vmatpush3.bf16.msra.mxu1 %v13598_v49 }
 0xd2f   : > { %9887 = vmatprep.subr.bf16.mxu1 %v13599_v27 }
 0xd31   : > { %8690 = vmatmul.mubr.f32.vlgmr.msra.gmra.mrb[12].mxu1 %v5159_v42  ;;  %v13603_v42 = vld [vmem:[#allocation50_spill] sm:$0xff] }
 0xd32   : > { %8692 = vmatprep.mubr.f32.mxu1 %v5169_v58  ;;  %9889 = vmatpush3.bf16.msra.mxu1 %v13599_v27 }
 0xd33   : > { %9891 = vmatprep.subr.bf16.mxu1 %v13600_v30 }
 0xd35   : > { %8693 = vmatmul.mubr.f32.gmra.mrb[14].mxu1 %v5179_v51 }
 0xd36   : > { %8695 = vmatprep.mubr.f32.mxu1 %v5189_v45  ;;  %9893 = vmatpush3.bf16.msra.mxu1 %v13600_v30 }
 0xd37   : > { %9895 = vmatprep.subr.bf16.mxu1 %v13601_v35 }
 0xd39   : > { %8696 = vmatmul.mubr.f32.gmra.mrb[16].mxu1 %v5199_v46  ;;  %v12872_v46 = vld [vmem:[%s10389_s30] sm:$0xff]  ;;  %s10284_s30 = smov 127  }
 0xd3a   : > { %8698 = vmatprep.mubr.f32.mxu1 %v5209_v14  ;;  %9897 = vmatpush3.bf16.msra.mxu1 %v13601_v35 }
 0xd3b   : > { %9899 = vmatprep.subr.bf16.mxu1 %v13602_v43 }
 0xd3d   : > { %8699 = vmatmul.mubr.f32.gmra.mrb[18].mxu1 %v5219_v40 }
 0xd3e   : > { %8701 = vmatprep.mubr.f32.mxu1 %v5229_v2  ;;  %9901 = vmatpush3.bf16.msra.mxu1 %v13602_v43 }
 0xd3f   : > { %9903 = vmatprep.subr.bf16.mxu1 %v13603_v42 }
 0xd41   : > { %8702 = vmatmul.mubr.f32.gmra.mrb[20].mxu1 %v5239_v21 }
 0xd42   : > { %9905 = vmatpush3.bf16.msra.mxu1 %v13603_v42  ;;  %8736 = vmatprep.mubr.f32.mxu1 %v12617_v12 }
 0xd43   : > { %9907 = vmatprep.subr.bf16.mxu1 %v13604_v10 }
 0xd46   : > { %9909 = vmatpush3.bf16.msra.mxu1 %v13604_v10 }
 0xd47   : > { %9911 = vmatprep.subr.bf16.mxu1 %v13605_v23 }
 0xd4a   : > { %9913 = vmatpush3.bf16.msra.mxu1 %v13605_v23 }
 0xd4b   : > { %9915 = vmatprep.subr.bf16.mxu1 %v13606_v41 }
 0xd4e   : > { %9917 = vmatpush3.bf16.msra.mxu1 %v13606_v41 }
 0xd4f   : > { %9919 = vmatprep.subr.bf16.mxu1 %v13591_v9 }
 0xd51   : > { %8737 = vmatmul.mubr.f32.vlgmr.msra.gmra.mrb[12].mxu1 %v12615_v4 }
 0xd52   : > { %8739 = vmatprep.mubr.f32.mxu1 %v12629_v7  ;;  %9921 = vmatpush3.bf16.msra.mxu1 %v13591_v9 }
 0xd53   : > { %9923 = vmatprep.subr.bf16.mxu1 %v13592_v48 }
 0xd55   : > { %8740 = vmatmul.mubr.f32.gmra.mrb[14].mxu1 %v12622_v61 }
 0xd56   : > { %8742 = vmatprep.mubr.f32.mxu1 %v12631_v57  ;;  %9925 = vmatpush3.bf16.msra.mxu1 %v13592_v48 }
 0xd57   : > { %9927 = vmatprep.subr.bf16.mxu1 %v13593_v20 }
 0xd59   : > { %8743 = vmatmul.mubr.f32.gmra.mrb[16].mxu1 %v12624_v38 }
 0xd5a   : > { %8745 = vmatprep.mubr.f32.mxu1 %v12633_v32  ;;  %9929 = vmatpush3.bf16.msra.mxu1 %v13593_v20 }
 0xd5b   : > { %9931 = vmatprep.subr.bf16.mxu1 %v13594_v53 }
 0xd5d   : > { %8746 = vmatmul.mubr.f32.gmra.mrb[18].mxu1 %v12646_v55 }
 0xd5e   : > { %8748 = vmatprep.mubr.f32.mxu1 %v12687_v56  ;;  %9933 = vmatpush3.bf16.msra.mxu1 %v13594_v53 }
 0xd5f   : > { %9935 = vmatprep.subr.bf16.mxu1 %v13595_v52 }
 0xd61   : > { %8749 = vmatmul.mubr.f32.gmra.mrb[20].mxu1 %v12692_v62 }
 0xd62   : > { %9937 = vmatpush3.bf16.msra.mxu1 %v13595_v52  ;;  %8783 = vmatprep.mubr.f32.mxu1 %v12617_v12 }
 0xd63   : > { %9939 = vmatprep.subr.bf16.mxu1 %v13596_v44 }
 0xd66   : > { %9941 = vmatpush3.bf16.msra.mxu1 %v13596_v44 }
 0xd67   : > { %9943 = vmatprep.subr.bf16.mxu1 %v13597_v11 }
 0xd6a   : > { %9945 = vmatpush3.bf16.msra.mxu1 %v13597_v11 }
 0xd6b   : > { %9947 = vmatprep.subr.bf16.mxu1 %v13598_v49 }
 0xd6e   : > { %9949 = vmatpush3.bf16.msra.mxu1 %v13598_v49 }
 0xd71   : > { %8784 = vmatmul.mubr.f32.vlgmr.msra.gmra.mrb[12].mxu1 %v12615_v4  ;;  %v6115_v4 = vpop.permute.xlu1 %6114 }
 0xd72   : > { %8786 = vmatprep.mubr.f32.mxu1 %v12629_v7 }
 0xd75   : > { %8787 = vmatmul.mubr.f32.gmra.mrb[14].mxu1 %v12622_v61  ;;  %v6095_v34 = vpop.permute.xlu1 %6094 }
 0xd76   : > { %8789 = vmatprep.mubr.f32.mxu1 %v12631_v57  ;;  %v6113_v57 = vpop.permute.xlu0 %6112 }
 0xd79   : > { %8790 = vmatmul.mubr.f32.gmra.mrb[16].mxu1 %v12624_v38 }
 0xd7a   : > { %8792 = vmatprep.mubr.f32.mxu1 %v12633_v32  ;;  %v6097_v40 = vpop.permute.xlu0 %6096 }
 0xd7d   : > { %8793 = vmatmul.mubr.f32.gmra.mrb[18].mxu1 %v12646_v55 }
 0xd7e   : > { %8795 = vmatprep.mubr.f32.mxu1 %v12687_v56 }
 0xd81   : > { %8796 = vmatmul.mubr.f32.gmra.mrb[20].mxu1 %v12692_v62 }
 0xe44   : > { %v12848_v12 = vpop.f32.mrb[12].mxu1 }
 0xe45   : > { %v12850_v51 = vpop.f32.mrb[13].mxu1 }
 0xe48   : > { %v12852_v7 = vpop.f32.mrb[14].mxu1 }
 0xe49   : > { %v12854_v61 = vpop.f32.mrb[15].mxu1  ;;  %v6119_v38 = vmul.f32 %v12852_v7, %v6115_v4  ;;  %v6101_v16 = vmul.f32 %v12852_v7, %v6097_v40 }
 0xe4a   : > { %v6118_v0 = vmul.f32 %v6113_v57, %v12854_v61  ;;  %v6100_v19 = vmul.f32 %v6095_v34, %v12854_v61 }
 0xe4b   : > { %6124 = vrot.lane.b32.xlu1 %v6119_v38, %s10281_s10 }
 0xe4c   : > { %v12858_v32 = vpop.f32.mrb[16].mxu1 }
 0xe4d   : > { %v12860_v55 = vpop.f32.mrb[17].mxu1  ;;  %v6143_v58 = vmul.f32 %v12858_v32, %v6115_v4  ;;  %v6131_v59 = vmul.f32 %v12858_v32, %v6097_v40 }
 0xe4e   : > { %v6142_v37 = vmul.f32 %v6113_v57, %v12860_v55  ;;  %v6130_v18 = vmul.f32 %v6095_v34, %v12860_v55 }
 0xe4f   : > { %6122 = vrot.lane.b32.xlu1 %v6118_v0, %s10281_s10  ;;  %6148 = vrot.lane.b32.xlu0 %v6143_v58, %s10281_s10 }
 0xe50   : > { %v12866_v45 = vpop.f32.mrb[18].mxu1 }
 0xe51   : > { %v12868_v31 = vpop.f32.mrb[19].mxu1  ;;  %v6167_v60 = vmul.f32 %v12866_v45, %v6115_v4  ;;  %v6155_v53 = vmul.f32 %v12866_v45, %v6097_v40 }
 0xe52   : > { %v6166_v29 = vmul.f32 %v6113_v57, %v12868_v31  ;;  %v6154_v22 = vmul.f32 %v6095_v34, %v12868_v31 }
 0xe53   : > { %6224 = vrot.lane.b32.xlu1 %v12872_v46, %s10282_s11  ;;  %6146 = vrot.lane.b32.xlu0 %v6142_v37, %s10281_s10 }
 0xe54   : > { %v12877_v14 = vpop.f32.mrb[20].mxu1 }
 0xe55   : > { %v12879_v1 = vpop.f32.mrb[21].mxu1  ;;  %v6191_v26 = vmul.f32 %v12877_v14, %v6115_v4  ;;  %v6179_v52 = vmul.f32 %v12877_v14, %v6097_v40 }
 0xe56   : > { %v6190_v56 = vmul.f32 %v6113_v57, %v12879_v1  ;;  %v6178_v9 = vmul.f32 %v6095_v34, %v12879_v1 }
 0xe57   : > { %6104 = vrot.lane.b32.xlu1 %v6100_v19, %s10283_s12  ;;  %6226 = vrot.lane.b32.xlu0 %v12884_v28, %s10282_s11 }
 0xe5b   : > { %6134 = vrot.lane.b32.xlu0 %v6130_v18, %s10283_s12  ;;  %6172 = vrot.lane.b32.xlu1 %v6167_v60, %s10281_s10 }
 0xe5f   : > { %6170 = vrot.lane.b32.xlu1 %v6166_v29, %s10281_s10  ;;  %6196 = vrot.lane.b32.xlu0 %v6191_v26, %s10281_s10 }
 0xe63   : > { %6106 = vrot.lane.b32.xlu1 %v6101_v16, %s10283_s12  ;;  %6194 = vrot.lane.b32.xlu0 %v6190_v56, %s10281_s10 }
 0xe67   : > { %6204 = vrot.lane.b32.xlu1 %v12872_v46, %s10284_s30  ;;  %6136 = vrot.lane.b32.xlu0 %v6131_v59, %s10283_s12 }
 0xe6b   : > { %6206 = vrot.lane.b32.xlu0 %v12884_v28, %s10284_s30 }
 0xebd   : > { %v6125_v62 = vpop.permute.xlu1 %6124 }
 0xebe   : > { %v6129_v54 = vsub.f32 %v12852_v7, %v6125_v62 }
 0xec1   : > { %v6123_v24 = vpop.permute.xlu1 %6122  ;;  %v6149_v39 = vpop.permute.xlu0 %6148 }
 0xec2   : > { %v6128_v2 = vsub.f32 %v12854_v61, %v6123_v24  ;;  %v6153_v63 = vsub.f32 %v12858_v32, %v6149_v39 }
 0xec4   : > { %v6233_v6 = vmul.f32 %v12884_v28, %v6153_v63 }
 0xec5   : > { %v6225_v47 = vpop.permute.xlu1 %6224  ;;  %v6147_v15 = vpop.permute.xlu0 %6146 }
 0xec6   : > { %v6152_v21 = vsub.f32 %v12860_v55, %v6147_v15  ;;  %v6230_v17 = vmul.f32 %v6225_v47, %v6128_v2 }
 0xec8   : > { %v6232_v3 = vmul.f32 %v12872_v46, %v6152_v21 }
 0xec9   : > { %v6105_v13 = vpop.permute.xlu1 %6104  ;;  %v6227_v25 = vpop.permute.xlu0 %6226 }
 0xeca   : > { %v6231_v33 = vmul.f32 %v6227_v25, %v6129_v54  ;;  %v6234_v50 = vadd.f32 %v6232_v3, %v6230_v17  ;;  %v6110_v49 = vsub.f32 %v12854_v61, %v6105_v13 }
 0xecc   : > { %v6235_v8 = vadd.f32 %v6233_v6, %v6231_v33  ;;  %6238 = vrot.lane.b32.xlu1 %v6234_v50, %s10283_s12  ;;  %v6202_v10 = vmul.f32 %v12872_v46, %v6110_v49 }
 0xecd   : > { %v6135_v5 = vpop.permute.xlu0 %6134  ;;  %v6173_v36 = vpop.permute.xlu1 %6172 }
 0xece   : > { %6240 = vrot.lane.b32.xlu0 %v6235_v8, %s10283_s12  ;;  %v6140_v30 = vsub.f32 %v12860_v55, %v6135_v5  ;;  %v12940_v61 = vsub.f32 %v12866_v45, %v6173_v36 }
 0xed0   : > { %6158 = vrot.lane.b32.xlu1 %v6154_v22, %s10283_s12 }
 0xed1   : > { %v6171_v48 = vpop.permute.xlu1 %6170  ;;  %v6197_v20 = vpop.permute.xlu0 %6196 }
 0xed2   : > { %6182 = vrot.lane.b32.xlu0 %v6178_v9, %s10283_s12  ;;  %v12928_v35 = vsub.f32 %v12868_v31, %v6171_v48  ;;  %v12934_v23 = vsub.f32 %v12877_v14, %v6197_v20 }
 0xed4   : > { %6160 = vrot.lane.b32.xlu1 %v6155_v53, %s10283_s12  ;;  %v6335_v49 = vsub.f32 0.0, %v12928_v35 }
 0xed5   : > { %v6107_v44 = vpop.permute.xlu1 %6106  ;;  %v6195_v11 = vpop.permute.xlu0 %6194 }
 0xed6   : > { %v12923_v27 = vsub.f32 %v12879_v1, %v6195_v11  ;;  %6184 = vrot.lane.b32.xlu0 %v6179_v52, %s10283_s12  ;;  %v6111_v41 = vsub.f32 %v12852_v7, %v6107_v44 }
 0xed8   : > { %6248 = vrot.lane.b32.xlu1 %v12923_v27, %s10284_s30  ;;  %v6203_v0 = vmul.f32 %v12884_v28, %v6111_v41 }
 0xed9   : > { %v6205_v43 = vpop.permute.xlu1 %6204  ;;  %v6137_v42 = vpop.permute.xlu0 %6136 }
 0xeda   : > { %v6210_v4 = vmul.f32 %v6205_v43, %v6140_v30  ;;  %6258 = vrot.lane.b32.xlu0 %v12928_v35, %s10284_s30  ;;  %v6141_v57 = vsub.f32 %v12858_v32, %v6137_v42  ;;  %v6336_v30 = vsub.f32 0.0, %v12940_v61 }
 0xedc   : > { %v6212_v38 = vadd.f32 %v6210_v4, %v6202_v10  ;;  %6250 = vrot.lane.b32.xlu1 %v12934_v23, %s10284_s30 }
 0xedd   : > { %v6207_v55 = vpop.permute.xlu0 %6206 }
 0xede   : > { %v6211_v58 = vmul.f32 %v6207_v55, %v6141_v57  ;;  %6260 = vrot.lane.b32.xlu0 %v12940_v61, %s10284_s30 }
 0xee0   : > { %v6213_v7 = vadd.f32 %v6211_v58, %v6203_v0  ;;  %6216 = vrot.lane.b32.xlu1 %v6212_v38, %s10281_s10 }
 0xee2   : > { %6218 = vrot.lane.b32.xlu0 %v6213_v7, %s10281_s10 }
 0xf3e   : > { %v6239_v37 = vpop.permute.xlu1 %6238 }
 0xf3f   : > { %v6244_v34 = vsub.f32 %v12850_v51, %v6239_v37 }
 0xf40   : > { %v6241_v19 = vpop.permute.xlu0 %6240 }
 0xf41   : > { %v6245_v32 = vsub.f32 %v12848_v12, %v6241_v19  ;;  %6296 = vrot.lane.b32.xlu1 %v6244_v34, %s10279_s28 }
 0xf42   : > { %v6159_v18 = vpop.permute.xlu1 %6158 }
 0xf43   : > { %v6164_v60 = vsub.f32 %v12868_v31, %v6159_v18  ;;  %6298 = vrot.lane.b32.xlu0 %v6245_v32, %s10279_s28 }
 0xf44   : > { %v6183_v29 = vpop.permute.xlu0 %6182 }
 0xf45   : > { %v6188_v26 = vsub.f32 %v12879_v1, %v6183_v29 }
 0xf46   : > { %v6161_v40 = vpop.permute.xlu1 %6160 }
 0xf47   : > { %v6165_v56 = vsub.f32 %v12866_v45, %v6161_v40 }
 0xf48   : > { %v6185_v16 = vpop.permute.xlu0 %6184 }
 0xf49   : > { %v6189_v59 = vsub.f32 %v12877_v14, %v6185_v16 }
 0xf4a   : > { %v6249_v62 = vpop.permute.xlu1 %6248 }
 0xf4b   : > { %v6254_v24 = vmul.f32 %v6249_v62, %v6164_v60 }
 0xf4c   : > { %v6259_v39 = vpop.permute.xlu0 %6258 }
 0xf4d   : > { %v6264_v47 = vmul.f32 %v6259_v39, %v6188_v26 }
 0xf4e   : > { %v6251_v15 = vpop.permute.xlu1 %6250 }
 0xf4f   : > { %v6266_v2 = vsub.f32 %v6254_v24, %v6264_v47  ;;  %v6255_v63 = vmul.f32 %v6251_v15, %v6165_v56 }
 0xf50   : > { %v6261_v21 = vpop.permute.xlu0 %6260 }
 0xf51   : > { %v6265_v31 = vmul.f32 %v6261_v21, %v6189_v59  ;;  %10225 = vrcp.f32 %v6266_v2 }
 0xf52   : > { %v6217_v54 = vpop.permute.xlu1 %6216 }
 0xf53   : > { %v6267_v17 = vsub.f32 %v6255_v63, %v6265_v31  ;;  %v6222_v3 = vsub.f32 %v12850_v51, %v6217_v54 }
 0xf54   : > { %v6219_v1 = vpop.permute.xlu0 %6218 }
 0xf55   : > { %v6223_v13 = vsub.f32 %v12848_v12, %v6219_v1  ;;  %6286 = vrot.lane.b32.xlu1 %v6222_v3, %s10280_s9  ;;  %10227 = vrcp.f32 %v6267_v17 }
 0xf57   : > { %6288 = vrot.lane.b32.xlu0 %v6223_v13, %s10280_s9 }
 0xf5b   : > { %v10226_v33 = vpop.eup %10225 }
 0xf5f   : > { %v10228_v51 = vpop.eup %10227 }
 0xfb3   : > { %v6297_v45 = vpop.permute.xlu1 %6296 }
 0xfb4   : > { %v6302_v14 = vmul.f32 %v6297_v45, %v6188_v26  ;;  %v6339_v12 = vmul.f32 %v6297_v45, %v6164_v60 }
 0xfb5   : > { %v6299_v25 = vpop.permute.xlu0 %6298 }
 0xfb6   : > { %v6303_v6 = vmul.f32 %v6299_v25, %v6189_v59  ;;  %6306 = vrot.lane.b32.xlu1 %v6302_v14, %s10282_s11  ;;  %v6340_v50 = vmul.f32 %v6299_v25, %v6165_v56 }
 0xfb8   : > { %6308 = vrot.lane.b32.xlu0 %v6303_v6, %s10282_s11 }
 0xfba   : > { %6316 = vrot.lane.b32.xlu1 %v10226_v33, %s10282_s11 }
 0xfbc   : > { %6318 = vrot.lane.b32.xlu0 %v10228_v51, %s10282_s11 }
 0xfbe   : > { %6272 = vrot.lane.b32.xlu1 %v12872_v46, %s10281_s10 }
 0xfc0   : > { %6274 = vrot.lane.b32.xlu0 %v12884_v28, %s10281_s10 }
 0xfc2   : > { %6343 = vrot.lane.b32.xlu1 %v6339_v12, %s10282_s11 }
 0xfc4   : > { %6345 = vrot.lane.b32.xlu0 %v6340_v50, %s10282_s11 }
 0xfc7   : > { %v6287_v8 = vpop.permute.xlu1 %6286 }
 0xfc8   : > { %v6292_v22 = vmul.f32 %v6287_v8, %v12923_v27  ;;  %v6337_v43 = vmul.f32 %v6335_v49, %v6287_v8 }
 0xfc9   : > { %v6289_v5 = vpop.permute.xlu0 %6288 }
 0xfca   : > { %v6293_v48 = vmul.f32 %v6289_v5, %v12934_v23  ;;  %v6338_v10 = vmul.f32 %v6336_v30, %v6289_v5 }
0x1028   : > { %v6307_v36 = vpop.permute.xlu1 %6306 }
0x1029   : > { %v6312_v20 = vsub.f32 %v6292_v22, %v6307_v36 }
0x102a   : > { %v6309_v9 = vpop.permute.xlu0 %6308 }
0x102b   : > { %v6313_v53 = vsub.f32 %v6293_v48, %v6309_v9 }
0x102c   : > { %v6317_v46 = vpop.permute.xlu1 %6316 }
0x102d   : > { %v6322_v52 = vmul.f32 %v6317_v46, %v6312_v20 }
0x102e   : > { %v6319_v44 = vpop.permute.xlu0 %6318 }
0x102f   : > { %v6323_v28 = vmul.f32 %v6319_v44, %v6313_v53  ;;  %6326 = vrot.lane.b32.xlu1 %v6322_v52, %s10284_s30 }
0x1030   : > { %v6273_v11 = vpop.permute.xlu1 %6272 }
0x1031   : > { %6279 = vst.msk [vmem:[%s322_s15] sm:$0xff] %vm6278_vm0, %v6273_v11  ;;  %6328 = vrot.lane.b32.xlu0 %v6323_v28, %s10284_s30 }
0x1032   : > { %v6275_v27 = vpop.permute.xlu0 %6274  ;;  %6282 = vst.msk [vmem:[%s322_s15] sm:$0xff] %vm6281_vm1, %v6273_v11 }
0x1033   : > { %6280 = vst.msk [vmem:[%s322_s15 + $0x8] sm:$0xff] %vm6278_vm0, %v6275_v27 }
0x1034   : > { %v6344_v42 = vpop.permute.xlu1 %6343  ;;  %6283 = vst.msk [vmem:[%s322_s15 + $0x8] sm:$0xff] %vm6281_vm1, %v6275_v27 }
0x1035   : > { %v6349_v23 = vadd.f32 %v6344_v42, %v6337_v43 }
0x1036   : > { %v6346_v41 = vpop.permute.xlu0 %6345 }
0x1037   : > { %v6351_v4 = vmul.f32 %v6349_v23, %v6317_v46  ;;  %v6350_v38 = vadd.f32 %v6346_v41, %v6338_v10 }
0x1039   : > { %v6352_v57 = vmul.f32 %v6350_v38, %v6319_v44 }
0x10a1   : > { %v6327_v35 = vpop.permute.xlu1 %6326 }
0x10a2   : > { %6333 = vst.msk [vmem:[%s322_s15] sm:$0xff] %vm6332_vm2, %v6327_v35 }
0x10a3   : > { %v6329_v55 = vpop.permute.xlu0 %6328  ;;  %6354 = vst.msk [vmem:[%s322_s15] sm:$0xff] %vm6353_vm3, %v6351_v4 }
0x10a4   : > { %6334 = vst.msk [vmem:[%s322_s15 + $0x8] sm:$0xff] %vm6332_vm2, %v6329_v55 }
0x10a5   : > { %6355 = vst.msk [vmem:[%s322_s15 + $0x8] sm:$0xff] %vm6353_vm3, %v6352_v57 }
0x10a6 PF: > { %s19_s27 = sadd.s32 1, %s10269_s27  }
0x10a7   : > { %p16_p3 = scmp.ge.s32.totalorder %s19_s27, 4  }
0x10a9   :  { %18 = sbr.rel (!%p16_p3) target bundleno = 1 (0x1), region = 87 }
0x10b0   :  { %6378 = vsyncpa [#allocation3], 1 }
0x10b1   :  { %6380 = vsyncpa [#allocation3 + $0x1], 1 }

</bundles_post_ra>
